<compile_context>
chip_gen: v6e
topology: v6e:2x2x1
jax: 0.10.0
libtpu: 0.0.40
codegen_flags: <defaults>
</compile_context>

<pallas_src>
import jax
import jax.numpy as jnp
from jax import lax
from jax.experimental import pallas as pl
from jax.experimental.pallas import tpu as pltpu


def basic_block_kernel(x_ref, w1_ref, w2_ref, b1_ref, b2_ref, o_ref, pad_ref):
    # x_ref  : (TH+4, W+2, Cp) bf16  input row-tile, 2-row / 1-col zero halo, lane-padded C
    # w1_ref : (3, 3*Cp, Cp)   bf16  conv1 taps, kh-major, kw fused along K, BN1 scale folded
    # w2_ref : (3, 3*Cp, Cp)   bf16  conv2 taps, BN2 scale folded
    # b1_ref : (1, Cp)         f32   BN1 folded bias
    # b2_ref : (1, Cp)         f32   BN2 folded bias
    # o_ref  : (TH, W, Cp)     f32   output row-tile (lane-dense)
    # pad_ref: (TH+2, W+2, Cp) bf16  scratch: y1 staged with conv2's 1-px halo
    THp2, Wp2, Cp = pad_ref.shape
    TH, W = THp2 - 2, Wp2 - 2
    K3 = 3 * Cp
    t = pl.program_id(1)
    n_t = pl.num_programs(1)

    def conv3x3(load_win, w_ref, rows):
        # One MXU matmul per kh row: the 3 kw taps are fused along K (K = 3*Cp).
        acc = None
        for kh in range(3):
            win = jnp.concatenate([load_win(kh, kw) for kw in range(3)], axis=-1)
            d = jnp.dot(win.reshape(rows * W, K3), w_ref[kh],
                        preferred_element_type=jnp.float32)   # f32 accumulation
            acc = d if acc is None else acc + d
        return acc

    # ---- conv1 + bn1 + relu over TH+2 rows (1-row y1 halo each side) -------
    y1 = conv3x3(lambda kh, kw: x_ref[kh:kh + THp2, kw:kw + W, :], w1_ref, THp2)
    y1 = jnp.maximum(y1 + b1_ref[...], 0.0)                   # bias + relu (f32)

    # ---- stage y1 (bf16) into the padded scratch ---------------------------
    pad_ref[:, 1:W + 1, :] = y1.astype(jnp.bfloat16).reshape(THp2, W, Cp)
    # conv2's column halo is always zero (thin stores, cheap in bf16).
    pad_ref[:, 0:1, :] = jnp.zeros((THp2, 1, Cp), jnp.bfloat16)
    pad_ref[:, W + 1:W + 2, :] = jnp.zeros((THp2, 1, Cp), jnp.bfloat16)

    # conv2's row halo is zero only for the image-top / image-bottom tiles;
    # interior tiles keep the recomputed y1 halo rows stored above.
    @pl.when(t == 0)
    def _():
        pad_ref[0:1, :, :] = jnp.zeros((1, Wp2, Cp), jnp.bfloat16)

    @pl.when(t == n_t - 1)
    def _():
        pad_ref[TH + 1:TH + 2, :, :] = jnp.zeros((1, Wp2, Cp), jnp.bfloat16)

    # ---- conv2 + bn2 --------------------------------------------------------
    y2 = conv3x3(lambda kh, kw: pad_ref[kh:kh + TH, kw:kw + W, :], w2_ref, TH)
    y2 = y2 + b2_ref[...]

    # ---- residual add + relu ------------------------------------------------
    ident = x_ref[2:TH + 2, 1:W + 1, :].reshape(TH * W, Cp).astype(jnp.float32)
    out = jnp.maximum(y2 + ident, 0.0)
    o_ref[...] = out.reshape(TH, W, Cp).astype(o_ref.dtype)


def basic_block_pallas(x, conv1_w, conv2_w, bn1_params, bn2_params,
                       eps=1e-5, lane=128, tile_h=8):
    """x: (N, Cin, H, W) f32 NCHW. conv*_w: PyTorch OIHW. bn*: (gamma, beta, mean, var)."""
    N, Cin, H, W = x.shape
    planes = conv1_w.shape[0]
    assert conv1_w.shape == (planes, Cin, 3, 3)
    assert conv2_w.shape == (planes, planes, 3, 3)
    assert Cin == planes, "downsample=None / stride=1 requires inplanes == planes"
    C = Cin
    Cp = max(lane, ((C + lane - 1) // lane) * lane)   # lane-dense channel padding

    # Row-tile height: largest divisor of H not exceeding tile_h.
    TH = min(tile_h, H)
    while H % TH:
        TH -= 1
    nT = H // TH

    # ---- fold eval-mode BN: scale into conv weights, bias stays in-kernel --
    def fold_bn(gamma, beta, mean, var):
        s = (gamma / jnp.sqrt(var + eps)).astype(jnp.float32)
        b = (beta - mean * s).astype(jnp.float32)
        s_p = jnp.zeros((Cp,), jnp.float32).at[:C].set(s)
        b_p = jnp.zeros((1, Cp), jnp.float32).at[0, :C].set(b)
        return s_p, b_p

    s1, b1 = fold_bn(*bn1_params)
    s2, b2 = fold_bn(*bn2_params)

    # OIHW -> (kh, kw*Cp+in, out): kw taps fused along K, BN scale folded in f32,
    # channels zero-padded to Cp, cast to bf16 for the MXU.
    def repack(w, s_p):
        o, i = w.shape[0], w.shape[1]
        wk = jnp.transpose(w, (2, 3, 1, 0)).astype(jnp.float32)      # (kh, kw, i, o)
        wk = jnp.pad(wk, ((0, 0), (0, 0), (0, Cp - i), (0, Cp - o)))
        wk = wk * s_p[None, None, None, :]                           # fold BN scale
        return wk.reshape(3, 3 * Cp, Cp).astype(jnp.bfloat16)

    w1_k = repack(conv1_w, s1)
    w2_k = repack(conv2_w, s2)

    # NCHW -> NHWC, channel pad to Cp, 2-row / 1-col zero halo, ONE bf16 cast.
    x_nhwc = jnp.transpose(x, (0, 2, 3, 1))
    x_pad = jnp.pad(x_nhwc, ((0, 0), (2, 2), (1, 1), (0, Cp - C))).astype(jnp.bfloat16)

    # Pre-tiled overlapping row slabs (2-row halo each side): (N, nT, TH+4, W+2, Cp).
    x_tiled = jnp.stack([x_pad[:, t * TH:t * TH + TH + 4] for t in range(nT)], axis=1)

    # VMEM budget derived from actual block sizes (double-buffered in/out blocks,
    # weights, bf16 scratch, f32 working temporaries), clamped under v7x's 64 MiB.
    bytes_in = (TH + 4) * (W + 2) * Cp * 2
    bytes_out = TH * W * Cp * 4
    bytes_w = 2 * 3 * (3 * Cp) * Cp * 2 + 4 * Cp * 4
    bytes_scr = (TH + 2) * (W + 2) * Cp * 2
    bytes_tmp = 6 * (TH + 2) * W * Cp * 4
    vmem_budget = 2 * (bytes_in + bytes_out) + 2 * bytes_w + bytes_scr + bytes_tmp
    vmem_budget = int(min(max(vmem_budget + (4 << 20), 16 << 20), 48 << 20))

    out_nhwc = pl.pallas_call(
        basic_block_kernel,
        out_shape=jax.ShapeDtypeStruct((N, H, W, Cp), jnp.float32),
        grid=(N, nT),
        in_specs=[
            pl.BlockSpec((None, None, TH + 4, W + 2, Cp),
                         lambda n, t: (n, t, 0, 0, 0)),
            pl.BlockSpec((3, 3 * Cp, Cp), lambda n, t: (0, 0, 0)),
            pl.BlockSpec((3, 3 * Cp, Cp), lambda n, t: (0, 0, 0)),
            pl.BlockSpec((1, Cp), lambda n, t: (0, 0)),
            pl.BlockSpec((1, Cp), lambda n, t: (0, 0)),
        ],
        out_specs=pl.BlockSpec((None, TH, W, Cp), lambda n, t: (n, t, 0, 0)),
        scratch_shapes=[pltpu.VMEM((TH + 2, W + 2, Cp), jnp.bfloat16)],
        compiler_params=pltpu.CompilerParams(
            dimension_semantics=("parallel", "parallel"),
            vmem_limit_bytes=vmem_budget),
    )(x_tiled, w1_k, w2_k, b1, b2)

    # drop channel padding, NHWC -> NCHW (public API matches PyTorch).
    return jnp.transpose(out_nhwc[..., :C], (0, 3, 1, 2)).astype(x.dtype)


def basic_block_reference(x, w1, w2, bn1_params, bn2_params, eps=1e-5):
    """Plain-JAX NCHW reference mirroring the PyTorch forward (eval-mode BN)."""
    def bn(y, params):
        gamma, beta, mean, var = params
        s = gamma / jnp.sqrt(var + eps)
        b = beta - mean * s
        return y * s[None, :, None, None] + b[None, :, None, None]

    dn1 = lax.conv_dimension_numbers(x.shape, w1.shape, ("NCHW", "OIHW", "NCHW"))
    y = lax.conv_general_dilated(x, w1, (1, 1), ((1, 1), (1, 1)),
                                 dimension_numbers=dn1)
    y = jnp.maximum(bn(y, bn1_params), 0.0)
    dn2 = lax.conv_dimension_numbers(y.shape, w2.shape, ("NCHW", "OIHW", "NCHW"))
    y = lax.conv_general_dilated(y, w2, (1, 1), ((1, 1), (1, 1)),
                                 dimension_numbers=dn2)
    y = bn(y, bn2_params)
    return jnp.maximum(y + x, 0.0)


if __name__ == "__main__":
    # BasicBlock with stride=1, downsample=None => inplanes == planes.
    inplanes = planes = 4
    N, H, W = 2, 16, 16

    key = jax.random.PRNGKey(0)
    (kx, k1, k2, kg1, kb1, km1, kv1, kg2, kb2, km2, kv2) = jax.random.split(key, 11)

    x = jax.random.normal(kx, (N, inplanes, H, W), jnp.float32)
    w1 = jax.random.normal(k1, (planes, inplanes, 3, 3), jnp.float32) * 0.1
    w2 = jax.random.normal(k2, (planes, planes, 3, 3), jnp.float32) * 0.1
    bn1 = (1.0 + 0.1 * jax.random.normal(kg1, (planes,), jnp.float32),
           0.1 * jax.random.normal(kb1, (planes,), jnp.float32),
           0.1 * jax.random.normal(km1, (planes,), jnp.float32),
           1.0 + 0.5 * jax.random.uniform(kv1, (planes,), jnp.float32))
    bn2 = (1.0 + 0.1 * jax.random.normal(kg2, (planes,), jnp.float32),
           0.1 * jax.random.normal(kb2, (planes,), jnp.float32),
           0.1 * jax.random.normal(km2, (planes,), jnp.float32),
           1.0 + 0.5 * jax.random.uniform(kv2, (planes,), jnp.float32))

    fn = jax.jit(basic_block_pallas)
    out = jax.block_until_ready(fn(x, w1, w2, bn1, bn2))
    ref = jax.block_until_ready(basic_block_reference(x, w1, w2, bn1, bn2))

    assert out.shape == (N, planes, H, W)
    max_err = jnp.max(jnp.abs(out - ref))
    # bf16 activations/weights at the MXU (f32 accumulation) => ~1e-3..1e-2 abs error.
    assert jnp.allclose(out, ref, rtol=2e-2, atol=3e-2), f"max abs err = {max_err}"
    print("KERNEL_OK")
</pallas_src>

<mosaic_0001>
module attributes {stable_mosaic.version = 11 : i64} {
  func.func @basic_block_kernel(%arg0: i32, %arg1: i32, %arg2: memref<1x1x12x18x128xbf16, #tpu.memory_space<vmem>>, %arg3: memref<3x384x128xbf16, #tpu.memory_space<vmem>>, %arg4: memref<3x384x128xbf16, #tpu.memory_space<vmem>>, %arg5: memref<1x128xf32, #tpu.memory_space<vmem>>, %arg6: memref<1x128xf32, #tpu.memory_space<vmem>>, %arg7: memref<1x8x16x128xf32, #tpu.memory_space<vmem>>, %arg8: memref<10x18x128xbf16, #tpu.memory_space<vmem>>) attributes {dimension_semantics = [#tpu.dimension_semantics<parallel>, #tpu.dimension_semantics<parallel>], iteration_bounds = array<i64: 2, 2>, scalar_prefetch = 0 : i64, scratch_operands = 1 : i64, tpu.core_type = #tpu.core_type<tc>, window_params = [{transform_indices = @transform_0, window_bounds = array<i64: 1, 1, 12, 18, 128>}, {pipeline_mode = #tpu.pipeline_mode<synchronous>, transform_indices = @transform_1, window_bounds = array<i64: 3, 384, 128>}, {pipeline_mode = #tpu.pipeline_mode<synchronous>, transform_indices = @transform_2, window_bounds = array<i64: 3, 384, 128>}, {pipeline_mode = #tpu.pipeline_mode<synchronous>, transform_indices = @transform_3, window_bounds = array<i64: 1, 128>}, {pipeline_mode = #tpu.pipeline_mode<synchronous>, transform_indices = @transform_4, window_bounds = array<i64: 1, 128>}, {transform_indices = @transform_5, window_bounds = array<i64: 1, 8, 16, 128>}]} {
    %c0 = arith.constant 0 : index
    %c0_0 = arith.constant 0 : index
    %c0_1 = arith.constant 0 : index
    %c0_2 = arith.constant 0 : index
    %c0_3 = arith.constant 0 : index
    %0 = vector.load %arg2[%c0, %c0_0, %c0_1, %c0_2, %c0_3] : memref<1x1x12x18x128xbf16, #tpu.memory_space<vmem>>, vector<1x1x10x16x128xbf16>
    %1 = vector.shape_cast %0 : vector<1x1x10x16x128xbf16> to vector<10x16x128xbf16>
    %c0_4 = arith.constant 0 : index
    %c0_5 = arith.constant 0 : index
    %c0_6 = arith.constant 0 : index
    %c1 = arith.constant 1 : index
    %c0_7 = arith.constant 0 : index
    %2 = vector.load %arg2[%c0_4, %c0_5, %c0_6, %c1, %c0_7] : memref<1x1x12x18x128xbf16, #tpu.memory_space<vmem>>, vector<1x1x10x16x128xbf16>
    %3 = vector.shape_cast %2 : vector<1x1x10x16x128xbf16> to vector<10x16x128xbf16>
    %c0_8 = arith.constant 0 : index
    %c0_9 = arith.constant 0 : index
    %c0_10 = arith.constant 0 : index
    %c2 = arith.constant 2 : index
    %c0_11 = arith.constant 0 : index
    %4 = vector.load %arg2[%c0_8, %c0_9, %c0_10, %c2, %c0_11] : memref<1x1x12x18x128xbf16, #tpu.memory_space<vmem>>, vector<1x1x10x16x128xbf16>
    %5 = vector.shape_cast %4 : vector<1x1x10x16x128xbf16> to vector<10x16x128xbf16>
    %6 = tpu.concatenate %1, %3, %5 in 2 : vector<10x16x128xbf16>, vector<10x16x128xbf16>, vector<10x16x128xbf16> -> vector<10x16x384xbf16>
    %7 = vector.shape_cast %6 : vector<10x16x384xbf16> to vector<160x384xbf16>
    %c0_12 = arith.constant 0 : index
    %c0_13 = arith.constant 0 : index
    %c0_14 = arith.constant 0 : index
    %8 = vector.load %arg3[%c0_12, %c0_13, %c0_14] : memref<3x384x128xbf16, #tpu.memory_space<vmem>>, vector<1x384x128xbf16>
    %9 = vector.shape_cast %8 : vector<1x384x128xbf16> to vector<384x128xbf16>
    %cst = arith.constant dense<0.000000e+00> : vector<160x128xf32>
    %10 = tpu.matmul %7, %9, %cst {dimension_numbers = #tpu.dot_dimension_numbers<[1], [0], [0], [1], [0, 0, 1, 1], [], []>} : vector<160x384xbf16>, vector<384x128xbf16>, vector<160x128xf32> -> vector<160x128xf32>
    %c0_15 = arith.constant 0 : index
    %c0_16 = arith.constant 0 : index
    %c1_17 = arith.constant 1 : index
    %c0_18 = arith.constant 0 : index
    %c0_19 = arith.constant 0 : index
    %11 = vector.load %arg2[%c0_15, %c0_16, %c1_17, %c0_18, %c0_19] : memref<1x1x12x18x128xbf16, #tpu.memory_space<vmem>>, vector<1x1x10x16x128xbf16>
    %12 = vector.shape_cast %11 : vector<1x1x10x16x128xbf16> to vector<10x16x128xbf16>
    %c0_20 = arith.constant 0 : index
    %c0_21 = arith.constant 0 : index
    %c1_22 = arith.constant 1 : index
    %c1_23 = arith.constant 1 : index
    %c0_24 = arith.constant 0 : index
    %13 = vector.load %arg2[%c0_20, %c0_21, %c1_22, %c1_23, %c0_24] : memref<1x1x12x18x128xbf16, #tpu.memory_space<vmem>>, vector<1x1x10x16x128xbf16>
    %14 = vector.shape_cast %13 : vector<1x1x10x16x128xbf16> to vector<10x16x128xbf16>
    %c0_25 = arith.constant 0 : index
    %c0_26 = arith.constant 0 : index
    %c1_27 = arith.constant 1 : index
    %c2_28 = arith.constant 2 : index
    %c0_29 = arith.constant 0 : index
    %15 = vector.load %arg2[%c0_25, %c0_26, %c1_27, %c2_28, %c0_29] : memref<1x1x12x18x128xbf16, #tpu.memory_space<vmem>>, vector<1x1x10x16x128xbf16>
    %16 = vector.shape_cast %15 : vector<1x1x10x16x128xbf16> to vector<10x16x128xbf16>
    %17 = tpu.concatenate %12, %14, %16 in 2 : vector<10x16x128xbf16>, vector<10x16x128xbf16>, vector<10x16x128xbf16> -> vector<10x16x384xbf16>
    %18 = vector.shape_cast %17 : vector<10x16x384xbf16> to vector<160x384xbf16>
    %c1_30 = arith.constant 1 : index
    %c0_31 = arith.constant 0 : index
    %c0_32 = arith.constant 0 : index
    %19 = vector.load %arg3[%c1_30, %c0_31, %c0_32] : memref<3x384x128xbf16, #tpu.memory_space<vmem>>, vector<1x384x128xbf16>
    %20 = vector.shape_cast %19 : vector<1x384x128xbf16> to vector<384x128xbf16>
    %cst_33 = arith.constant dense<0.000000e+00> : vector<160x128xf32>
    %21 = tpu.matmul %18, %20, %cst_33 {dimension_numbers = #tpu.dot_dimension_numbers<[1], [0], [0], [1], [0, 0, 1, 1], [], []>} : vector<160x384xbf16>, vector<384x128xbf16>, vector<160x128xf32> -> vector<160x128xf32>
    %22 = arith.addf %10, %21 : vector<160x128xf32>
    %c0_34 = arith.constant 0 : index
    %c0_35 = arith.constant 0 : index
    %c2_36 = arith.constant 2 : index
    %c0_37 = arith.constant 0 : index
    %c0_38 = arith.constant 0 : index
    %23 = vector.load %arg2[%c0_34, %c0_35, %c2_36, %c0_37, %c0_38] : memref<1x1x12x18x128xbf16, #tpu.memory_space<vmem>>, vector<1x1x10x16x128xbf16>
    %24 = vector.shape_cast %23 : vector<1x1x10x16x128xbf16> to vector<10x16x128xbf16>
    %c0_39 = arith.constant 0 : index
    %c0_40 = arith.constant 0 : index
    %c2_41 = arith.constant 2 : index
    %c1_42 = arith.constant 1 : index
    %c0_43 = arith.constant 0 : index
    %25 = vector.load %arg2[%c0_39, %c0_40, %c2_41, %c1_42, %c0_43] : memref<1x1x12x18x128xbf16, #tpu.memory_space<vmem>>, vector<1x1x10x16x128xbf16>
    %26 = vector.shape_cast %25 : vector<1x1x10x16x128xbf16> to vector<10x16x128xbf16>
    %c0_44 = arith.constant 0 : index
    %c0_45 = arith.constant 0 : index
    %c2_46 = arith.constant 2 : index
    %c2_47 = arith.constant 2 : index
    %c0_48 = arith.constant 0 : index
    %27 = vector.load %arg2[%c0_44, %c0_45, %c2_46, %c2_47, %c0_48] : memref<1x1x12x18x128xbf16, #tpu.memory_space<vmem>>, vector<1x1x10x16x128xbf16>
    %28 = vector.shape_cast %27 : vector<1x1x10x16x128xbf16> to vector<10x16x128xbf16>
    %29 = tpu.concatenate %24, %26, %28 in 2 : vector<10x16x128xbf16>, vector<10x16x128xbf16>, vector<10x16x128xbf16> -> vector<10x16x384xbf16>
    %30 = vector.shape_cast %29 : vector<10x16x384xbf16> to vector<160x384xbf16>
    %c2_49 = arith.constant 2 : index
    %c0_50 = arith.constant 0 : index
    %c0_51 = arith.constant 0 : index
    %31 = vector.load %arg3[%c2_49, %c0_50, %c0_51] : memref<3x384x128xbf16, #tpu.memory_space<vmem>>, vector<1x384x128xbf16>
    %32 = vector.shape_cast %31 : vector<1x384x128xbf16> to vector<384x128xbf16>
    %cst_52 = arith.constant dense<0.000000e+00> : vector<160x128xf32>
    %33 = tpu.matmul %30, %32, %cst_52 {dimension_numbers = #tpu.dot_dimension_numbers<[1], [0], [0], [1], [0, 0, 1, 1], [], []>} : vector<160x384xbf16>, vector<384x128xbf16>, vector<160x128xf32> -> vector<160x128xf32>
    %34 = arith.addf %22, %33 : vector<160x128xf32>
    %c0_53 = arith.constant 0 : index
    %c0_54 = arith.constant 0 : index
    %35 = vector.load %arg5[%c0_53, %c0_54] : memref<1x128xf32, #tpu.memory_space<vmem>>, vector<1x128xf32>
    %36 = vector.broadcast %35 : vector<1x128xf32> to vector<160x128xf32>
    %37 = arith.addf %34, %36 : vector<160x128xf32>
    %cst_55 = arith.constant 0.000000e+00 : f32
    %38 = vector.broadcast %cst_55 : f32 to vector<160x128xf32>
    %39 = arith.maximumf %37, %38 : vector<160x128xf32>
    %40 = arith.truncf %39 : vector<160x128xf32> to vector<160x128xbf16>
    %41 = vector.shape_cast %40 : vector<160x128xbf16> to vector<10x16x128xbf16>
    %c0_56 = arith.constant 0 : index
    %c1_57 = arith.constant 1 : index
    %c0_58 = arith.constant 0 : index
    %42 = vector.load %arg8[%c0_56, %c1_57, %c0_58] : memref<10x18x128xbf16, #tpu.memory_space<vmem>>, vector<10x16x128xbf16>
    tpu.vector_store %arg8[%c0_56, %c1_57, %c0_58], %41 {strides = array<i32>} : memref<10x18x128xbf16, #tpu.memory_space<vmem>>, vector<10x16x128xbf16>,
    %cst_59 = arith.constant 0.000000e+00 : bf16
    %43 = vector.broadcast %cst_59 : bf16 to vector<10x1x128xbf16>
    %c0_60 = arith.constant 0 : index
    %c0_61 = arith.constant 0 : index
    %c0_62 = arith.constant 0 : index
    %44 = vector.load %arg8[%c0_60, %c0_61, %c0_62] : memref<10x18x128xbf16, #tpu.memory_space<vmem>>, vector<10x1x128xbf16>
    tpu.vector_store %arg8[%c0_60, %c0_61, %c0_62], %43 {strides = array<i32>} : memref<10x18x128xbf16, #tpu.memory_space<vmem>>, vector<10x1x128xbf16>,
    %cst_63 = arith.constant 0.000000e+00 : bf16
    %45 = vector.broadcast %cst_63 : bf16 to vector<10x1x128xbf16>
    %c0_64 = arith.constant 0 : index
    %c17 = arith.constant 17 : index
    %c0_65 = arith.constant 0 : index
    %46 = vector.load %arg8[%c0_64, %c17, %c0_65] : memref<10x18x128xbf16, #tpu.memory_space<vmem>>, vector<10x1x128xbf16>
    tpu.vector_store %arg8[%c0_64, %c17, %c0_65], %45 {strides = array<i32>} : memref<10x18x128xbf16, #tpu.memory_space<vmem>>, vector<10x1x128xbf16>,
    %c0_i32 = arith.constant 0 : i32
    %47 = arith.cmpi eq, %arg1, %c0_i32 : i32
    %48 = arith.extui %47 : i1 to i32
    %c0_i32_66 = arith.constant 0 : i32
    %49 = arith.cmpi ne, %48, %c0_i32_66 : i32
    scf.if %49 {
      %cst_119 = arith.constant 0.000000e+00 : bf16
      %93 = vector.broadcast %cst_119 : bf16 to vector<1x18x128xbf16>
      %c0_120 = arith.constant 0 : index
      %c0_121 = arith.constant 0 : index
      %c0_122 = arith.constant 0 : index
      %94 = vector.load %arg8[%c0_120, %c0_121, %c0_122] : memref<10x18x128xbf16, #tpu.memory_space<vmem>>, vector<1x18x128xbf16>
      tpu.vector_store %arg8[%c0_120, %c0_121, %c0_122], %93 {strides = array<i32>} : memref<10x18x128xbf16, #tpu.memory_space<vmem>>, vector<1x18x128xbf16>,
    } else {
    }
    %c1_i32 = arith.constant 1 : i32
    %50 = arith.cmpi eq, %arg1, %c1_i32 : i32
    %51 = arith.extui %50 : i1 to i32
    %c0_i32_67 = arith.constant 0 : i32
    %52 = arith.cmpi ne, %51, %c0_i32_67 : i32
    scf.if %52 {
      %cst_119 = arith.constant 0.000000e+00 : bf16
      %93 = vector.broadcast %cst_119 : bf16 to vector<1x18x128xbf16>
      %c9 = arith.constant 9 : index
      %c0_120 = arith.constant 0 : index
      %c0_121 = arith.constant 0 : index
      %94 = vector.load %arg8[%c9, %c0_120, %c0_121] : memref<10x18x128xbf16, #tpu.memory_space<vmem>>, vector<1x18x128xbf16>
      tpu.vector_store %arg8[%c9, %c0_120, %c0_121], %93 {strides = array<i32>} : memref<10x18x128xbf16, #tpu.memory_space<vmem>>, vector<1x18x128xbf16>,
    } else {
    }
    %c0_68 = arith.constant 0 : index
    %c0_69 = arith.constant 0 : index
    %c0_70 = arith.constant 0 : index
    %53 = vector.load %arg8[%c0_68, %c0_69, %c0_70] : memref<10x18x128xbf16, #tpu.memory_space<vmem>>, vector<8x16x128xbf16>
    %c0_71 = arith.constant 0 : index
    %c1_72 = arith.constant 1 : index
    %c0_73 = arith.constant 0 : index
    %54 = vector.load %arg8[%c0_71, %c1_72, %c0_73] : memref<10x18x128xbf16, #tpu.memory_space<vmem>>, vector<8x16x128xbf16>
    %c0_74 = arith.constant 0 : index
    %c2_75 = arith.constant 2 : index
    %c0_76 = arith.constant 0 : index
    %55 = vector.load %arg8[%c0_74, %c2_75, %c0_76] : memref<10x18x128xbf16, #tpu.memory_space<vmem>>, vector<8x16x128xbf16>
    %56 = tpu.concatenate %53, %54, %55 in 2 : vector<8x16x128xbf16>, vector<8x16x128xbf16>, vector<8x16x128xbf16> -> vector<8x16x384xbf16>
    %57 = vector.shape_cast %56 : vector<8x16x384xbf16> to vector<128x384xbf16>
    %c0_77 = arith.constant 0 : index
    %c0_78 = arith.constant 0 : index
    %c0_79 = arith.constant 0 : index
    %58 = vector.load %arg4[%c0_77, %c0_78, %c0_79] : memref<3x384x128xbf16, #tpu.memory_space<vmem>>, vector<1x384x128xbf16>
    %59 = vector.shape_cast %58 : vector<1x384x128xbf16> to vector<384x128xbf16>
    %cst_80 = arith.constant dense<0.000000e+00> : vector<128x128xf32>
    %60 = tpu.matmul %57, %59, %cst_80 {dimension_numbers = #tpu.dot_dimension_numbers<[1], [0], [0], [1], [0, 0, 1, 1], [], []>} : vector<128x384xbf16>, vector<384x128xbf16>, vector<128x128xf32> -> vector<128x128xf32>
    %c1_81 = arith.constant 1 : index
    %c0_82 = arith.constant 0 : index
    %c0_83 = arith.constant 0 : index
    %61 = vector.load %arg8[%c1_81, %c0_82, %c0_83] : memref<10x18x128xbf16, #tpu.memory_space<vmem>>, vector<8x16x128xbf16>
    %c1_84 = arith.constant 1 : index
    %c1_85 = arith.constant 1 : index
    %c0_86 = arith.constant 0 : index
    %62 = vector.load %arg8[%c1_84, %c1_85, %c0_86] : memref<10x18x128xbf16, #tpu.memory_space<vmem>>, vector<8x16x128xbf16>
    %c1_87 = arith.constant 1 : index
    %c2_88 = arith.constant 2 : index
    %c0_89 = arith.constant 0 : index
    %63 = vector.load %arg8[%c1_87, %c2_88, %c0_89] : memref<10x18x128xbf16, #tpu.memory_space<vmem>>, vector<8x16x128xbf16>
    %64 = tpu.concatenate %61, %62, %63 in 2 : vector<8x16x128xbf16>, vector<8x16x128xbf16>, vector<8x16x128xbf16> -> vector<8x16x384xbf16>
    %65 = vector.shape_cast %64 : vector<8x16x384xbf16> to vector<128x384xbf16>
    %c1_90 = arith.constant 1 : index
    %c0_91 = arith.constant 0 : index
    %c0_92 = arith.constant 0 : index
    %66 = vector.load %arg4[%c1_90, %c0_91, %c0_92] : memref<3x384x128xbf16, #tpu.memory_space<vmem>>, vector<1x384x128xbf16>
    %67 = vector.shape_cast %66 : vector<1x384x128xbf16> to vector<384x128xbf16>
    %cst_93 = arith.constant dense<0.000000e+00> : vector<128x128xf32>
    %68 = tpu.matmul %65, %67, %cst_93 {dimension_numbers = #tpu.dot_dimension_numbers<[1], [0], [0], [1], [0, 0, 1, 1], [], []>} : vector<128x384xbf16>, vector<384x128xbf16>, vector<128x128xf32> -> vector<128x128xf32>
    %69 = arith.addf %60, %68 : vector<128x128xf32>
    %c2_94 = arith.constant 2 : index
    %c0_95 = arith.constant 0 : index
    %c0_96 = arith.constant 0 : index
    %70 = vector.load %arg8[%c2_94, %c0_95, %c0_96] : memref<10x18x128xbf16, #tpu.memory_space<vmem>>, vector<8x16x128xbf16>
    %c2_97 = arith.constant 2 : index
    %c1_98 = arith.constant 1 : index
    %c0_99 = arith.constant 0 : index
    %71 = vector.load %arg8[%c2_97, %c1_98, %c0_99] : memref<10x18x128xbf16, #tpu.memory_space<vmem>>, vector<8x16x128xbf16>
    %c2_100 = arith.constant 2 : index
    %c2_101 = arith.constant 2 : index
    %c0_102 = arith.constant 0 : index
    %72 = vector.load %arg8[%c2_100, %c2_101, %c0_102] : memref<10x18x128xbf16, #tpu.memory_space<vmem>>, vector<8x16x128xbf16>
    %73 = tpu.concatenate %70, %71, %72 in 2 : vector<8x16x128xbf16>, vector<8x16x128xbf16>, vector<8x16x128xbf16> -> vector<8x16x384xbf16>
    %74 = vector.shape_cast %73 : vector<8x16x384xbf16> to vector<128x384xbf16>
    %c2_103 = arith.constant 2 : index
    %c0_104 = arith.constant 0 : index
    %c0_105 = arith.constant 0 : index
    %75 = vector.load %arg4[%c2_103, %c0_104, %c0_105] : memref<3x384x128xbf16, #tpu.memory_space<vmem>>, vector<1x384x128xbf16>
    %76 = vector.shape_cast %75 : vector<1x384x128xbf16> to vector<384x128xbf16>
    %cst_106 = arith.constant dense<0.000000e+00> : vector<128x128xf32>
    %77 = tpu.matmul %74, %76, %cst_106 {dimension_numbers = #tpu.dot_dimension_numbers<[1], [0], [0], [1], [0, 0, 1, 1], [], []>} : vector<128x384xbf16>, vector<384x128xbf16>, vector<128x128xf32> -> vector<128x128xf32>
    %78 = arith.addf %69, %77 : vector<128x128xf32>
    %c0_107 = arith.constant 0 : index
    %c0_108 = arith.constant 0 : index
    %79 = vector.load %arg6[%c0_107, %c0_108] : memref<1x128xf32, #tpu.memory_space<vmem>>, vector<1x128xf32>
    %80 = vector.broadcast %79 : vector<1x128xf32> to vector<128x128xf32>
    %81 = arith.addf %78, %80 : vector<128x128xf32>
    %c0_109 = arith.constant 0 : index
    %c0_110 = arith.constant 0 : index
    %c2_111 = arith.constant 2 : index
    %c1_112 = arith.constant 1 : index
    %c0_113 = arith.constant 0 : index
    %82 = vector.load %arg2[%c0_109, %c0_110, %c2_111, %c1_112, %c0_113] : memref<1x1x12x18x128xbf16, #tpu.memory_space<vmem>>, vector<1x1x8x16x128xbf16>
    %83 = vector.shape_cast %82 : vector<1x1x8x16x128xbf16> to vector<8x16x128xbf16>
    %84 = vector.shape_cast %83 : vector<8x16x128xbf16> to vector<128x128xbf16>
    %85 = arith.extf %84 : vector<128x128xbf16> to vector<128x128xf32>
    %86 = arith.addf %81, %85 : vector<128x128xf32>
    %cst_114 = arith.constant 0.000000e+00 : f32
    %87 = vector.broadcast %cst_114 : f32 to vector<128x128xf32>
    %88 = arith.maximumf %86, %87 : vector<128x128xf32>
    %89 = vector.shape_cast %88 : vector<128x128xf32> to vector<8x16x128xf32>
    %c0_115 = arith.constant 0 : index
    %c0_116 = arith.constant 0 : index
    %c0_117 = arith.constant 0 : index
    %c0_118 = arith.constant 0 : index
    %90 = vector.load %arg7[%c0_115, %c0_116, %c0_117, %c0_118] : memref<1x8x16x128xf32, #tpu.memory_space<vmem>>, vector<1x8x16x128xf32>
    %91 = vector.shape_cast %90 : vector<1x8x16x128xf32> to vector<8x16x128xf32>
    %92 = vector.shape_cast %89 : vector<8x16x128xf32> to vector<1x8x16x128xf32>
    tpu.vector_store %arg7[%c0_115, %c0_116, %c0_117, %c0_118], %92 {strides = array<i32>} : memref<1x8x16x128xf32, #tpu.memory_space<vmem>>, vector<1x8x16x128xf32>,
    return
  }
  func.func @transform_0(%arg0: i32, %arg1: i32) -> (i32, i32, i32, i32, i32) {
    %c0_i32 = arith.constant 0 : i32
    %c0_i32_0 = arith.constant 0 : i32
    %c0_i32_1 = arith.constant 0 : i32
    %c0_i32_2 = arith.constant 0 : i32
    return %arg0, %arg1, %c0_i32, %c0_i32_0, %c0_i32_1 : i32, i32, i32, i32, i32
  }
  func.func @transform_1(%arg0: i32, %arg1: i32) -> (i32, i32, i32) {
    %c0_i32 = arith.constant 0 : i32
    %c0_i32_0 = arith.constant 0 : i32
    %c0_i32_1 = arith.constant 0 : i32
    %c0_i32_2 = arith.constant 0 : i32
    return %c0_i32, %c0_i32_0, %c0_i32_1 : i32, i32, i32
  }
  func.func @transform_2(%arg0: i32, %arg1: i32) -> (i32, i32, i32) {
    %c0_i32 = arith.constant 0 : i32
    %c0_i32_0 = arith.constant 0 : i32
    %c0_i32_1 = arith.constant 0 : i32
    %c0_i32_2 = arith.constant 0 : i32
    return %c0_i32, %c0_i32_0, %c0_i32_1 : i32, i32, i32
  }
  func.func @transform_3(%arg0: i32, %arg1: i32) -> (i32, i32) {
    %c0_i32 = arith.constant 0 : i32
    %c0_i32_0 = arith.constant 0 : i32
    %c0_i32_1 = arith.constant 0 : i32
    return %c0_i32, %c0_i32_0 : i32, i32
  }
  func.func @transform_4(%arg0: i32, %arg1: i32) -> (i32, i32) {
    %c0_i32 = arith.constant 0 : i32
    %c0_i32_0 = arith.constant 0 : i32
    %c0_i32_1 = arith.constant 0 : i32
    return %c0_i32, %c0_i32_0 : i32, i32
  }
  func.func @transform_5(%arg0: i32, %arg1: i32) -> (i32, i32, i32, i32) {
    %c0_i32 = arith.constant 0 : i32
    %c0_i32_0 = arith.constant 0 : i32
    %c0_i32_1 = arith.constant 0 : i32
    return %arg0, %arg1, %c0_i32, %c0_i32_0 : i32, i32, i32, i32
  }
}

</mosaic_0001>

<bundles_post_ra>
// kernel: basic_block_pallas.1
= control target key start
LH: loop header
LB: loop body
LE: loop exit
PB: predicated region body
PF: predicated region fallthrough
CT: control target
= control target key end

     0   :  { %s7193_s18 = smov 0   ;;  %s7195_s19 = smov 0   ;;  %s9074_s0 = inlined_call_operand.vmem [shape: bf16[2,2,12,18,128], index: 0, kind: input, shape index: {}]   ;;  %s9075_s1 = inlined_call_operand.vmem [shape: bf16[3,384,128], index: 1, kind: input, shape index: {}]   ;;  %s9076_s2 = inlined_call_operand.vmem [shape: bf16[3,384,128], index: 2, kind: input, shape index: {}]   ;;  %s9077_s3 = inlined_call_operand.vmem [shape: f32[1,128], index: 3, kind: input, shape index: {}]   ;;  %s9078_s4 = inlined_call_operand.vmem [shape: f32[1,128], index: 4, kind: input, shape index: {}]   ;;  %s9079_s5 = inlined_call_operand.vmem [shape: f32[2,16,16,128], index: 5, kind: output, shape index: {}]  }
   0x1   :  { %s7197_s20 = smov 0   ;;  %s7199_s21 = smov 0  }
   0x2   :  { %s7201_s22 = smov 0  }
   0x3 LB: > { %s24_s23 = sadd.s32 1, %s7151_s20  ;;  %s27_s24 = sadd.s32 1, %s7155_s21  ;;  %s7159_s22 = sphi %s7201_s22, %s15_s22   ;;  %s7155_s21 = sphi %s7199_s21, %s9121_s21   ;;  %s7151_s20 = sphi %s7197_s20, %s9120_s20   ;;  %s7147_s19 = sphi %s7195_s19, %s9119_s19   ;;  %s7143_s18 = sphi %s7193_s18, %s9118_s18  }
   0x4   : > { %p25_p0 = scmp.ge.s32.totalorder %s24_s23, 2  ;;  %p5391_p1 = scmp.ge.s32.totalorder %s7159_s22, 1 }
   0x5   : > { %p207_p2 = scmp.lt.s32.totalorder %s7159_s22, 5 }
   0x6   : > { %s9123_s23 = smov (%p25_p0, %s24_s23), 0  ;;  %s9125_s24 = smov (!%p25_p0, %s27_s24), %s7155_s21 }
   0x7   : > { %p208_p3 = pnand %p5391_p1, %p207_p2  ;;  %p29_p4 = scmp.ge.s32.totalorder %s9125_s24, 2 }
   0x9   : > { %s9127_s24 = smov (%p29_p4, %s9125_s24), 0  ;;  %211 = sbr.rel (%p208_p3) target bundleno = 878 (0x36e), region = 40 }
   0xe   : > { %v6815_v0 = vld [vmem:[%s9075_s1 + $0x138] sm:$0xff]   ;;  %p244_p5 = scmp.lt.s32.totalorder %s7147_s19, 1  ;;  %p246_p6 = scmp.lt.s32.totalorder %s7143_s18, 1  ;;  %v6818_v3 = vld [vmem:[%s9075_s1 + $0x130] sm:$0xff]   ;;  %v6821_v6 = vld [vmem:[%s9075_s1 + $0x128] sm:$0xff]   ;;  %vm556_vm0 = vcmask 1046528  }
   0xf   : > { %v6816_v1 = vld [vmem:[%s9075_s1 + $0x178] sm:$0xff]   ;;  %6045 = vmatprep.subr.bf16.mxu0 %v6815_v0  ;;  %v6819_v4 = vld [vmem:[%s9075_s1 + $0x170] sm:$0xff]   ;;  %s5393_s15 = sshll.u32 %s7143_s18, 3  ;;  %v6822_v7 = vld [vmem:[%s9075_s1 + $0x168] sm:$0xff]   ;;  %vm395_vm1 = vsmask.f32 7424 }
  0x10   : > { %v6817_v2 = vld [vmem:[%s9075_s1 + $0xf8] sm:$0xff]   ;;  %6567 = vmatprep.subr.bf16.mxu1 %v6816_v1  ;;  %s9129_s19 = smov (!%p244_p5, %s7147_s19), 1  ;;  %v6820_v5 = vld [vmem:[%s9075_s1 + $0xf0] sm:$0xff]   ;;  %p256_p7 = scmp.lt.s32.totalorder %s5393_s15, 15  ;;  %v6823_v8 = vld [vmem:[%s9075_s1 + $0xe8] sm:$0xff]   ;;  %vm2845_vm2 = vcmask 1043456  }
  0x11   : > { %6046 = vmatpush3.bf16.msra.mxu0 %v6817_v2  ;;  %6568 = vmatpush3.bf16.msra.mxu1 %v6816_v1  ;;  %s7247_s12 = scalar_select %p246_p6, %s7143_s18, 1  ;;  %v6824_v9 = vld [vmem:[%s9075_s1 + $0x120] sm:$0xff]   ;;  %v6827_v12 = vld [vmem:[%s9075_s1 + $0x118] sm:$0xff]   ;;  %v6830_v15 = vld [vmem:[%s9075_s1 + $0x110] sm:$0xff]   ;;  %vm2846_vm3 = vsmask.f32 7938 }
  0x12   : > { %6047 = vmatprep.subr.bf16.mxu0 %v6818_v3  ;;  %6569 = vmatprep.subr.bf16.mxu1 %v6819_v4  ;;  %s6772_s27 = smul.u32 72, %s9129_s19  ;;  %s5395_s30 = sshll.u32 %s9129_s19, 5  ;;  %v6825_v10 = vld [vmem:[%s9075_s1 + $0x160] sm:$0xff]   ;;  %v6828_v13 = vld [vmem:[%s9075_s1 + $0x158] sm:$0xff]   ;;  %v6831_v16 = vld [vmem:[%s9075_s1 + $0x150] sm:$0xff]   ;;  %vm2852_vm6 = vcmask 1040384  }
  0x13   : > { %s9131_s15 = smov (!%p256_p7, %s5393_s15), 15  ;;  %v6826_v11 = vld [vmem:[%s9075_s1 + $0xe0] sm:$0xff]   ;;  %s6771_s10 = smul.u32 36, %s7247_s12  ;;  %v6829_v14 = vld [vmem:[%s9075_s1 + $0xd8] sm:$0xff]   ;;  %v6832_v17 = vld [vmem:[%s9075_s1 + $0xd0] sm:$0xff]  }
  0x14   : > { %s5394_s14 = sshll.u32 %s9131_s15, 1  ;;  %v6833_v18 = vld [vmem:[%s9075_s1 + $0x108] sm:$0xff]   ;;  %v6836_v21 = vld [vmem:[%s9075_s1 + $0x100] sm:$0xff]   ;;  %v6845_v35 = vld [vmem:[%s9075_s1 + $0xb8] sm:$0xff]   ;;  %vm2642_vm4 = vsmask.f32 256 }
  0x15   : > { %6048 = vmatpush3.bf16.msra.mxu0 %v6820_v5  ;;  %6570 = vmatpush3.bf16.msra.mxu1 %v6819_v4  ;;  %s260_s17 = sadd.s32 %s5395_s30, %s5394_s14  ;;  %s250_s12 = sadd.s32 %s6772_s27, %s6771_s10  ;;  %v6834_v19 = vld [vmem:[%s9075_s1 + $0x148] sm:$0xff]   ;;  %v6837_v24 = vld [vmem:[%s9075_s1 + $0x140] sm:$0xff]   ;;  %v6852_v44 = vld [vmem:[%s9075_s1 + $0x78] sm:$0xff]   ;;  %vm2643_vm7 = vsmask.f32 4368 }
  0x16   : > { %6049 = vmatprep.subr.bf16.mxu0 %v6821_v6  ;;  %6571 = vmatprep.subr.bf16.mxu1 %v6822_v7  ;;  %s5396_s25 = sshll.u32 %s260_s17, 3  ;;  %s5392_s11 = sshll.u32 %s250_s12, 2  ;;  %v6835_v20 = vld [vmem:[%s9075_s1 + $0xc8] sm:$0xff]   ;;  %v6838_v27 = vld [vmem:[%s9075_s1 + $0xc0] sm:$0xff]   ;;  %v6853_v54 = vld [vmem:[%s9075_s1 + $0x38] sm:$0xff]  }
  0x17   : > { %s7283_s7 = scalar_lea.vmem %s9079_s5, %s5396_s25  ;;  %s7303_s26 = scalar_lea.vmem %s9074_s0, %s5392_s11  ;;  %v6854_v62 = vld [vmem:[%s9075_s1 + $0xb0] sm:$0xff]   ;;  %vm8015_vm5 = vmand %vm2845_vm2, %vm2846_vm3 }
  0x18   : > { %v5427_v22 = vld [vmem:[%s7303_s26 + $0xc] sm:$0xf]  ;;  %v5428_v23 = vld [vmem:[%s7303_s26 + $0x10] sm:$0xf]  ;;  %v5429_v29 = vld [vmem:[%s7303_s26 + $0x18] sm:$0xf] }
  0x19   : > { %6050 = vmatpush3.bf16.msra.mxu0 %v6823_v8  ;;  %6572 = vmatpush3.bf16.msra.mxu1 %v6822_v7  ;;  %v5467_v25 = vcombine.low %v5427_v22, %v5428_v23  ;;  %v6840_v26 = vld [vmem:[%s7303_s26 + $0x14] ss:$0 sps:$4 sm:$0x11]   ;;  %v5457_v28 = vld [vmem:[%s7303_s26 + $0xc] sm:$0xe]  ;;  %vm8028_vm8 = vmand %vm2852_vm6, %vm2642_vm4  ;;  %p5756_p8 = scmp.ne.s32.totalorder %s7143_s18, 0 }
  0x1a   : > { %6051 = vmatprep.subr.bf16.mxu0 %v6824_v9  ;;  %6573 = vmatprep.subr.bf16.mxu1 %v6825_v10  ;;  %v5430_v30 = vld [vmem:[%s7303_s26 + $0x1c] sm:$0xf]  ;;  %v784_v33 = vshll.u32 %v6840_v26, 16  ;;  %v5487_v34 = vcombine.low %v5457_v28, %v5428_v23  ;;  %v937_v36 = vrot.slane %v6840_v26, 1  ;;  %v5458_v37 = vld [vmem:[%s7303_s26 + $0x18] sm:$0xe]  ;;  %vm8033_vm9 = vmor %vm2642_vm4, %vm2643_vm7 }
  0x1b   : > { %v777_v31 = vshrl.u32 %v5467_v25, 16  ;;  %v779_v32 = vshll.u32 %v5467_v25, 16  ;;  %v7327_v38 = vcombine.low %v5429_v29, %v5430_v30  ;;  %v6843_v39 = vld [vmem:[%s7303_s26 + $0x20] ss:$0 sps:$4 sm:$0x11]   ;;  %v5488_v43 = vcombine.low %v5458_v37, %v5430_v30  ;;  %v6855_v63 = vld [vmem:[%s9075_s1 + $0x70] sm:$0xff]   ;;  %vm8056_vm10 = vmand %vm2852_vm6, %vm2846_vm3 }
  0x1c   : > { %v786_v41 = vrot.slane %v784_v33, 1  ;;  %v936_v42 = vrot.slane %v5487_v34, 1  ;;  %v940_v45 = vrot.slane %v6843_v39, 1  ;;  %v796_v48 = vshll.u32 %v6843_v39, 16  ;;  %v5431_v52 = vld [vmem:[%s7303_s26 + $0x24] sm:$0xf] }
  0x1d   : > { %6052 = vmatpush3.bf16.msra.mxu0 %v6826_v11  ;;  %6574 = vmatpush3.bf16.msra.mxu1 %v6825_v10  ;;  %v781_v40 = vrot.slane %v779_v32, 1  ;;  %v789_v46 = vshrl.u32 %v7327_v38, 16  ;;  %v791_v47 = vshll.u32 %v7327_v38, 16  ;;  %v939_v51 = vrot.slane %v5488_v43, 1  ;;  %v5432_v53 = vld [vmem:[%s7303_s26 + $0x28] sm:$0xf] }
  0x1e   : > { %6053 = vmatprep.subr.bf16.mxu0 %v6827_v12  ;;  %6575 = vmatprep.subr.bf16.mxu1 %v6828_v13  ;;  %v938_v50 = vsel %vm556_vm0, %v936_v42, %v937_v36  ;;  %v798_v56 = vrot.slane %v796_v48, 1  ;;  %v5459_v57 = vld [vmem:[%s7303_s26 + $0x24] sm:$0xe]  ;;  %v6847_v60 = vld [vmem:[%s7303_s26 + $0x2c] ss:$0 sps:$4 sm:$0x11]   ;;  %v5469_v3 = vcombine.low %v5431_v52, %v5432_v53 }
  0x1f   : > { %v782_v49 = vor.u32 %v781_v40, %v777_v31  ;;  %v793_v55 = vrot.slane %v791_v47, 1  ;;  %6583 = vmatprep.mubr.bf16.mxu1 %v938_v50  ;;  %v941_v59 = vsel %vm556_vm0, %v939_v51, %v940_v45  ;;  %v5489_v61 = vcombine.low %v5459_v57, %v5432_v53  ;;  %v5434_v1 = vld [vmem:[%s7303_s26 + $0x34] sm:$0xf]  ;;  %v5460_v2 = vld [vmem:[%s7303_s26 + $0x30] sm:$0xe]  ;;  %v6865_v33 = vld [vmem:[%s9075_s1 + $0x60] sm:$0xff]  }
  0x20   : > { %v943_v5 = vrot.slane %v6847_v60, 1  ;;  %v6850_v6 = vld [vmem:[%s7303_s26 + $0x38] ss:$0 sps:$4 sm:$0x11]   ;;  %v5490_v7 = vcombine.low %v5460_v2, %v5434_v1  ;;  %v6856_v8 = vld [vmem:[%s9075_s1 + $0x30] sm:$0xff]   ;;  %v6866_v40 = vld [vmem:[%s9075_s1 + $0xa8] sm:$0xff]  }
  0x21   : > { %6054 = vmatpush3.bf16.msra.mxu0 %v6829_v14  ;;  %6576 = vmatpush3.bf16.msra.mxu1 %v6828_v13  ;;  %v787_v58 = vsel %vm395_vm1, %v782_v49, %v786_v41  ;;  %v794_v0 = vor.u32 %v793_v55, %v789_v46  ;;  %v942_v4 = vrot.slane %v5489_v61, 1  ;;  %v946_v12 = vrot.slane %v6850_v6, 1  ;;  %v5433_v22 = vld [vmem:[%s7303_s26 + $0x30] sm:$0xf]  ;;  %v5462_v28 = vld [vmem:[%s7303_s26 + $0x48] sm:$0xe] }
  0x22   : > { %6055 = vmatprep.subr.bf16.mxu0 %v6830_v15  ;;  %6577 = vmatprep.subr.bf16.mxu1 %v6831_v16  ;;  %v945_v11 = vrot.slane %v5490_v7, 1  ;;  %v801_v13 = vshrl.u32 %v5469_v3, 16  ;;  %v803_v14 = vshll.u32 %v5469_v3, 16  ;;  %v7379_v31 = vld [vmem:[%s7303_s26 + $0x50] ss:$0 sps:$4 sm:$0x11]   ;;  %v5470_v34 = vcombine.low %v5433_v22, %v5434_v1 }
  0x23   : > { %1201 = vmatprep.mubr.bf16.mxu0 %v787_v58  ;;  %v799_v9 = vsel %vm395_vm1, %v794_v0, %v798_v56  ;;  %v944_v10 = vsel %vm556_vm0, %v942_v4, %v943_v5  ;;  %v5435_v41 = vld [vmem:[%s7303_s26 + $0x3c] sm:$0xf]  ;;  %v6867_v42 = vld [vmem:[%s9075_s1 + $0x20] sm:$0xff]   ;;  %v820_v45 = vshll.u32 %v6850_v6, 16  ;;  %v7400_v47 = vld [vmem:[%s7303_s26 + $0x58] sm:$0xf] }
  0x24   : > { %v947_v15 = vsel %vm556_vm0, %v945_v11, %v946_v12  ;;  %v813_v43 = vshrl.u32 %v5470_v34, 16  ;;  %v6874_v46 = vld [vmem:[%s9075_s1 + $0x58] sm:$0xff]   ;;  %v5463_v48 = vld [vmem:[%s7303_s26 + $0x54] sm:$0xe]  ;;  %v7408_v53 = vld [vmem:[%s7303_s26 + $0x64] sm:$0xf] }
  0x25   : > { %6056 = vmatpush3.bf16.msra.mxu0 %v6832_v17  ;;  %6578 = vmatpush3.bf16.msra.mxu1 %v6831_v16  ;;  %v808_v16 = vshll.u32 %v6847_v60, 16  ;;  %v5436_v17 = vld [vmem:[%s7303_s26 + $0x40] sm:$0xf]  ;;  %v822_v50 = vrot.slane %v820_v45, 1  ;;  %v5493_v52 = vcombine.low %v5463_v48, %v7400_v47  ;;  %v5437_v11 = vld [vmem:[%s7303_s26 + $0x48] sm:$0xf] }
  0x26   : > { %6057 = vmatprep.subr.bf16.mxu0 %v6833_v18  ;;  %6579 = vmatprep.subr.bf16.mxu1 %v6834_v19  ;;  %v6863_v18 = vld [vmem:[%s9075_s1 + $0x68] sm:$0xff]   ;;  %v7404_v51 = vld [vmem:[%s7303_s26 + $0x5c] ss:$0 sps:$4 sm:$0x11]   ;;  %v5464_v58 = vld [vmem:[%s7303_s26 + $0x60] sm:$0xe] }
  0x27   : > { %v810_v23 = vrot.slane %v808_v16, 1  ;;  %v954_v56 = vrot.slane %v5493_v52, 1  ;;  %v955_v57 = vrot.slane %v7404_v51, 1  ;;  %v7416_v60 = vld [vmem:[%s7303_s26 + $0x68] ss:$0 sps:$4 sm:$0x11]   ;;  %v5494_v61 = vcombine.low %v5464_v58, %v7408_v53 }
  0x28   : > { %v958_v2 = vrot.slane %v7416_v60, 1  ;;  %v6878_v6 = vld [vmem:[%s9075_s1 + $0xa0] sm:$0xff]   ;;  %v6891_v45 = vld [vmem:[%s9075_s1 + $0x98] sm:$0xff]   ;;  %v267_v52 = vld [vmem:[%s7303_s26 + $0xc] sm:$0xf] }
  0x29   : > { %6058 = vmatpush3.bf16.msra.mxu0 %v6835_v20  ;;  %6580 = vmatpush3.bf16.msra.mxu1 %v6834_v19  ;;  %v805_v19 = vrot.slane %v803_v14, 1  ;;  %v5461_v20 = vld [vmem:[%s7303_s26 + $0x3c] sm:$0xe]  ;;  %v956_v0 = vsel %vm556_vm0, %v954_v56, %v955_v57  ;;  %v957_v1 = vrot.slane %v5494_v61, 1  ;;  %v5465_v14 = vld [vmem:[%s7303_s26 + $0x6c] sm:$0xe] }
  0x2a   : > { %6059 = vmatprep.subr.bf16.mxu0 %v6836_v21  ;;  %6581 = vmatprep.subr.bf16.mxu1 %v6837_v24  ;;  %v6864_v21 = vld [vmem:[%s9075_s1 + $0x28] sm:$0xff]   ;;  %v856_v57 = vshll.u32 %v7404_v51, 16  ;;  %v7495_v58 = vld [vmem:[%s7303_s26 + $0x10] sm:$0xf] }
  0x2b   : > { %v806_v26 = vor.u32 %v805_v19, %v801_v13  ;;  %v959_v5 = vsel %vm556_vm0, %v957_v1, %v958_v2  ;;  %v5439_v19 = vld [vmem:[%s7303_s26 + $0x54] sm:$0xf] }
  0x2c   : > { %v858_v2 = vrot.slane %v856_v57, 1 }
  0x2d   : > { %6060 = vmatpush3.bf16.msra.mxu0 %v6838_v27  ;;  %6582 = vmatpush3.bf16.msra.mxu1 %v6837_v24  ;;  %v7370_v24 = vld [vmem:[%s7303_s26 + $0x44] ss:$0 sps:$4 sm:$0x11]   ;;  %v7374_v27 = vld [vmem:[%s7303_s26 + $0x4c] sm:$0xf] }
  0x2e   : > { %6603 = vmatprep.subr.bf16.mxu0 %v6845_v35  ;;  %6139 = vmatprep.subr.bf16.mxu1 %v6852_v44  ;;  %v949_v30 = vrot.slane %v7370_v24, 1  ;;  %v5492_v32 = vcombine.low %v5462_v28, %v7374_v27  ;;  %v815_v44 = vshll.u32 %v5470_v34, 16  ;;  %v5472_v22 = vcombine.low %v5437_v11, %v7374_v27  ;;  %v6887_v28 = vld [vmem:[%s9075_s1 + $0x40] sm:$0xff]  }
  0x30   : > { %1202 = vmatmul.mubr.bf16.vlgmr.msra.gmra.mxu0 %v5467_v25  ;;  %6584 = vmatmul.mubr.bf16.vlgmr.msra.gmra.mxu1 %v941_v59  ;;  %v5491_v25 = vcombine.low %v5461_v20, %v5436_v17  ;;  %v951_v37 = vrot.slane %v5492_v32, 1  ;;  %v817_v49 = vrot.slane %v815_v44, 1  ;;  %v5471_v59 = vcombine.low %v5435_v41, %v5436_v17  ;;  %v7446_v17 = vld [vmem:[%s7303_s26 + $0x7c] sm:$0xf]  ;;  %v7476_v41 = vld [vmem:[%s7303_s26 + $0x4] sm:$0xf] }
  0x31   : > { %6604 = vmatpush3.bf16.msra.mxu0 %v6845_v35  ;;  %6140 = vmatpush3.bf16.msra.mxu1 %v6853_v54  ;;  %v811_v35 = vsel %vm395_vm1, %v806_v26, %v810_v23  ;;  %v6875_v54 = vld [vmem:[%s9075_s1 + $0x18] sm:$0xff]   ;;  %v7481_v44 = vld [vmem:[%s7303_s26 + $0x8] ss:$0 sps:$4 sm:$0x11]  }
  0x32   : > { %1209 = vmatprep.mubr.bf16.mxu0 %v799_v9  ;;  %6605 = vmatprep.subr.bf16.mxu0 %v6854_v62  ;;  %v948_v29 = vrot.slane %v5491_v25, 1  ;;  %v818_v55 = vor.u32 %v817_v49, %v813_v43  ;;  %v825_v4 = vshrl.u32 %v5471_v59, 16  ;;  %v827_v7 = vshll.u32 %v5471_v59, 16  ;;  %v6885_v9 = vld [vmem:[%s9075_s1 + $0x48] sm:$0xff]  }
  0x33   : > { %6587 = vmatprep.mubr.bf16.mxu1 %v944_v10  ;;  %6141 = vmatprep.subr.bf16.mxu1 %v6855_v63  ;;  %v7437_v10 = vld [vmem:[%s7303_s26 + $0x70] sm:$0xf]  ;;  %v7456_v25 = vld [vmem:[%s7303_s26 + $0x80] ss:$0 sps:$4 sm:$0x11]   ;;  %v404_v49 = vshll.u32 %v7481_v44, 16 }
  0x34   : > { %v950_v36 = vsel %vm556_vm0, %v948_v29, %v949_v30  ;;  %v823_v63 = vsel %vm395_vm1, %v818_v55, %v822_v50  ;;  %v829_v12 = vrot.slane %v827_v7, 1  ;;  %v5495_v16 = vcombine.low %v5465_v14, %v7437_v10  ;;  %v269_v7 = vld [vmem:[%s7303_s26 + $0x18] sm:$0xf]  ;;  %v7522_v14 = vld [vmem:[%s7303_s26 + $0x1c] sm:$0xf] }
  0x35   : > { %6606 = vmatpush3.bf16.msra.mxu0 %v6854_v62  ;;  %6142 = vmatpush3.bf16.msra.mxu1 %v6856_v8  ;;  %v6876_v62 = vld [vmem:[%s9075_s1 + $0x50] sm:$0xff]   ;;  %v832_v8 = vshll.u32 %v7370_v24, 16  ;;  %v964_v32 = vrot.slane %v7456_v25, 1  ;;  %v406_v61 = vrot.slane %v404_v49, 1 }
  0x36   : > { %6143 = vmatprep.subr.bf16.mxu1 %v6863_v18  ;;  %6607 = vmatprep.subr.bf16.mxu0 %v6866_v40  ;;  %v6886_v18 = vld [vmem:[%s9075_s1 + $0x8] sm:$0xff]   ;;  %v830_v20 = vor.u32 %v829_v12, %v825_v4  ;;  %v960_v23 = vrot.slane %v5495_v16, 1  ;;  %v273_v49 = vld [vmem:[%s7303_s26 + $0x30] sm:$0xf] }
  0x37   : > { %v834_v13 = vrot.slane %v832_v8, 1  ;;  %v6897_v8 = vld [vmem:[%s9075_s1 + $0x88] sm:$0xff]  }
  0x38   : > { %1210 = vmatmul.mubr.bf16.gmra.mxu0 %v7327_v38  ;;  %6588 = vmatmul.mubr.bf16.gmra.mxu1 %v947_v15  ;;  %v952_v38 = vrot.slane %v7379_v31, 1  ;;  %v7442_v15 = vld [vmem:[%s7303_s26 + $0x74] ss:$0 sps:$4 sm:$0x11]  }
  0x39   : > { %6144 = vmatpush3.bf16.msra.mxu1 %v6864_v21  ;;  %1217 = vmatprep.mubr.bf16.mxu0 %v811_v35  ;;  %v5466_v21 = vld [vmem:[%s7303_s26 + $0x78] sm:$0xe]  ;;  %v961_v24 = vrot.slane %v7442_v15, 1  ;;  %v835_v29 = vsel %vm395_vm1, %v830_v20, %v834_v13  ;;  %v837_v35 = vshrl.u32 %v5472_v22, 16  ;;  %v868_v13 = vshll.u32 %v7416_v60, 16  ;;  %v6900_v60 = vld [vmem:[%s9075_s1 + $0x80] sm:$0xff]  }
  0x3a   : > { %6145 = vmatprep.subr.bf16.mxu1 %v6865_v33  ;;  %6591 = vmatprep.mubr.bf16.mxu1 %v950_v36  ;;  %v953_v39 = vsel %vm556_vm0, %v951_v37, %v952_v38  ;;  %v5496_v26 = vcombine.low %v5466_v21, %v7446_v17  ;;  %v5441_v33 = vld [vmem:[%s7303_s26 + $0x60] sm:$0xf]  ;;  %v7470_v36 = vcombine.low %v5439_v19, %v7400_v47  ;;  %v839_v38 = vshll.u32 %v5472_v22, 16 }
  0x3b   : > { %6608 = vmatpush3.bf16.msra.mxu0 %v6866_v40  ;;  %v962_v30 = vsel %vm556_vm0, %v960_v23, %v961_v24  ;;  %v265_v40 = vld [vmem:[%s7303_s26] sm:$0xf]  ;;  %v7526_v20 = vcombine.low %v269_v7, %v7522_v14  ;;  %v870_v23 = vrot.slane %v868_v13, 1 }
  0x3c   : > { %6609 = vmatprep.subr.bf16.mxu0 %v6878_v6  ;;  %v963_v27 = vrot.slane %v5496_v26, 1  ;;  %v5397_v43 = vcombine.low %v265_v40, %v7476_v41  ;;  %v849_v50 = vshrl.u32 %v7470_v36, 16  ;;  %v851_v56 = vshll.u32 %v7470_v36, 16  ;;  %v7530_v24 = vld [vmem:[%s7303_s26 + $0x20] ss:$0 sps:$4 sm:$0x11]  }
  0x3d   : > { %6146 = vmatpush3.bf16.msra.mxu1 %v6867_v42  ;;  %v5443_v42 = vld [vmem:[%s7303_s26 + $0x6c] sm:$0xf] }
  0x3e   : > { %6147 = vmatprep.subr.bf16.mxu1 %v6874_v46  ;;  %v965_v37 = vsel %vm556_vm0, %v963_v27, %v964_v32  ;;  %v841_v46 = vrot.slane %v839_v38, 1  ;;  %v399_v48 = vshll.u32 %v5397_v43, 16  ;;  %v853_v1 = vrot.slane %v851_v56, 1 }
  0x3f   : > { %6610 = vmatpush3.bf16.msra.mxu0 %v6878_v6  ;;  %v428_v32 = vshll.u32 %v7530_v24, 16 }
  0x40   : > { %1218 = vmatmul.mubr.bf16.gmra.mxu0 %v5469_v3  ;;  %6592 = vmatmul.mubr.bf16.gmra.mxu1 %v953_v39  ;;  %v6877_v3 = vld [vmem:[%s9075_s1 + $0x10] sm:$0xff]   ;;  %v844_v39 = vshll.u32 %v7379_v31, 16  ;;  %v397_v31 = vshrl.u32 %v5397_v43, 16  ;;  %v842_v55 = vor.u32 %v841_v46, %v837_v35  ;;  %v7542_v35 = vld [vmem:[%s7303_s26 + $0x28] sm:$0xf] }
  0x41   : > { %1225 = vmatprep.mubr.bf16.mxu0 %v823_v63  ;;  %6595 = vmatprep.mubr.bf16.mxu1 %v956_v0  ;;  %v7501_v63 = vld [vmem:[%s7303_s26 + $0x14] ss:$0 sps:$4 sm:$0x11]   ;;  %v7507_v0 = vcombine.low %v5443_v42, %v7437_v10  ;;  %v854_v10 = vor.u32 %v853_v1, %v849_v50  ;;  %v6907_v42 = vld [vmem:[%s9075_s1 + $0x1f8] sm:$0xff]  }
  0x42   : > { %6148 = vmatpush3.bf16.msra.mxu1 %v6875_v54  ;;  %v846_v47 = vrot.slane %v844_v39, 1  ;;  %6611 = vmatprep.subr.bf16.mxu0 %v6891_v45  ;;  %v7490_v54 = vcombine.low %v5441_v33, %v7408_v53  ;;  %v6894_v53 = vld [vmem:[%s9075_s1 + $0x90] sm:$0xff]   ;;  %v416_v6 = vshll.u32 %v7501_v63, 16  ;;  %v6909_v1 = vld [vmem:[%s9075_s1 + $0x238] sm:$0xff]  }
  0x43   : > { %6149 = vmatprep.subr.bf16.mxu1 %v6876_v62  ;;  %6612 = vmatpush3.bf16.msra.mxu0 %v6891_v45  ;;  %v7498_v62 = vcombine.low %v267_v52, %v7495_v58  ;;  %v859_v21 = vsel %vm395_vm1, %v854_v10, %v858_v2  ;;  %v873_v33 = vshrl.u32 %v7507_v0, 16  ;;  %v430_v45 = vrot.slane %v428_v32, 1 }
  0x44   : > { %v847_v51 = vsel %vm395_vm1, %v842_v55, %v846_v47  ;;  %6613 = vmatprep.subr.bf16.mxu0 %v6894_v53  ;;  %v861_v11 = vshrl.u32 %v7490_v54, 16  ;;  %v863_v12 = vshll.u32 %v7490_v54, 16  ;;  %v418_v19 = vrot.slane %v416_v6, 1  ;;  %v7557_v47 = vld [vmem:[%s7303_s26 + $0x2c] ss:$0 sps:$4 sm:$0x11]  }
  0x45   : > { %v409_v4 = vshrl.u32 %v7498_v62, 16  ;;  %v440_v52 = vshll.u32 %v7557_v47, 16  ;;  %v7565_v55 = vld [vmem:[%s7303_s26 + $0x34] sm:$0xf] }
  0x46   : > { %6150 = vmatpush3.bf16.msra.mxu1 %v6877_v3 }
  0x47   : > { %6151 = vmatprep.subr.bf16.mxu1 %v6885_v9  ;;  %v5445_v9 = vld [vmem:[%s7303_s26 + $0x78] sm:$0xf]  ;;  %6614 = vmatpush3.bf16.msra.mxu0 %v6894_v53 }
  0x48   : > { %1226 = vmatmul.mubr.bf16.gmra.mxu0 %v5470_v34  ;;  %6596 = vmatmul.mubr.bf16.gmra.mxu1 %v959_v5  ;;  %v6888_v34 = vld [vmem:[%s9075_s1] sm:$0xff]   ;;  %v411_v5 = vshll.u32 %v7498_v62, 16 }
  0x49   : > { %1233 = vmatprep.mubr.bf16.mxu0 %v835_v29  ;;  %6599 = vmatprep.mubr.bf16.mxu1 %v962_v30  ;;  %v423_v29 = vshll.u32 %v7526_v20, 16  ;;  %v875_v30 = vshll.u32 %v7507_v0, 16 }
  0x4a   : > { %6152 = vmatpush3.bf16.msra.mxu1 %v6886_v18  ;;  %v413_v18 = vrot.slane %v411_v5, 1  ;;  %6615 = vmatprep.subr.bf16.mxu0 %v6897_v8  ;;  %v7579_v5 = vld [vmem:[%s7303_s26 + $0x38] ss:$0 sps:$4 sm:$0x11]  }
  0x4b   : > { %6153 = vmatprep.subr.bf16.mxu1 %v6887_v28  ;;  %v421_v28 = vshrl.u32 %v7526_v20, 16  ;;  %v425_v39 = vrot.slane %v423_v29, 1  ;;  %6616 = vmatpush3.bf16.msra.mxu0 %v6897_v8  ;;  %v877_v46 = vrot.slane %v875_v30, 1  ;;  %v7585_v8 = vld [vmem:[%s7303_s26 + $0x40] sm:$0xf]  ;;  %v6918_v30 = vld [vmem:[%s9075_s1 + $0x230] sm:$0xff]  }
  0x4c   : > { %v414_v26 = vor.u32 %v413_v18, %v409_v4  ;;  %6617 = vmatprep.subr.bf16.mxu0 %v6900_v60  ;;  %v295_v18 = vld [vmem:[%s7303_s26] sm:$0xe]  ;;  %v296_v29 = vld [vmem:[%s7303_s26 + $0xc] sm:$0xe] }
  0x4e   : > { %6154 = vmatpush3.bf16.msra.mxu1 %v6888_v34  ;;  %v271_v34 = vld [vmem:[%s7303_s26 + $0x24] sm:$0xf]  ;;  %v419_v38 = vsel %vm395_vm1, %v414_v26, %v418_v19  ;;  %v277_v26 = vld [vmem:[%s7303_s26 + $0x48] sm:$0xf] }
  0x4f   : > { %v7549_v40 = vcombine.low %v271_v34, %v7542_v35  ;;  %6618 = vmatpush3.bf16.msra.mxu0 %v6900_v60  ;;  %6639 = vmatprep.subr.bf16.mxu1 %v6909_v1  ;;  %v5417_v60 = vcombine.low %v295_v18, %v7476_v41  ;;  %v570_v18 = vrot.slane %v7579_v5, 1 }
  0x50   : > { %1234 = vmatmul.mubr.bf16.gmra.mxu0 %v5471_v59  ;;  %6600 = vmatmul.mubr.bf16.gmra.mxu1 %v965_v37  ;;  %v401_v59 = vrot.slane %v399_v48, 1  ;;  %v7545_v37 = vcombine.low %v5445_v9, %v7446_v17  ;;  %v880_v17 = vshll.u32 %v7442_v15, 16 }
  0x51   : > { %1241 = vmatprep.mubr.bf16.mxu0 %v847_v51  ;;  %v435_v48 = vshll.u32 %v7549_v40, 16  ;;  %v433_v50 = vshrl.u32 %v7549_v40, 16  ;;  %6233 = vmatprep.subr.bf16.mxu0 %v6907_v42  ;;  %v892_v51 = vshll.u32 %v7456_v25, 16  ;;  %v557_v34 = vrot.slane %v5417_v60, 1  ;;  %v297_v42 = vld [vmem:[%s7303_s26 + $0x18] sm:$0xe] }
  0x52   : > { %v402_v3 = vor.u32 %v401_v59, %v397_v31  ;;  %v426_v31 = vor.u32 %v425_v39, %v421_v28  ;;  %v887_v57 = vshll.u32 %v7545_v37, 16  ;;  %v7570_v59 = vcombine.low %v273_v49, %v7565_v55  ;;  %v7604_v28 = vld [vmem:[%s7303_s26 + $0x4c] sm:$0xf]  ;;  %v7620_v39 = vld [vmem:[%s7303_s26 + $0x50] ss:$0 sps:$4 sm:$0x11]  }
  0x53   : > { %v437_v15 = vrot.slane %v435_v48, 1  ;;  %v885_v53 = vshrl.u32 %v7545_v37, 16  ;;  %v561_v49 = vrot.slane %v7501_v63, 1  ;;  %v7689_v60 = vld [vmem:[%s7303_s26 + $0x68] ss:$0 sps:$4 sm:$0x11]  }
  0x54   : > { %v407_v16 = vsel %vm395_vm1, %v402_v3, %v406_v61  ;;  %v431_v56 = vsel %vm395_vm1, %v426_v31, %v430_v45  ;;  %v882_v61 = vrot.slane %v880_v17, 1  ;;  %v442_v3 = vrot.slane %v440_v52, 1  ;;  %v279_v45 = vld [vmem:[%s7303_s26 + $0x54] sm:$0xf] }
  0x55   : > { %1571 = vmatprep.mubr.bf16.mxu1 %v407_v16  ;;  %v438_v2 = vor.u32 %v437_v15, %v433_v50  ;;  %v889_v4 = vrot.slane %v887_v57, 1  ;;  %v447_v6 = vshll.u32 %v7570_v59, 16  ;;  %v445_v25 = vshrl.u32 %v7570_v59, 16  ;;  %v298_v50 = vld [vmem:[%s7303_s26 + $0x24] sm:$0xe] }
  0x56   : > { %v894_v16 = vrot.slane %v892_v51, 1  ;;  %v7653_v51 = vld [vmem:[%s7303_s26 + $0x5c] ss:$0 sps:$4 sm:$0x11]  }
  0x57   : > { %v443_v9 = vsel %vm395_vm1, %v438_v2, %v442_v3  ;;  %v449_v10 = vrot.slane %v447_v6, 1  ;;  %v890_v13 = vor.u32 %v889_v4, %v885_v53  ;;  %v5420_v53 = vcombine.low %v298_v50, %v7542_v35  ;;  %v6910_v2 = vld [vmem:[%s9075_s1 + $0x1f0] sm:$0xff]   ;;  %v281_v6 = vld [vmem:[%s7303_s26 + $0x60] sm:$0xf] }
  0x58   : > { %1242 = vmatmul.mubr.bf16.gmra.mxu0 %v5472_v22  ;;  %v865_v22 = vrot.slane %v863_v12, 1  ;;  %1572 = vmatmul.mubr.bf16.vlgmr.msra.gmra.mxu1 %v5397_v43 }
  0x59   : > { %1249 = vmatprep.mubr.bf16.mxu0 %v859_v21  ;;  %1579 = vmatprep.mubr.bf16.mxu1 %v419_v38  ;;  %v450_v19 = vor.u32 %v449_v10, %v445_v25  ;;  %v5418_v38 = vcombine.low %v296_v29, %v7495_v58  ;;  %v6911_v10 = vld [vmem:[%s9075_s1 + $0x1b0] sm:$0xff]   ;;  %v301_v29 = vld [vmem:[%s7303_s26 + $0x48] sm:$0xe] }
  0x5a   : > { %v866_v27 = vor.u32 %v865_v22, %v861_v11  ;;  %6640 = vmatpush3.bf16.msra.mxu1 %v6909_v1  ;;  %v452_v11 = vshll.u32 %v7579_v5, 16  ;;  %v299_v1 = vld [vmem:[%s7303_s26 + $0x30] sm:$0xe] }
  0x5b   : > { %6641 = vmatprep.subr.bf16.mxu1 %v6918_v30  ;;  %v560_v48 = vrot.slane %v5418_v38, 1  ;;  %v5421_v25 = vcombine.low %v299_v1, %v7565_v55  ;;  %v6937_v5 = vld [vmem:[%s9075_s1 + $0x210] sm:$0xff]  }
  0x5c   : > { %v871_v43 = vsel %vm395_vm1, %v866_v27, %v870_v23  ;;  %v454_v21 = vrot.slane %v452_v11, 1  ;;  %v895_v23 = vsel %vm395_vm1, %v890_v13, %v894_v16  ;;  %v566_v11 = vrot.slane %v5420_v53, 1  ;;  %v6939_v53 = vld [vmem:[%s7303_s26 + $0x74] ss:$0 sps:$4 sm:$0x11]  }
  0x5d   : > { %v488_v16 = vshll.u32 %v7653_v51, 16 }
  0x5e   : > { %v455_v27 = vsel %vm395_vm1, %v450_v19, %v454_v21  ;;  %6642 = vmatpush3.bf16.msra.mxu1 %v6918_v30  ;;  %v6922_v30 = vld [vmem:[%s9075_s1 + $0x1e0] sm:$0xff]  }
  0x60   : > { %1250 = vmatmul.mubr.bf16.gmra.mxu0 %v7470_v36  ;;  %v878_v36 = vor.u32 %v877_v46, %v873_v33  ;;  %1580 = vmatmul.mubr.bf16.gmra.mxu1 %v7498_v62  ;;  %v275_v62 = vld [vmem:[%s7303_s26 + $0x3c] sm:$0xf]  ;;  %v7615_v33 = vcombine.low %v277_v26, %v7604_v28  ;;  %v7626_v46 = vld [vmem:[%s7303_s26 + $0x58] sm:$0xf]  ;;  %v6917_v26 = vld [vmem:[%s9075_s1 + $0x1a8] sm:$0xff]  }
  0x61   : > { %1257 = vmatprep.mubr.bf16.mxu0 %v871_v43  ;;  %1587 = vmatprep.mubr.bf16.mxu1 %v431_v56  ;;  %v7592_v12 = vcombine.low %v275_v62, %v7585_v8  ;;  %v476_v56 = vshll.u32 %v7620_v39, 16  ;;  %v7640_v15 = vcombine.low %v279_v45, %v7626_v46  ;;  %v567_v62 = vrot.slane %v7557_v47, 1  ;;  %v6916_v47 = vld [vmem:[%s9075_s1 + $0x1e8] sm:$0xff]  }
  0x62   : > { %v883_v7 = vsel %vm395_vm1, %v878_v36, %v882_v61  ;;  %v471_v31 = vshll.u32 %v7615_v33, 16  ;;  %v469_v52 = vshrl.u32 %v7615_v33, 16  ;;  %v6908_v61 = vld [vmem:[%s9075_s1 + $0x1b8] sm:$0xff]  }
  0x63   : > { %v459_v22 = vshll.u32 %v7592_v12, 16  ;;  %v457_v41 = vshrl.u32 %v7592_v12, 16  ;;  %v478_v3 = vrot.slane %v476_v56, 1  ;;  %v481_v13 = vshrl.u32 %v7640_v15, 16  ;;  %v303_v56 = vld [vmem:[%s7303_s26 + $0x60] sm:$0xe] }
  0x64   : > { %v473_v63 = vrot.slane %v471_v31, 1  ;;  %v500_v31 = vshll.u32 %v7689_v60, 16 }
  0x65   : > { %v461_v32 = vrot.slane %v459_v22, 1  ;;  %v300_v22 = vld [vmem:[%s7303_s26 + $0x3c] sm:$0xe] }
  0x66   : > { %v474_v4 = vor.u32 %v473_v63, %v469_v52  ;;  %v576_v52 = vrot.slane %v7620_v39, 1  ;;  %v7733_v63 = vld [vmem:[%s7303_s26 + $0x1c] sm:$0xf] }
  0x67   : > { %v462_v17 = vor.u32 %v461_v32, %v457_v41  ;;  %v568_v41 = vsel %vm556_vm0, %v566_v11, %v567_v62  ;;  %v6927_v39 = vld [vmem:[%s9075_s1 + $0x198] sm:$0xff]   ;;  %v6948_v11 = vld [vmem:[%s7303_s26 + $0x20] ss:$0 sps:$4 sm:$0x11]  }
  0x68   : > { %1258 = vmatmul.mubr.bf16.gmra.mxu0 %v7490_v54  ;;  %1588 = vmatmul.mubr.bf16.gmra.mxu1 %v7526_v20  ;;  %v7597_v54 = vld [vmem:[%s7303_s26 + $0x44] ss:$0 sps:$4 sm:$0x11]   ;;  %v479_v19 = vsel %vm395_vm1, %v474_v4, %v478_v3  ;;  %v6933_v3 = vld [vmem:[%s9075_s1 + $0x1d0] sm:$0xff]  }
  0x69   : > { %1265 = vmatprep.mubr.bf16.mxu0 %v883_v7  ;;  %1595 = vmatprep.mubr.bf16.mxu1 %v443_v9  ;;  %v464_v20 = vshll.u32 %v7597_v54, 16  ;;  %v7663_v7 = vld [vmem:[%s7303_s26 + $0x64] sm:$0xf]  ;;  %v6935_v9 = vld [vmem:[%s9075_s1 + $0x218] sm:$0xff]   ;;  %v573_v45 = vrot.slane %v7597_v54, 1 }
  0x6a   : > { %v7681_v55 = vcombine.low %v281_v6, %v7663_v7  ;;  %v6934_v6 = vld [vmem:[%s9075_s1 + $0x190] sm:$0xff]  }
  0x6b   : > { %v466_v43 = vrot.slane %v464_v20, 1  ;;  %v490_v20 = vrot.slane %v488_v16, 1  ;;  %v5596_v16 = vld [vmem:[%s7303_s26 + $0x28] sm:$0xf] }
  0x6d   : > { %v467_v57 = vsel %vm395_vm1, %v462_v17, %v466_v43  ;;  %v6943_v43 = vld [vmem:[%s9075_s1 + $0x208] sm:$0xff]   ;;  %v493_v17 = vshrl.u32 %v7681_v55, 16 }
  0x70   : > { %1266 = vmatmul.mubr.bf16.gmra.mxu0 %v7507_v0  ;;  %v558_v0 = vrot.slane %v7481_v44, 1  ;;  %1596 = vmatmul.mubr.bf16.gmra.mxu1 %v7549_v40  ;;  %v6925_v44 = vld [vmem:[%s9075_s1 + $0x228] sm:$0xff]   ;;  %v5419_v40 = vcombine.low %v297_v42, %v7522_v14  ;;  %v6928_v14 = vld [vmem:[%s9075_s1 + $0x220] sm:$0xff]   ;;  %v5423_v42 = vcombine.low %v301_v29, %v7604_v28  ;;  %v1904_v29 = vshll.u32 %v6948_v11, 16 }
  0x71   : > { %1273 = vmatprep.mubr.bf16.mxu0 %v895_v23  ;;  %1603 = vmatprep.mubr.bf16.mxu1 %v455_v27  ;;  %v569_v23 = vrot.slane %v5421_v25, 1  ;;  %v495_v27 = vshll.u32 %v7681_v55, 16  ;;  %v6946_v28 = vld [vmem:[%s9075_s1 + $0x200] sm:$0xff]   ;;  %v512_v25 = vshll.u32 %v6939_v53, 16 }
  0x72   : > { %v559_v58 = vsel %vm556_vm0, %v557_v34, %v558_v0  ;;  %6643 = vmatprep.subr.bf16.mxu1 %v6925_v44  ;;  %v563_v36 = vrot.slane %v5419_v40, 1  ;;  %v283_v34 = vld [vmem:[%s7303_s26 + $0x6c] sm:$0xf]  ;;  %v7704_v0 = vld [vmem:[%s7303_s26 + $0x70] sm:$0xf]  ;;  %v575_v50 = vrot.slane %v5423_v42, 1 }
  0x73   : > { %6644 = vmatpush3.bf16.msra.mxu1 %v6925_v44  ;;  %v571_v38 = vsel %vm556_vm0, %v569_v23, %v570_v18  ;;  %v497_v44 = vrot.slane %v495_v27, 1  ;;  %v7726_v40 = vcombine.low %v283_v34, %v7704_v0  ;;  %v5595_v18 = vld [vmem:[%s7303_s26 + $0x24] sm:$0xf]  ;;  %v6950_v42 = vld [vmem:[%s7303_s26 + $0x2c] ss:$0 sps:$4 sm:$0x11]  }
  0x74   : > { %6645 = vmatprep.subr.bf16.mxu1 %v6928_v14 }
  0x75   : > { %v507_v1 = vshll.u32 %v7726_v40, 16 }
  0x77   : > { %6646 = vmatpush3.bf16.msra.mxu1 %v6928_v14  ;;  %v498_v14 = vor.u32 %v497_v44, %v493_v17  ;;  %v509_v62 = vrot.slane %v507_v1, 1  ;;  %v2057_v44 = vrot.slane %v6948_v11, 1  ;;  %v2060_v1 = vrot.slane %v6950_v42, 1 }
  0x78   : > { %1274 = vmatmul.mubr.bf16.gmra.mxu0 %v7545_v37  ;;  %v564_v37 = vrot.slane %v7530_v24, 1  ;;  %1604 = vmatmul.mubr.bf16.gmra.mxu1 %v7570_v59  ;;  %v483_v24 = vshll.u32 %v7640_v15, 16  ;;  %v562_v59 = vsel %vm556_vm0, %v560_v48, %v561_v49  ;;  %v6926_v48 = vld [vmem:[%s9075_s1 + $0x1d8] sm:$0xff]   ;;  %v302_v49 = vld [vmem:[%s7303_s26 + $0x54] sm:$0xe] }
  0x79   : > { %6619 = vmatprep.mubr.bf16.mxu0 %v559_v58  ;;  %1611 = vmatprep.mubr.bf16.mxu1 %v467_v57  ;;  %v5593_v57 = vld [vmem:[%s7303_s26 + $0x18] sm:$0xf] }
  0x7a   : > { %v565_v35 = vsel %vm556_vm0, %v563_v36, %v564_v37  ;;  %6647 = vmatprep.subr.bf16.mxu1 %v6935_v9  ;;  %v485_v21 = vrot.slane %v483_v24, 1  ;;  %v502_v36 = vrot.slane %v500_v31, 1  ;;  %v5424_v37 = vcombine.low %v302_v49, %v7626_v46 }
  0x7b   : > { %6648 = vmatpush3.bf16.msra.mxu1 %v6935_v9  ;;  %v7748_v46 = vcombine.low %v5593_v57, %v7733_v63  ;;  %v579_v24 = vrot.slane %v7653_v51, 1  ;;  %v505_v51 = vshrl.u32 %v7726_v40, 16 }
  0x7c   : > { %6649 = vmatprep.subr.bf16.mxu1 %v6937_v5  ;;  %v486_v32 = vor.u32 %v485_v21, %v481_v13  ;;  %v578_v4 = vrot.slane %v5424_v37, 1  ;;  %v514_v21 = vrot.slane %v512_v25, 1  ;;  %v5602_v25 = vld [vmem:[%s7303_s26 + $0x4c] sm:$0xf] }
  0x7d   : > { %v1899_v13 = vshll.u32 %v7748_v46, 16 }
  0x7e   : > { %v491_v54 = vsel %vm395_vm1, %v486_v32, %v490_v20  ;;  %v5623_v20 = vld [vmem:[%s7303_s26 + $0x18] sm:$0xe]  ;;  %v585_v32 = vrot.slane %v6939_v53, 1 }
  0x7f   : > { %6650 = vmatpush3.bf16.msra.mxu1 %v6937_v5  ;;  %v6941_v5 = vld [vmem:[%s9075_s1 + $0x188] sm:$0xff]   ;;  %v5653_v34 = vcombine.low %v5623_v20, %v7733_v63 }
  0x80   : > { %6620 = vmatmul.mubr.bf16.vlgmr.msra.gmra.mxu0 %v562_v59  ;;  %1612 = vmatmul.mubr.bf16.gmra.mxu1 %v7592_v12  ;;  %v5422_v12 = vcombine.low %v300_v22, %v7585_v8  ;;  %v6924_v8 = vld [vmem:[%s9075_s1 + $0x1a0] sm:$0xff]   ;;  %v503_v59 = vsel %vm395_vm1, %v498_v14, %v502_v36  ;;  %v6954_v36 = vld [vmem:[%s7303_s26 + $0x38] ss:$0 sps:$4 sm:$0x11]  }
  0x81   : > { %6234 = vmatpush3.bf16.msra.mxu0 %v6908_v61  ;;  %6623 = vmatprep.mubr.bf16.mxu0 %v565_v35  ;;  %v582_v35 = vrot.slane %v7689_v60, 1  ;;  %v1897_v60 = vshrl.u32 %v7748_v46, 16  ;;  %v2056_v31 = vrot.slane %v5653_v34, 1  ;;  %v5606_v34 = vld [vmem:[%s7303_s26 + $0x64] sm:$0xf] }
  0x82   : > { %6235 = vmatprep.subr.bf16.mxu0 %v6910_v2  ;;  %1619 = vmatprep.mubr.bf16.mxu1 %v479_v19  ;;  %v572_v58 = vrot.slane %v5422_v12, 1  ;;  %v577_v2 = vsel %vm556_vm0, %v575_v50, %v576_v52  ;;  %v510_v19 = vor.u32 %v509_v62, %v505_v51  ;;  %v6945_v12 = vld [vmem:[%s9075_s1 + $0x180] sm:$0xff]  }
  0x83   : > { %6651 = vmatprep.subr.bf16.mxu1 %v6943_v43  ;;  %v6957_v51 = vld [vmem:[%s7303_s26 + $0x44] ss:$0 sps:$4 sm:$0x11]  }
  0x84   : > { %6652 = vmatpush3.bf16.msra.mxu1 %v6943_v43  ;;  %v574_v61 = vsel %vm556_vm0, %v572_v58, %v573_v45  ;;  %v515_v27 = vsel %vm395_vm1, %v510_v19, %v514_v21  ;;  %v5597_v45 = vld [vmem:[%s7303_s26 + $0x30] sm:$0xf]  ;;  %v2066_v19 = vrot.slane %v6957_v51, 1 }
  0x85   : > { %6236 = vmatpush3.bf16.msra.mxu0 %v6911_v10  ;;  %6653 = vmatprep.subr.bf16.mxu1 %v6946_v28  ;;  %v304_v10 = vld [vmem:[%s7303_s26 + $0x6c] sm:$0xe] }
  0x86   : > { %6237 = vmatprep.subr.bf16.mxu0 %v6916_v47  ;;  %v580_v47 = vsel %vm556_vm0, %v578_v4, %v579_v24  ;;  %v5426_v23 = vcombine.low %v304_v10, %v7704_v0  ;;  %v5626_v24 = vld [vmem:[%s7303_s26 + $0x3c] sm:$0xe] }
  0x88   : > { %6624 = vmatmul.mubr.bf16.gmra.mxu0 %v568_v41  ;;  %1620 = vmatmul.mubr.bf16.gmra.mxu1 %v7615_v33  ;;  %v5425_v33 = vcombine.low %v303_v56, %v7663_v7  ;;  %v6936_v7 = vld [vmem:[%s9075_s1 + $0x1c8] sm:$0xff]   ;;  %v584_v41 = vrot.slane %v5426_v23, 1  ;;  %v2058_v56 = vsel %vm556_vm0, %v2056_v31, %v2057_v44  ;;  %v5604_v23 = vld [vmem:[%s7303_s26 + $0x58] sm:$0xf] }
  0x89   : > { %6238 = vmatpush3.bf16.msra.mxu0 %v6917_v26  ;;  %6627 = vmatprep.mubr.bf16.mxu0 %v571_v38  ;;  %v1901_v26 = vrot.slane %v1899_v13, 1  ;;  %v1906_v38 = vrot.slane %v1904_v29, 1  ;;  %v1940_v29 = vshll.u32 %v6957_v51, 16 }
  0x8a   : > { %6239 = vmatprep.subr.bf16.mxu0 %v6922_v30  ;;  %1627 = vmatprep.mubr.bf16.mxu1 %v491_v54  ;;  %v581_v9 = vrot.slane %v5425_v33, 1  ;;  %v7777_v30 = vcombine.low %v5595_v18, %v5596_v16  ;;  %v586_v17 = vsel %vm556_vm0, %v584_v41, %v585_v32  ;;  %v1916_v54 = vshll.u32 %v6950_v42, 16  ;;  %v5601_v18 = vld [vmem:[%s7303_s26 + $0x48] sm:$0xf] }
  0x8b   : > { %6654 = vmatpush3.bf16.msra.mxu1 %v6946_v28  ;;  %v1902_v0 = vor.u32 %v1901_v26, %v1897_v60  ;;  %v5624_v28 = vld [vmem:[%s7303_s26 + $0x24] sm:$0xe]  ;;  %v7820_v20 = vcombine.low %v5601_v18, %v5602_v25  ;;  %v6963_v32 = vld [vmem:[%s7303_s26 + $0x5c] ss:$0 sps:$4 sm:$0x11]  }
  0x8c   : > { %v583_v22 = vsel %vm556_vm0, %v581_v9, %v582_v35  ;;  %v1911_v43 = vshll.u32 %v7777_v30, 16  ;;  %v5654_v52 = vcombine.low %v5624_v28, %v5596_v16  ;;  %v1918_v57 = vrot.slane %v1916_v54, 1 }
  0x8d   : > { %6240 = vmatpush3.bf16.msra.mxu0 %v6924_v8  ;;  %v5598_v8 = vld [vmem:[%s7303_s26 + $0x34] sm:$0xf]  ;;  %v1907_v58 = vsel %vm395_vm1, %v1902_v0, %v1906_v38  ;;  %v2072_v44 = vrot.slane %v6963_v32, 1 }
  0x8e   : > { %6241 = vmatprep.subr.bf16.mxu0 %v6926_v48  ;;  %v1909_v48 = vshrl.u32 %v7777_v30, 16  ;;  %v1913_v49 = vrot.slane %v1911_v43, 1  ;;  %v7793_v50 = vcombine.low %v5597_v45, %v5598_v8  ;;  %v2059_v53 = vrot.slane %v5654_v52, 1 }
  0x8f   : > { %v1942_v43 = vrot.slane %v1940_v29, 1  ;;  %v1947_v45 = vshll.u32 %v7820_v20, 16 }
  0x90   : > { %6628 = vmatmul.mubr.bf16.gmra.mxu0 %v574_v61  ;;  %1628 = vmatmul.mubr.bf16.gmra.mxu1 %v7640_v15  ;;  %v6944_v15 = vld [vmem:[%s9075_s1 + $0x1c0] sm:$0xff]   ;;  %v1914_v14 = vor.u32 %v1913_v49, %v1909_v48  ;;  %v1923_v37 = vshll.u32 %v7793_v50, 16  ;;  %v5599_v61 = vld [vmem:[%s7303_s26 + $0x3c] sm:$0xf]  ;;  %v1921_v33 = vshrl.u32 %v7793_v50, 16  ;;  %v2061_v35 = vsel %vm556_vm0, %v2059_v53, %v2060_v1 }
  0x91   : > { %6242 = vmatpush3.bf16.msra.mxu0 %v6927_v39  ;;  %6631 = vmatprep.mubr.bf16.mxu0 %v577_v2  ;;  %v5600_v39 = vld [vmem:[%s7303_s26 + $0x40] sm:$0xf]  ;;  %v5630_v48 = vld [vmem:[%s7303_s26 + $0x6c] sm:$0xe]  ;;  %v1949_v52 = vrot.slane %v1947_v45, 1 }
  0x92   : > { %6243 = vmatprep.subr.bf16.mxu0 %v6933_v3  ;;  %1635 = vmatprep.mubr.bf16.mxu1 %v503_v59  ;;  %v2063_v3 = vrot.slane %v6954_v36, 1  ;;  %v1919_v59 = vsel %vm395_vm1, %v1914_v14, %v1918_v57  ;;  %v1925_v4 = vrot.slane %v1923_v37, 1  ;;  %v5656_v62 = vcombine.low %v5626_v24, %v5600_v39  ;;  %v5631_v57 = vld [vmem:[%s7303_s26 + $0x78] sm:$0xe]  ;;  %v5610_v37 = vld [vmem:[%s7303_s26 + $0x7c] sm:$0xf] }
  0x93   : > { %v6969_v14 = vld [vmem:[%s7303_s26 + $0x74] ss:$0 sps:$4 sm:$0x11]  }
  0x94   : > { %v1926_v11 = vor.u32 %v1925_v4, %v1921_v33 }
  0x95   : > { %6244 = vmatpush3.bf16.msra.mxu0 %v6934_v6  ;;  %v1928_v6 = vshll.u32 %v6954_v36, 16 }
  0x96   : > { %6245 = vmatprep.subr.bf16.mxu0 %v6936_v7  ;;  %v7805_v7 = vcombine.low %v5599_v61, %v5600_v39  ;;  %v5661_v39 = vcombine.low %v5631_v57, %v5610_v37 }
  0x97   : > { %v1930_v13 = vrot.slane %v1928_v6, 1 }
  0x98   : > { %6632 = vmatmul.mubr.bf16.gmra.mxu0 %v580_v47  ;;  %1636 = vmatmul.mubr.bf16.gmra.mxu1 %v7681_v55  ;;  %v5625_v55 = vld [vmem:[%s7303_s26 + $0x30] sm:$0xe]  ;;  %v1935_v16 = vshll.u32 %v7805_v7, 16  ;;  %v6960_v47 = vld [vmem:[%s7303_s26 + $0x50] ss:$0 sps:$4 sm:$0x11]  }
  0x99   : > { %6635 = vmatprep.mubr.bf16.mxu0 %v583_v22  ;;  %6246 = vmatpush3.bf16.msra.mxu0 %v6941_v5  ;;  %v5655_v63 = vcombine.low %v5625_v55, %v5598_v8  ;;  %v1933_v21 = vshrl.u32 %v7805_v7, 16  ;;  %v2069_v5 = vrot.slane %v6960_v47, 1  ;;  %v1931_v60 = vsel %vm395_vm1, %v1926_v11, %v1930_v13  ;;  %v5603_v8 = vld [vmem:[%s7303_s26 + $0x54] sm:$0xf] }
  0x9a   : > { %6247 = vmatprep.subr.bf16.mxu0 %v6944_v15  ;;  %1643 = vmatprep.mubr.bf16.mxu1 %v515_v27  ;;  %v5628_v15 = vld [vmem:[%s7303_s26 + $0x54] sm:$0xe]  ;;  %v1937_v26 = vrot.slane %v1935_v16, 1  ;;  %v5629_v27 = vld [vmem:[%s7303_s26 + $0x60] sm:$0xe]  ;;  %v1945_v55 = vshrl.u32 %v7820_v20, 16 }
  0x9b   : > { %v2062_v2 = vrot.slane %v5655_v63, 1  ;;  %v5659_v38 = vcombine.low %v5629_v27, %v5606_v34  ;;  %v2080_v4 = vrot.slane %v5661_v39, 1  ;;  %v6975_v11 = vld [vmem:[%s7303_s26 + $0x8c] ss:$0 sps:$4 sm:$0x11]  }
  0x9c   : > { %v1938_v42 = vor.u32 %v1937_v26, %v1933_v21  ;;  %v1950_v53 = vor.u32 %v1949_v52, %v1945_v55 }
  0x9d   : > { %6248 = vmatpush3.bf16.msra.mxu0 %v6945_v12  ;;  %v2064_v9 = vsel %vm556_vm0, %v2062_v2, %v2063_v3  ;;  %v5658_v12 = vcombine.low %v5628_v15, %v5604_v23  ;;  %v2074_v28 = vrot.slane %v5659_v38, 1  ;;  %v5605_v2 = vld [vmem:[%s7303_s26 + $0x60] sm:$0xf]  ;;  %v1988_v38 = vshll.u32 %v6969_v14, 16 }
  0x9e   : > { %v1943_v49 = vsel %vm395_vm1, %v1938_v42, %v1942_v43  ;;  %v6972_v3 = vld [vmem:[%s7303_s26 + $0x80] ss:$0 sps:$4 sm:$0x11]  }
  0x9f   : > { %v2071_v31 = vrot.slane %v5658_v12, 1  ;;  %v2081_v6 = vrot.slane %v6972_v3, 1  ;;  %v1990_v45 = vrot.slane %v1988_v38, 1 }
  0xa0   : > { %6636 = vmatmul.mubr.bf16.gmra.mxu0 %v586_v17  ;;  %1644 = vmatmul.mubr.bf16.gmra.mxu1 %v7726_v40  ;;  %v5627_v40 = vld [vmem:[%s7303_s26 + $0x48] sm:$0xe]  ;;  %v7831_v17 = vld [vmem:[%s7303_s26 + $0x68] ss:$0 sps:$4 sm:$0x11]  }
  0xa1   : > { %2321 = vmatprep.mubr.bf16.mxu0 %v1907_v58  ;;  %6655 = vmatprep.mubr.bf16.mxu1 %v2058_v56  ;;  %v5657_v10 = vcombine.low %v5627_v40, %v5602_v25  ;;  %v2075_v54 = vrot.slane %v7831_v17, 1  ;;  %v5608_v58 = vld [vmem:[%s7303_s26 + $0x70] sm:$0xf]  ;;  %v5638_v56 = vcombine.low %v5603_v8, %v5604_v23  ;;  %v2073_v63 = vsel %vm556_vm0, %v2071_v31, %v2072_v44  ;;  %v5612_v40 = vld [vmem:[%s7303_s26 + $0x88] sm:$0xf] }
  0xa2   : > { %v5660_v36 = vcombine.low %v5630_v48, %v5608_v58  ;;  %v1964_v25 = vshll.u32 %v6963_v32, 16  ;;  %v2082_v16 = vsel %vm556_vm0, %v2080_v4, %v2081_v6  ;;  %v5609_v32 = vld [vmem:[%s7303_s26 + $0x78] sm:$0xf]  ;;  %v5611_v8 = vld [vmem:[%s7303_s26 + $0x84] sm:$0xf] }
  0xa3   : > { %v2068_v22 = vrot.slane %v5657_v10, 1  ;;  %v2076_v61 = vsel %vm556_vm0, %v2074_v28, %v2075_v54  ;;  %v1959_v33 = vshll.u32 %v5638_v56, 16  ;;  %v1957_v24 = vshrl.u32 %v5638_v56, 16 }
  0xa4   : > { %v5641_v42 = vcombine.low %v5609_v32, %v5610_v37  ;;  %v5642_v28 = vcombine.low %v5611_v8, %v5612_v40 }
  0xa5   : > { %v2070_v0 = vsel %vm556_vm0, %v2068_v22, %v2069_v5  ;;  %v2084_v22 = vrot.slane %v6975_v11, 1  ;;  %v1976_v5 = vshll.u32 %v7831_v17, 16  ;;  %v2000_v17 = vshll.u32 %v6972_v3, 16 }
  0xa6   : > { %v1993_v31 = vshrl.u32 %v5641_v42, 16  ;;  %v2007_v48 = vshll.u32 %v5642_v28, 16  ;;  %v2005_v55 = vshrl.u32 %v5642_v28, 16 }
  0xa7   : > { %v1978_v27 = vrot.slane %v1976_v5, 1 }
  0xa8   : > { %2322 = vmatmul.mubr.bf16.vlgmr.msra.gmra.mxu0 %v7748_v46  ;;  %6656 = vmatmul.mubr.bf16.vlgmr.msra.gmra.mxu1 %v2061_v35  ;;  %v2065_v46 = vrot.slane %v5656_v62, 1  ;;  %v5632_v35 = vld [vmem:[%s7303_s26 + $0x84] sm:$0xe]  ;;  %v1961_v62 = vrot.slane %v1959_v33, 1  ;;  %v2009_v52 = vrot.slane %v2007_v48, 1 }
  0xa9   : > { %2329 = vmatprep.mubr.bf16.mxu0 %v1919_v59  ;;  %6659 = vmatprep.mubr.bf16.mxu1 %v2064_v9  ;;  %v2078_v59 = vrot.slane %v6969_v14, 1  ;;  %v5639_v9 = vcombine.low %v5605_v2, %v5606_v34  ;;  %v5662_v13 = vcombine.low %v5632_v35, %v5612_v40 }
  0xaa   : > { %v2067_v41 = vsel %vm556_vm0, %v2065_v46, %v2066_v19  ;;  %v1962_v18 = vor.u32 %v1961_v62, %v1957_v24  ;;  %v5607_v19 = vld [vmem:[%s7303_s26 + $0x6c] sm:$0xf]  ;;  %v2010_v57 = vor.u32 %v2009_v52, %v2005_v55 }
  0xab   : > { %v1971_v46 = vshll.u32 %v5639_v9, 16  ;;  %v2083_v21 = vrot.slane %v5662_v13, 1  ;;  %v1969_v23 = vshrl.u32 %v5639_v9, 16 }
  0xad   : > { %v1973_v15 = vrot.slane %v1971_v46, 1  ;;  %v2085_v26 = vsel %vm556_vm0, %v2083_v21, %v2084_v22 }
  0xaf   : > { %v1974_v29 = vor.u32 %v1973_v15, %v1969_v23 }
  0xb0   : > { %2330 = vmatmul.mubr.bf16.gmra.mxu0 %v7777_v30  ;;  %6660 = vmatmul.mubr.bf16.gmra.mxu1 %v2067_v41  ;;  %v1952_v30 = vshll.u32 %v6960_v47, 16  ;;  %v1966_v47 = vrot.slane %v1964_v25, 1 }
  0xb1   : > { %2337 = vmatprep.mubr.bf16.mxu0 %v1931_v60  ;;  %6663 = vmatprep.mubr.bf16.mxu1 %v2070_v0  ;;  %v5640_v60 = vcombine.low %v5607_v19, %v5608_v58  ;;  %v1979_v34 = vsel %vm395_vm1, %v1974_v29, %v1978_v27  ;;  %v2002_v58 = vrot.slane %v2000_v17, 1 }
  0xb2   : > { %v1954_v1 = vrot.slane %v1952_v30, 1 }
  0xb3   : > { %v1983_v41 = vshll.u32 %v5640_v60, 16  ;;  %v1981_v12 = vshrl.u32 %v5640_v60, 16 }
  0xb4   : > { %v1955_v51 = vsel %vm395_vm1, %v1950_v53, %v1954_v1 }
  0xb5   : > { %v1985_v0 = vrot.slane %v1983_v41, 1 }
  0xb7   : > { %v1986_v43 = vor.u32 %v1985_v0, %v1981_v12 }
  0xb8   : > { %2338 = vmatmul.mubr.bf16.gmra.mxu0 %v7793_v50  ;;  %6664 = vmatmul.mubr.bf16.gmra.mxu1 %v2073_v63  ;;  %v2077_v50 = vrot.slane %v5660_v36, 1 }
  0xb9   : > { %2345 = vmatprep.mubr.bf16.mxu0 %v1943_v49  ;;  %6667 = vmatprep.mubr.bf16.mxu1 %v2076_v61  ;;  %v1991_v30 = vsel %vm395_vm1, %v1986_v43, %v1990_v45 }
  0xba   : > { %v2079_v10 = vsel %vm556_vm0, %v2077_v50, %v2078_v59 }
  0xc0   : > { %2346 = vmatmul.mubr.bf16.gmra.mxu0 %v7805_v7  ;;  %6668 = vmatmul.mubr.bf16.gmra.mxu1 %v2079_v10  ;;  %v1967_v7 = vsel %vm395_vm1, %v1962_v18, %v1966_v47 }
  0xc1   : > { %2353 = vmatprep.mubr.bf16.mxu0 %v1955_v51  ;;  %6671 = vmatprep.mubr.bf16.mxu1 %v2082_v16 }
  0xc8   : > { %2354 = vmatmul.mubr.bf16.gmra.mxu0 %v7820_v20  ;;  %6672 = vmatmul.mubr.bf16.gmra.mxu1 %v2085_v26  ;;  %v1995_v20 = vshll.u32 %v5641_v42, 16 }
  0xc9   : > { %2361 = vmatprep.mubr.bf16.mxu0 %v1967_v7 }
  0xca   : > { %v1997_v44 = vrot.slane %v1995_v20, 1 }
  0xcc   : > { %v1998_v54 = vor.u32 %v1997_v44, %v1993_v31 }
  0xce   : > { %v2003_v49 = vsel %vm395_vm1, %v1998_v54, %v2002_v58 }
  0xd0   : > { %2362 = vmatmul.mubr.bf16.gmra.mxu0 %v5638_v56  ;;  %v2012_v56 = vshll.u32 %v6975_v11, 16 }
  0xd1   : > { %2369 = vmatprep.mubr.bf16.mxu0 %v1979_v34 }
  0xd2   : > { %v2014_v63 = vrot.slane %v2012_v56, 1 }
  0xd4   : > { %v2015_v14 = vsel %vm395_vm1, %v2010_v57, %v2014_v63 }
  0xd8   : > { %2370 = vmatmul.mubr.bf16.gmra.mxu0 %v5639_v9 }
  0xd9   : > { %2377 = vmatprep.mubr.bf16.mxu0 %v1991_v30 }
  0xe0   : > { %2378 = vmatmul.mubr.bf16.gmra.mxu0 %v5640_v60 }
  0xe1   : > { %2385 = vmatprep.mubr.bf16.mxu0 %v2003_v49 }
  0xe8   : > { %2386 = vmatmul.mubr.bf16.gmra.mxu0 %v5641_v42 }
  0xe9   : > { %2393 = vmatprep.mubr.bf16.mxu0 %v2015_v14 }
  0xf0   : > { %v6061_v36 = vpop.f32.mrf.mxu0  ;;  %v6585_v37 = vpop.f32.mrf.mxu1  ;;  %2394 = vmatmul.mubr.bf16.gmra.mxu0 %v5642_v28 }
  0xf2   : > { %v6062_v61 = vpop.f32.mrf.mxu0  ;;  %v1316_v39 = vpop.f32.mrf.mxu1 }
  0xf3   : > { %v6063_v53 = vadd.f32 %v6062_v61, %v6061_v36 }
  0xf4   : > { %v6064_v1 = vpop.f32.mrf.mxu0  ;;  %v6586_v33 = vpop.f32.mrf.mxu1 }
  0xf5   : > { %v7864_v2 = vadd.f32 %v6063_v53, %v1316_v39 }
  0xf6   : > { %v6065_v3 = vpop.f32.mrf.mxu0  ;;  %v1319_v24 = vpop.f32.mrf.mxu1 }
  0xf7   : > { %v6066_v50 = vadd.f32 %v6065_v3, %v6064_v1 }
  0xf8   : > { %v6067_v59 = vpop.f32.mrf.mxu0  ;;  %v6589_v4 = vpop.f32.mrf.mxu1 }
  0xf9   : > { %v7866_v6 = vadd.f32 %v6066_v50, %v1319_v24 }
  0xfa   : > { %v6068_v40 = vpop.f32.mrf.mxu0  ;;  %v1332_v35 = vpop.f32.mrf.mxu1 }
  0xfb   : > { %v6069_v51 = vadd.f32 %v6068_v40, %v6067_v59 }
  0xfc   : > { %v6070_v62 = vpop.f32.mrf.mxu0  ;;  %v6590_v25 = vpop.f32.mrf.mxu1 }
  0xfd   : > { %v7868_v9 = vadd.f32 %v6585_v37, %v6069_v51 }
  0xfe   : > { %v6071_v10 = vpop.f32.mrf.mxu0  ;;  %v1335_v11 = vpop.f32.mrf.mxu1 }
  0xff   : > { %v6072_v13 = vadd.f32 %v6071_v10, %v6070_v62 }
 0x100   : > { %v6073_v16 = vpop.f32.mrf.mxu0  ;;  %v6593_v18 = vpop.f32.mrf.mxu1 }
 0x101   : > { %v7870_v47 = vadd.f32 %v6586_v33, %v6072_v13 }
 0x102   : > { %v6074_v46 = vpop.f32.mrf.mxu0  ;;  %v1348_v19 = vpop.f32.mrf.mxu1 }
 0x103   : > { %v6075_v21 = vadd.f32 %v6074_v46, %v6073_v16 }
 0x104   : > { %v6076_v22 = vpop.f32.mrf.mxu0  ;;  %v6594_v5 = vpop.f32.mrf.mxu1 }
 0x105   : > { %v7872_v7 = vadd.f32 %v6075_v21, %v1332_v35 }
 0x106   : > { %v6077_v23 = vpop.f32.mrf.mxu0  ;;  %v1351_v15 = vpop.f32.mrf.mxu1 }
 0x107   : > { %v6078_v60 = vadd.f32 %v6077_v23, %v6076_v22 }
 0x108   : > { %v6079_v26 = vpop.f32.mrf.mxu0  ;;  %v6597_v29 = vpop.f32.mrf.mxu1 }
 0x109   : > { %v7874_v27 = vadd.f32 %v6078_v60, %v1335_v11 }
 0x10a   : > { %v6080_v41 = vpop.f32.mrf.mxu0  ;;  %v1364_v32 = vpop.f32.mrf.mxu1 }
 0x10b   : > { %v6081_v12 = vadd.f32 %v6080_v41, %v6079_v26 }
 0x10c   : > { %v6082_v34 = vpop.f32.mrf.mxu0  ;;  %v7876_v0 = vpop.f32.mrf.mxu1 }
 0x10d   : > { %v7878_v38 = vadd.f32 %v6589_v4, %v6081_v12 }
 0x10e   : > { %v6083_v42 = vpop.f32.mrf.mxu0  ;;  %v1367_v43 = vpop.f32.mrf.mxu1 }
 0x10f   : > { %v6084_v45 = vadd.f32 %v6083_v42, %v6082_v34 }
 0x110   : > { %v6085_v20 = vpop.f32.mrf.mxu0  ;;  %v7882_v17 = vpop.f32.mrf.mxu1 }
 0x111   : > { %v7880_v8 = vadd.f32 %v6590_v25, %v6084_v45 }
 0x112   : > { %v6086_v30 = vpop.f32.mrf.mxu0  ;;  %v1380_v44 = vpop.f32.mrf.mxu1 }
 0x113   : > { %v6087_v31 = vadd.f32 %v6086_v30, %v6085_v20 }
 0x114   : > { %v6088_v28 = vpop.f32.mrf.mxu0  ;;  %v7886_v58 = vpop.f32.mrf.mxu1 }
 0x115   : > { %v7884_v54 = vadd.f32 %v6087_v31, %v1348_v19 }
 0x116   : > { %v6089_v48 = vpop.f32.mrf.mxu0  ;;  %v7888_v55 = vpop.f32.mrf.mxu1 }
 0x117   : > { %v6090_v49 = vadd.f32 %v6089_v48, %v6088_v28 }
 0x118   : > { %v6091_v52 = vpop.f32.mrf.mxu0  ;;  %v6155_v63 = vpop.f32.mrf.mxu1 }
 0x119   : > { %v7890_v56 = vadd.f32 %v6090_v49, %v1351_v15 }
 0x11a   : > { %v6092_v57 = vpop.f32.mrf.mxu0  ;;  %v6156_v61 = vpop.f32.mrf.mxu1 }
 0x11b   : > { %v6093_v14 = vadd.f32 %v6092_v57, %v6091_v52  ;;  %v6157_v39 = vadd.f32 %v6156_v61, %v6155_v63 }
 0x11c   : > { %v6094_v36 = vpop.f32.mrf.mxu0  ;;  %v6158_v1 = vpop.f32.mrf.mxu1 }
 0x11d   : > { %v7892_v37 = vadd.f32 %v6593_v18, %v6093_v14  ;;  %v7895_v24 = vadd.f32 %v6157_v39, %v7864_v2 }
 0x11e   : > { %v6095_v53 = vpop.f32.mrf.mxu0  ;;  %v6159_v59 = vpop.f32.mrf.mxu1 }
 0x11f   : > { %v6096_v33 = vadd.f32 %v6095_v53, %v6094_v36  ;;  %v6160_v4 = vadd.f32 %v6159_v59, %v6158_v1 }
 0x120   : > { %v6097_v3 = vpop.f32.mrf.mxu0  ;;  %v6161_v35 = vpop.f32.mrf.mxu1 }
 0x121   : > { %v7897_v50 = vadd.f32 %v6594_v5, %v6096_v33  ;;  %v7900_v25 = vadd.f32 %v6160_v4, %v7866_v6 }
 0x122   : > { %v6098_v40 = vpop.f32.mrf.mxu0  ;;  %v6162_v11 = vpop.f32.mrf.mxu1 }
 0x123   : > { %v6099_v51 = vadd.f32 %v6098_v40, %v6097_v3  ;;  %v6163_v13 = vadd.f32 %v6162_v11, %v6161_v35 }
 0x124   : > { %v6100_v62 = vpop.f32.mrf.mxu0  ;;  %v6164_v18 = vpop.f32.mrf.mxu1 }
 0x125   : > { %v7902_v10 = vadd.f32 %v6099_v51, %v1364_v32  ;;  %v7905_v19 = vadd.f32 %v6163_v13, %v7868_v9 }
 0x126   : > { %v6101_v16 = vpop.f32.mrf.mxu0  ;;  %v6165_v22 = vpop.f32.mrf.mxu1 }
 0x127   : > { %v6102_v46 = vadd.f32 %v6101_v16, %v6100_v62  ;;  %v6166_v5 = vadd.f32 %v6165_v22, %v6164_v18 }
 0x128   : > { %v6103_v2 = vpop.f32.mrf.mxu0  ;;  %v6167_v15 = vpop.f32.mrf.mxu1 }
 0x129   : > { %v7907_v21 = vadd.f32 %v6102_v46, %v1367_v43  ;;  %v7910_v26 = vadd.f32 %v6166_v5, %v7870_v47 }
 0x12a   : > { %v6104_v23 = vpop.f32.mrf.mxu0  ;;  %v6168_v32 = vpop.f32.mrf.mxu1 }
 0x12b   : > { %v6105_v60 = vadd.f32 %v6104_v23, %v6103_v2  ;;  %v6169_v12 = vadd.f32 %v6168_v32, %v6167_v15 }
 0x12c   : > { %v6106_v6 = vpop.f32.mrf.mxu0  ;;  %v6170_v42 = vpop.f32.mrf.mxu1 }
 0x12d   : > { %v7912_v41 = vadd.f32 %v6597_v29, %v6105_v60  ;;  %v7915_v43 = vadd.f32 %v6169_v12, %v7872_v7 }
 0x12e   : > { %v6107_v34 = vpop.f32.mrf.mxu0  ;;  %v6171_v30 = vpop.f32.mrf.mxu1 }
 0x12f   : > { %v6108_v45 = vadd.f32 %v6107_v34, %v6106_v6  ;;  %v6172_v31 = vadd.f32 %v6171_v30, %v6170_v42 }
 0x130   : > { %v6109_v9 = vpop.f32.mrf.mxu0  ;;  %v6173_v48 = vpop.f32.mrf.mxu1 }
 0x131   : > { %v7918_v20 = vadd.f32 %v7876_v0, %v6108_v45  ;;  %v7921_v29 = vadd.f32 %v6172_v31, %v7874_v27 }
 0x132   : > { %v6110_v28 = vpop.f32.mrf.mxu0  ;;  %v6174_v57 = vpop.f32.mrf.mxu1 }
 0x133   : > { %v6111_v47 = vadd.f32 %v6110_v28, %v6109_v9  ;;  %v6175_v63 = vadd.f32 %v6174_v57, %v6173_v48 }
 0x134   : > { %v6112_v49 = vpop.f32.mrf.mxu0  ;;  %v6176_v36 = vpop.f32.mrf.mxu1 }
 0x135   : > { %v7923_v52 = vadd.f32 %v6111_v47, %v1380_v44  ;;  %v7926_v0 = vadd.f32 %v6175_v63, %v7878_v38 }
 0x136   : > { %v6113_v14 = vpop.f32.mrf.mxu0  ;;  %v6177_v53 = vpop.f32.mrf.mxu1 }
 0x137   : > { %v6114_v7 = vadd.f32 %v6113_v14, %v6112_v49  ;;  %v6178_v1 = vadd.f32 %v6177_v53, %v6176_v36 }
 0x138   : > { %v6115_v61 = vpop.f32.mrf.mxu0  ;;  %v6179_v3 = vpop.f32.mrf.mxu1 }
 0x139   : > { %v7929_v39 = vadd.f32 %v6114_v7, %v7888_v55  ;;  %v7932_v44 = vadd.f32 %v6178_v1, %v7880_v8 }
 0x13a   : > { %v6116_v33 = vpop.f32.mrf.mxu0  ;;  %v6180_v40 = vpop.f32.mrf.mxu1 }
 0x13b   : > { %v6117_v27 = vadd.f32 %v6116_v33, %v6115_v61  ;;  %v6181_v35 = vadd.f32 %v6180_v40, %v6179_v3 }
 0x13c   : > { %v6118_v59 = vpop.f32.mrf.mxu0  ;;  %v6182_v38 = vpop.f32.mrf.mxu1 }
 0x13d   : > { %v7935_v4 = vadd.f32 %v7882_v17, %v6117_v27  ;;  %v7940_v55 = vadd.f32 %v6181_v35, %v7884_v54 }
 0x13e   : > { %v6119_v51 = vpop.f32.mrf.mxu0  ;;  %v6183_v16 = vpop.f32.mrf.mxu1 }
 0x13f   : > { %v6120_v62 = vadd.f32 %v6119_v51, %v6118_v59  ;;  %v6184_v18 = vadd.f32 %v6183_v16, %v6182_v38 }
 0x140   : > { %v7937_v11 = vpop.f32.mrf.mxu0  ;;  %v6185_v46 = vpop.f32.mrf.mxu1 }
 0x141   : > { %v7943_v13 = vadd.f32 %v7886_v58, %v6120_v62  ;;  %v7950_v2 = vadd.f32 %v6184_v18, %v7890_v56 }
 0x142   : > { %v7945_v8 = vpop.f32.mrf.mxu0  ;;  %v6186_v22 = vpop.f32.mrf.mxu1 }
 0x143   : > { %v6187_v5 = vadd.f32 %v6186_v22, %v6185_v46 }
 0x144   : > { %v7947_v17 = vpop.f32.mrf.mxu0  ;;  %v6188_v15 = vpop.f32.mrf.mxu1 }
 0x145   : > { %v1614_v58 = vadd.f32 %v6187_v5, %v7892_v37 }
 0x146   : > { %v7952_v23 = vpop.f32.mrf.mxu0  ;;  %v6189_v60 = vpop.f32.mrf.mxu1 }
 0x147   : > { %v6190_v6 = vadd.f32 %v6189_v60, %v6188_v15 }
 0x148   : > { %v7954_v54 = vpop.f32.mrf.mxu0  ;;  %v6191_v12 = vpop.f32.mrf.mxu1 }
 0x149   : > { %v1617_v42 = vadd.f32 %v6190_v6, %v7897_v50 }
 0x14a   : > { %v7957_v32 = vpop.f32.mrf.mxu0  ;;  %v6192_v56 = vpop.f32.mrf.mxu1 }
 0x14b   : > { %v6193_v45 = vadd.f32 %v6192_v56, %v6191_v12 }
 0x14c   : > { %v7959_v34 = vpop.f32.mrf.mxu0  ;;  %v6194_v30 = vpop.f32.mrf.mxu1 }
 0x14d   : > { %v1622_v28 = vadd.f32 %v6193_v45, %v7902_v10 }
 0x14e   : > { %v7962_v9 = vpop.f32.mrf.mxu0  ;;  %v6195_v48 = vpop.f32.mrf.mxu1 }
 0x14f   : > { %v6196_v37 = vadd.f32 %v6195_v48, %v6194_v30 }
 0x150   : > { %v6629_v31 = vpop.f32.mrf.mxu0  ;;  %v6197_v57 = vpop.f32.mrf.mxu1 }
 0x151   : > { %v7965_v47 = vadd.f32 %v6629_v31, %v1614_v58  ;;  %v1625_v14 = vadd.f32 %v6196_v37, %v7907_v21 }
 0x152   : > { %v7967_v49 = vpop.f32.mrf.mxu0  ;;  %v6198_v36 = vpop.f32.mrf.mxu1 }
 0x153   : > { %v6199_v7 = vadd.f32 %v6198_v36, %v6197_v57 }
 0x154   : > { %v6630_v63 = vpop.f32.mrf.mxu0  ;;  %v6200_v53 = vpop.f32.mrf.mxu1 }
 0x155   : > { %v7970_v50 = vadd.f32 %v6630_v63, %v1617_v42  ;;  %v1630_v1 = vadd.f32 %v6199_v7, %v7912_v41 }
 0x156   : > { %v7972_v61 = vpop.f32.mrf.mxu0  ;;  %v6201_v33 = vpop.f32.mrf.mxu1 }
 0x157   : > { %v6202_v3 = vadd.f32 %v6201_v33, %v6200_v53 }
 0x158   : > { %v6633_v10 = vpop.f32.mrf.mxu0  ;;  %v6203_v40 = vpop.f32.mrf.mxu1 }
 0x159   : > { %v7975_v27 = vadd.f32 %v6633_v10, %v1630_v1  ;;  %v1633_v21 = vadd.f32 %v6202_v3, %v7918_v20  ;;  %v1687_v10 = vadd.f32 %v7945_v8, %v7895_v24 }
 0x15a   : > { %v1734_v59 = vpop.f32.mrf.mxu0  ;;  %v6204_v38 = vpop.f32.mrf.mxu1 }
 0x15b   : > { %v7977_v35 = vadd.f32 %v1734_v59, %v1622_v28  ;;  %v6205_v62 = vadd.f32 %v6204_v38, %v6203_v40 }
 0x15c   : > { %v6634_v51 = vpop.f32.mrf.mxu0  ;;  %v6206_v46 = vpop.f32.mrf.mxu1 }
 0x15d   : > { %v7980_v16 = vadd.f32 %v6634_v51, %v1633_v21  ;;  %v1638_v5 = vadd.f32 %v6205_v62, %v7923_v52 }
 0x15e   : > { %v1737_v18 = vpop.f32.mrf.mxu0  ;;  %v6207_v15 = vpop.f32.mrf.mxu1 }
 0x15f   : > { %v7982_v22 = vadd.f32 %v1737_v18, %v1625_v14  ;;  %v6208_v58 = vadd.f32 %v6207_v15, %v6206_v46 }
 0x160   : > { %v6637_v41 = vpop.f32.mrf.mxu0  ;;  %v6209_v6 = vpop.f32.mrf.mxu1 }
 0x161   : > { %v1641_v20 = vadd.f32 %v6208_v58, %v7929_v39 }
 0x162   : > { %v1750_v60 = vpop.f32.mrf.mxu0  ;;  %v6210_v56 = vpop.f32.mrf.mxu1 }
 0x163   : > { %v7985_v12 = vadd.f32 %v1750_v60, %v1638_v5  ;;  %v6211_v45 = vadd.f32 %v6210_v56, %v6209_v6  ;;  %v1695_v60 = vadd.f32 %v7937_v11, %v7905_v19 }
 0x164   : > { %v6638_v42 = vpop.f32.mrf.mxu0  ;;  %v6212_v31 = vpop.f32.mrf.mxu1 }
 0x165   : > { %v1646_v48 = vadd.f32 %v6211_v45, %v7935_v4  ;;  %v8001_v4 = vld [vmem:[%s9077_s3] ss:$0 sm:$0xff] }
 0x166   : > { %v1753_v30 = vpop.f32.mrf.mxu0  ;;  %v6213_v57 = vpop.f32.mrf.mxu1 }
 0x167   : > { %v7988_v28 = vadd.f32 %v1753_v30, %v1641_v20  ;;  %v7991_v52 = vadd.f32 %v6637_v41, %v1646_v48  ;;  %v6214_v63 = vadd.f32 %v6213_v57, %v6212_v31 }
 0x168   : > { %v6249_v37 = vpop.f32.mrf.mxu0  ;;  %v6657_v7 = vpop.f32.mrf.mxu1 }
 0x169   : > { %v1649_v53 = vadd.f32 %v6214_v63, %v7943_v13  ;;  %v1690_v13 = vadd.f32 %v7952_v23, %v7900_v25 }
 0x16a   : > { %v6250_v14 = vpop.f32.mrf.mxu0  ;;  %v2436_v39 = vpop.f32.mrf.mxu1 }
 0x16b   : > { %v6251_v36 = vadd.f32 %v6250_v14, %v6249_v37  ;;  %v7996_v33 = vadd.f32 %v6638_v42, %v1649_v53  ;;  %v1698_v37 = vadd.f32 %v7947_v17, %v7910_v26  ;;  %v2848_v53 = vld [vmem:[#allocation2] sm:$0xf] }
 0x16c   : > { %v6252_v1 = vpop.f32.mrf.mxu0  ;;  %v6658_v21 = vpop.f32.mrf.mxu1 }
 0x16d   : > { %v2437_v3 = vadd.f32 %v6251_v36, %v2436_v39 }
 0x16e   : > { %v6253_v59 = vpop.f32.mrf.mxu0  ;;  %v2439_v62 = vpop.f32.mrf.mxu1 }
 0x16f   : > { %v6254_v40 = vadd.f32 %v6253_v59, %v6252_v1  ;;  %v2515_v51 = vadd.f32 %v2437_v3, %v1687_v10 }
 0x170   : > { %v6255_v38 = vpop.f32.mrf.mxu0  ;;  %v8006_v41 = vpop.f32.mrf.mxu1 }
 0x171   : > { %v2542_v18 = vadd.f32 %v8001_v4, %v2515_v51  ;;  %v2440_v24 = vadd.f32 %v6254_v40, %v2439_v62  ;;  %v1703_v40 = vadd.f32 %v7957_v32, %v7915_v43  ;;  %v2854_v32 = vld [vmem:[#allocation2 + $0x8] sm:$0x1] }
 0x172   : > { %v6256_v8 = vpop.f32.mrf.mxu0  ;;  %v2452_v23 = vpop.f32.mrf.mxu1 }
 0x173   : > { %v6257_v46 = vadd.f32 %v6256_v8, %v6255_v38  ;;  %v2562_v5 = vmax.f32 %v2542_v18, 0.0  ;;  %v2516_v15 = vadd.f32 %v2440_v24, %v1690_v13 }
 0x174   : > { %v6258_v58 = vpop.f32.mrf.mxu0  ;;  %v8019_v3 = vpop.f32.mrf.mxu1 }
 0x175   : > { %v2445_v6 = vadd.f32 %v6657_v7, %v6257_v46  ;;  %v6025_v42 = vpack.c.bf16 %v2562_v5, %v2562_v5  ;;  %v2543_v20 = vadd.f32 %v8001_v4, %v2516_v15 }
 0x176   : > { %v6259_v56 = vpop.f32.mrf.mxu0 }
 0x177   : > { %v2517_v45 = vadd.f32 %v2445_v6, %v1695_v60  ;;  %v6260_v25 = vadd.f32 %v6259_v56, %v6258_v58  ;;  %v2646_v30 = vshrl.u32 %v6025_v42, 16  ;;  %v2563_v31 = vmax.f32 %v2543_v20, 0.0  ;;  %v2455_v58 = vpop.f32.mrf.mxu1 }
 0x178   : > { %v6261_v48 = vpop.f32.mrf.mxu0  ;;  %v2649_v11 = vshll.u32 %v6025_v42, 16 }
 0x179   : > { %v2544_v57 = vadd.f32 %v8001_v4, %v2517_v45  ;;  %v2448_v63 = vadd.f32 %v6658_v21, %v6260_v25  ;;  %v2648_v19 = vrot.slane %v2646_v30, 7  ;;  %v6026_v14 = vpack.c.bf16 %v2563_v31, %v2563_v31 }
 0x17a   : > { %v6262_v36 = vpop.f32.mrf.mxu0  ;;  %v1706_v31 = vadd.f32 %v7962_v9, %v7921_v29  ;;  %v1711_v29 = vadd.f32 %v7954_v54, %v7926_v0 }
 0x17b   : > { %v2564_v1 = vmax.f32 %v2544_v57, 0.0  ;;  %v2518_v39 = vadd.f32 %v2448_v63, %v1698_v37  ;;  %v6263_v10 = vadd.f32 %v6262_v36, %v6261_v48  ;;  %v2651_v26 = vor.u32 %v2649_v11, %v2648_v19  ;;  %v2857_v57 = vld [vmem:[#allocation2 + $0xc] sm:$0xf]  ;;  %v8044_v36 = vpop.f32.mrf.mxu1 }
 0x17c   : > { %v2654_v17 = vshrl.u32 %v6026_v14, 16  ;;  %v6264_v59 = vpop.f32.mrf.mxu0  ;;  %v2657_v24 = vshll.u32 %v6026_v14, 16  ;;  %v2652_v60 = vrot.slane %v2648_v19, 4 }
 0x17d   : > { %v6027_v21 = vpack.c.bf16 %v2564_v1, %v2564_v1  ;;  %v2545_v51 = vadd.f32 %v8001_v4, %v2518_v39  ;;  %v2453_v38 = vadd.f32 %v6263_v10, %v2452_v23  ;;  %v2849_v62 = vsel %vm8015_vm5, %v2651_v26, %v2848_v53 }
 0x17e   : > { %v2656_v18 = vrot.slane %v2654_v17, 7  ;;  %v6265_v8 = vpop.f32.mrf.mxu0  ;;  %2850 = vst [vmem:[#allocation2] sm:$0xf] %v2849_v62 }
 0x17f   : > { %v2663_v46 = vshrl.u32 %v6027_v21, 16  ;;  %v2565_v5 = vmax.f32 %v2545_v51, 0.0  ;;  %v2519_v15 = vadd.f32 %v2453_v38, %v1703_v40  ;;  %v6266_v20 = vadd.f32 %v6265_v8, %v6264_v59 }
 0x180   : > { %v2659_v6 = vor.u32 %v2657_v24, %v2656_v18  ;;  %v2661_v42 = vrot.slane %v2656_v18, 4  ;;  %v6267_v56 = vpop.f32.mrf.mxu0  ;;  %v2666_v25 = vshll.u32 %v6027_v21, 16  ;;  %v2861_v21 = vld [vmem:[#allocation2 + $0x14] sm:$0x1] }
 0x181   : > { %v2665_v45 = vrot.slane %v2663_v46, 7  ;;  %v6028_v23 = vpack.c.bf16 %v2565_v5, %v2565_v5  ;;  %v2546_v30 = vadd.f32 %v8001_v4, %v2519_v15  ;;  %v2456_v63 = vadd.f32 %v6266_v20, %v2455_v58 }
 0x182   : > { %v2660_v48 = vsel %vm8033_vm9, %v2652_v60, %v2659_v6  ;;  %v2855_v37 = vsel %vm8028_vm8, %v2661_v42, %v2854_v32  ;;  %v6268_v19 = vpop.f32.mrf.mxu0  ;;  %v2468_v32 = vpop.f32.mrf.mxu1 }
 0x183   : > { %2851 = vst [vmem:[#allocation2 + $0x4] sm:$0xf] %v2660_v48  ;;  %2856 = vst [vmem:[#allocation2 + $0x8] sm:$0x1] %v2855_v37  ;;  %v2668_v11 = vor.u32 %v2666_v25, %v2665_v45  ;;  %v2671_v14 = vshrl.u32 %v6028_v23, 16  ;;  %v2566_v53 = vmax.f32 %v2546_v30, 0.0  ;;  %v2520_v1 = vadd.f32 %v2456_v63, %v1706_v31 }
 0x184   : > { %v6269_v39 = vadd.f32 %v6268_v19, %v6267_v56  ;;  %v6270_v10 = vpop.f32.mrf.mxu0  ;;  %v2674_v17 = vshll.u32 %v6028_v23, 16  ;;  %v2669_v40 = vrot.slane %v2665_v45, 4 }
 0x185   : > { %v2858_v9 = vsel %vm8015_vm5, %v2668_v11, %v2857_v57  ;;  %v2673_v26 = vrot.slane %v2671_v14, 7  ;;  %v2920_v59 = vld [vmem:[#allocation2] sm:$0x1]  ;;  %v6029_v51 = vpack.c.bf16 %v2566_v53, %v2566_v53  ;;  %v2547_v38 = vadd.f32 %v8001_v4, %v2520_v1  ;;  %v8070_v57 = vpop.f32.mrf.mxu1 }
 0x186   : > { %2859 = vst [vmem:[#allocation2 + $0xc] sm:$0xf] %v2858_v9  ;;  %v2461_v62 = vadd.f32 %v8006_v41, %v6269_v39  ;;  %v6271_v18 = vpop.f32.mrf.mxu0  ;;  %v2921_v24 = vsel %vm8028_vm8, 0, %v2920_v59  ;;  %v1714_v41 = vadd.f32 %v7959_v34, %v7932_v44  ;;  %v2864_v34 = vld [vmem:[#allocation2 + $0x18] sm:$0xf]  ;;  %v1719_v11 = vadd.f32 %v7967_v49, %v7940_v55 }
 0x187   : > { %v2676_v8 = vor.u32 %v2674_v17, %v2673_v26  ;;  %v2678_v0 = vrot.slane %v2673_v26, 4  ;;  %v6272_v54 = vadd.f32 %v6271_v18, %v6270_v10  ;;  %2922 = vst [vmem:[#allocation2] sm:$0x1] %v2921_v24  ;;  %v2680_v5 = vshrl.u32 %v6029_v51, 16  ;;  %v2868_v59 = vld [vmem:[#allocation2 + $0x20] sm:$0x1] }
 0x188   : > { %v2567_v15 = vmax.f32 %v2547_v38, 0.0  ;;  %v2521_v58 = vadd.f32 %v2461_v62, %v1711_v29  ;;  %v6273_v60 = vpop.f32.mrf.mxu0  ;;  %v2683_v25 = vshll.u32 %v6029_v51, 16  ;;  %v2471_v51 = vpop.f32.mrf.mxu1 }
 0x189   : > { %v2677_v6 = vsel %vm8033_vm9, %v2669_v40, %v2676_v8  ;;  %v2862_v42 = vsel %vm8028_vm8, %v2678_v0, %v2861_v21  ;;  %v2464_v20 = vadd.f32 %v8019_v3, %v6272_v54  ;;  %v2682_v45 = vrot.slane %v2680_v5, 7 }
 0x18a   : > { %v2951_v56 = vld [vmem:[#allocation2 + $0x8] sm:$0x1]  ;;  %2860 = vst [vmem:[#allocation2 + $0x10] sm:$0xf] %v2677_v6  ;;  %2863 = vst [vmem:[#allocation2 + $0x14] sm:$0x1] %v2862_v42  ;;  %v6030_v23 = vpack.c.bf16 %v2567_v15, %v2567_v15  ;;  %v2548_v30 = vadd.f32 %v8001_v4, %v2521_v58  ;;  %v6274_v31 = vpop.f32.mrf.mxu0  ;;  %v1722_v8 = vadd.f32 %v7972_v61, %v7950_v2 }
 0x18b   : > { %v2952_v44 = vsel %vm8056_vm10, 0, %v2951_v56  ;;  %v2522_v48 = vadd.f32 %v2464_v20, %v1714_v41  ;;  %v6275_v37 = vadd.f32 %v6274_v31, %v6273_v60  ;;  %v2685_v63 = vor.u32 %v2683_v25, %v2682_v45  ;;  %v8088_v56 = vpop.f32.mrf.mxu1 }
 0x18c   : > { %2953 = vst [vmem:[#allocation2 + $0x8] sm:$0x1] %v2952_v44  ;;  %v2688_v3 = vshrl.u32 %v6030_v23, 16  ;;  %v6276_v19 = vpop.f32.mrf.mxu0  ;;  %v2568_v53 = vmax.f32 %v2548_v30, 0.0  ;;  %v2691_v26 = vshll.u32 %v6030_v23, 16  ;;  %v2686_v38 = vrot.slane %v2682_v45, 4 }
 0x18d   : > { %v2923_v14 = vld [vmem:[#allocation2 + $0xc] sm:$0x1]  ;;  %v2549_v1 = vadd.f32 %v8001_v4, %v2522_v48  ;;  %v2469_v39 = vadd.f32 %v6275_v37, %v2468_v32  ;;  %v2865_v29 = vsel %vm8015_vm5, %v2685_v63, %v2864_v34  ;;  %v2871_v45 = vld [vmem:[#allocation2 + $0x24] sm:$0xf] }
 0x18e   : > { %v2924_v10 = vsel %vm8028_vm8, 0, %v2923_v14  ;;  %v2690_v9 = vrot.slane %v2688_v3, 7  ;;  %v6277_v17 = vpop.f32.mrf.mxu0  ;;  %2866 = vst [vmem:[#allocation2 + $0x18] sm:$0xf] %v2865_v29  ;;  %v6031_v40 = vpack.c.bf16 %v2568_v53, %v2568_v53  ;;  %v2875_v3 = vld [vmem:[#allocation2 + $0x2c] sm:$0x1]  ;;  %v2484_v29 = vpop.f32.mrf.mxu1 }
 0x18f   : > { %2925 = vst [vmem:[#allocation2 + $0xc] sm:$0x1] %v2924_v10  ;;  %v2569_v21 = vmax.f32 %v2549_v1, 0.0  ;;  %v2523_v55 = vadd.f32 %v2469_v39, %v1719_v11  ;;  %v6278_v49 = vadd.f32 %v6277_v17, %v6276_v19 }
 0x190   : > { %v2693_v62 = vor.u32 %v2691_v26, %v2690_v9  ;;  %v2695_v18 = vrot.slane %v2690_v9, 4  ;;  %v6279_v24 = vpop.f32.mrf.mxu0  ;;  %v2697_v54 = vshrl.u32 %v6031_v40, 16  ;;  %v2700_v61 = vshll.u32 %v6031_v40, 16 }
 0x191   : > { %v2954_v0 = vld [vmem:[#allocation2 + $0x14] sm:$0x1]  ;;  %v6032_v32 = vpack.c.bf16 %v2569_v21, %v2569_v21  ;;  %v2550_v5 = vadd.f32 %v8001_v4, %v2523_v55  ;;  %v2472_v41 = vadd.f32 %v6278_v49, %v2471_v51 }
 0x192   : > { %v2955_v15 = vsel %vm8056_vm10, 0, %v2954_v0  ;;  %v2694_v58 = vsel %vm8033_vm9, %v2686_v38, %v2693_v62  ;;  %v2869_v60 = vsel %vm8028_vm8, %v2695_v18, %v2868_v59  ;;  %v6280_v6 = vpop.f32.mrf.mxu0  ;;  %v2699_v2 = vrot.slane %v2697_v54, 7  ;;  %v8105_v54 = vpop.f32.mrf.mxu1 }
 0x193   : > { %2956 = vst [vmem:[#allocation2 + $0x14] sm:$0x1] %v2955_v15  ;;  %2867 = vst [vmem:[#allocation2 + $0x1c] sm:$0xf] %v2694_v58  ;;  %v2705_v42 = vshrl.u32 %v6032_v32, 16  ;;  %v2570_v20 = vmax.f32 %v2550_v5, 0.0  ;;  %v2524_v25 = vadd.f32 %v2472_v41, %v1722_v8  ;;  %v6281_v23 = vadd.f32 %v6280_v6, %v6279_v24 }
 0x194   : > { %2870 = vst [vmem:[#allocation2 + $0x20] sm:$0x1] %v2869_v60  ;;  %v6282_v30 = vpop.f32.mrf.mxu0  ;;  %v2702_v31 = vor.u32 %v2700_v61, %v2699_v2  ;;  %v2708_v34 = vshll.u32 %v6032_v32, 16  ;;  %v2703_v63 = vrot.slane %v2699_v2, 4  ;;  %v2878_v24 = vld [vmem:[#allocation2 + $0x30] sm:$0xf] }
 0x195   : > { %v2707_v44 = vrot.slane %v2705_v42, 7  ;;  %v6033_v48 = vpack.c.bf16 %v2570_v20, %v2570_v20  ;;  %v2926_v37 = vld [vmem:[#allocation2 + $0x18] sm:$0x1]  ;;  %v2551_v19 = vadd.f32 %v8001_v4, %v2524_v25  ;;  %v2477_v11 = vadd.f32 %v8044_v36, %v6281_v23 }
 0x196   : > { %v6283_v14 = vpop.f32.mrf.mxu0  ;;  %v2927_v53 = vsel %vm8028_vm8, 0, %v2926_v37  ;;  %v2872_v1 = vsel %vm8015_vm5, %v2702_v31, %v2871_v45  ;;  %v2487_v31 = vpop.f32.mrf.mxu1 }
 0x197   : > { %v2710_v39 = vor.u32 %v2708_v34, %v2707_v44  ;;  %v2712_v10 = vrot.slane %v2707_v44, 4  ;;  %2928 = vst [vmem:[#allocation2 + $0x18] sm:$0x1] %v2927_v53  ;;  %2873 = vst [vmem:[#allocation2 + $0x24] sm:$0xf] %v2872_v1  ;;  %v2714_v9 = vshrl.u32 %v6033_v48, 16  ;;  %v2525_v17 = vadd.f32 %v2477_v11, %v7965_v47 }
 0x198   : > { %v2571_v26 = vmax.f32 %v2551_v19, 0.0  ;;  %v6285_v59 = vpop.f32.mrf.mxu0  ;;  %v6284_v21 = vadd.f32 %v6283_v14, %v6282_v30  ;;  %v2717_v51 = vshll.u32 %v6033_v48, 16 }
 0x199   : > { %v2711_v36 = vsel %vm8033_vm9, %v2703_v63, %v2710_v39  ;;  %v2876_v40 = vsel %vm8028_vm8, %v2712_v10, %v2875_v3  ;;  %v2716_v49 = vrot.slane %v2714_v9, 7  ;;  %v2552_v62 = vadd.f32 %v8001_v4, %v2525_v17 }
 0x19a   : > { %2874 = vst [vmem:[#allocation2 + $0x28] sm:$0xf] %v2711_v36  ;;  %2877 = vst [vmem:[#allocation2 + $0x2c] sm:$0x1] %v2876_v40  ;;  %v6034_v38 = vpack.c.bf16 %v2571_v26, %v2571_v26  ;;  %v6286_v18 = vpop.f32.mrf.mxu0  ;;  %v2480_v8 = vadd.f32 %v8070_v57, %v6284_v21  ;;  %v2882_v57 = vld [vmem:[#allocation2 + $0x38] sm:$0x1] }
 0x19b   : > { %v2957_v55 = vld [vmem:[#allocation2 + $0x20] sm:$0x1]  ;;  %v6287_v0 = vadd.f32 %v6286_v18, %v6285_v59  ;;  %v2719_v32 = vor.u32 %v2717_v51, %v2716_v49  ;;  %v2572_v58 = vmax.f32 %v2552_v62, 0.0  ;;  %v2720_v44 = vrot.slane %v2716_v49, 4  ;;  %v8121_v59 = vpop.f32.mrf.mxu1  ;;  %v2885_v36 = vld [vmem:[#allocation2 + $0x3c] sm:$0xf] }
 0x19c   : > { %v2958_v47 = vsel %vm8056_vm10, 0, %v2957_v55  ;;  %v2722_v5 = vshrl.u32 %v6034_v38, 16  ;;  %v6288_v15 = vpop.f32.mrf.mxu0  ;;  %v2526_v60 = vadd.f32 %v2480_v8, %v7970_v50  ;;  %v2725_v61 = vshll.u32 %v6034_v38, 16 }
 0x19d   : > { %2959 = vst [vmem:[#allocation2 + $0x20] sm:$0x1] %v2958_v47  ;;  %v2485_v41 = vadd.f32 %v6287_v0, %v2484_v29  ;;  %v2879_v6 = vsel %vm8015_vm5, %v2719_v32, %v2878_v24  ;;  %v6035_v45 = vpack.c.bf16 %v2572_v58, %v2572_v58 }
 0x19e   : > { %v2724_v2 = vrot.slane %v2722_v5, 7  ;;  %v6289_v42 = vpop.f32.mrf.mxu0  ;;  %v2929_v20 = vld [vmem:[#allocation2 + $0x24] sm:$0x1]  ;;  %2880 = vst [vmem:[#allocation2 + $0x30] sm:$0xf] %v2879_v6  ;;  %v2553_v25 = vadd.f32 %v8001_v4, %v2526_v60 }
 0x19f   : > { %v2527_v23 = vadd.f32 %v2485_v41, %v7977_v35  ;;  %v6290_v30 = vadd.f32 %v6289_v42, %v6288_v15  ;;  %v2930_v50 = vsel %vm8028_vm8, 0, %v2929_v20  ;;  %v2731_v3 = vshrl.u32 %v6035_v45, 16  ;;  %v2889_v15 = vld [vmem:[#allocation2 + $0x44] sm:$0x1] }
 0x1a0   : > { %v2727_v34 = vor.u32 %v2725_v61, %v2724_v2  ;;  %v2729_v48 = vrot.slane %v2724_v2, 4  ;;  %v6291_v37 = vpop.f32.mrf.mxu0  ;;  %2931 = vst [vmem:[#allocation2 + $0x24] sm:$0x1] %v2930_v50  ;;  %v2734_v19 = vshll.u32 %v6035_v45, 16  ;;  %v2573_v11 = vmax.f32 %v2553_v25, 0.0 }
 0x1a1   : > { %v2960_v63 = vld [vmem:[#allocation2 + $0x2c] sm:$0x1]  ;;  %v2554_v14 = vadd.f32 %v8001_v4, %v2527_v23  ;;  %v2488_v39 = vadd.f32 %v6290_v30, %v2487_v31  ;;  %v2733_v29 = vrot.slane %v2731_v3, 7 }
 0x1a2   : > { %v2961_v53 = vsel %vm8056_vm10, 0, %v2960_v63  ;;  %v2728_v35 = vsel %vm8033_vm9, %v2720_v44, %v2727_v34  ;;  %v2883_v1 = vsel %vm8028_vm8, %v2729_v48, %v2882_v57  ;;  %v6292_v10 = vpop.f32.mrf.mxu0  ;;  %v6036_v9 = vpack.c.bf16 %v2573_v11, %v2573_v11  ;;  %v2892_v44 = vld [vmem:[#allocation2 + $0x48] sm:$0xf] }
 0x1a3   : > { %2962 = vst [vmem:[#allocation2 + $0x2c] sm:$0x1] %v2961_v53  ;;  %2881 = vst [vmem:[#allocation2 + $0x34] sm:$0xf] %v2728_v35  ;;  %v2574_v26 = vmax.f32 %v2554_v14, 0.0  ;;  %v6293_v17 = vadd.f32 %v6292_v10, %v6291_v37  ;;  %v2528_v40 = vadd.f32 %v2488_v39, %v7982_v22  ;;  %v2736_v55 = vor.u32 %v2734_v19, %v2733_v29  ;;  %v2500_v22 = vpop.f32.mrf.mxu1 }
 0x1a4   : > { %2884 = vst [vmem:[#allocation2 + $0x38] sm:$0x1] %v2883_v1  ;;  %v6294_v21 = vpop.f32.mrf.mxu0  ;;  %v2739_v49 = vshrl.u32 %v6036_v9, 16  ;;  %v2742_v38 = vshll.u32 %v6036_v9, 16  ;;  %v2737_v2 = vrot.slane %v2733_v29, 4 }
 0x1a5   : > { %v2932_v51 = vld [vmem:[#allocation2 + $0x30] sm:$0x1]  ;;  %v6037_v62 = vpack.c.bf16 %v2574_v26, %v2574_v26  ;;  %v2555_v18 = vadd.f32 %v8001_v4, %v2528_v40  ;;  %v2493_v47 = vadd.f32 %v8088_v56, %v6293_v17  ;;  %v2886_v0 = vsel %vm8015_vm5, %v2736_v55, %v2885_v36 }
 0x1a6   : > { %v6295_v24 = vpop.f32.mrf.mxu0  ;;  %v2933_v8 = vsel %vm8028_vm8, 0, %v2932_v51  ;;  %v2741_v32 = vrot.slane %v2739_v49, 7  ;;  %2887 = vst [vmem:[#allocation2 + $0x3c] sm:$0xf] %v2886_v0 }
 0x1a7   : > { %v6296_v5 = vadd.f32 %v6295_v24, %v6294_v21  ;;  %2934 = vst [vmem:[#allocation2 + $0x30] sm:$0x1] %v2933_v8  ;;  %v2748_v58 = vshrl.u32 %v6037_v62, 16  ;;  %v2575_v60 = vmax.f32 %v2555_v18, 0.0  ;;  %v2529_v41 = vadd.f32 %v2493_v47, %v7975_v27 }
 0x1a8   : > { %v6297_v6 = vpop.f32.mrf.mxu0  ;;  %v2744_v56 = vor.u32 %v2742_v38, %v2741_v32  ;;  %v2746_v61 = vrot.slane %v2741_v32, 4  ;;  %v2751_v45 = vshll.u32 %v6037_v62, 16 }
 0x1a9   : > { %v2496_v42 = vadd.f32 %v8105_v54, %v6296_v5  ;;  %v2750_v57 = vrot.slane %v2748_v58, 7  ;;  %v6038_v25 = vpack.c.bf16 %v2575_v60, %v2575_v60  ;;  %v2556_v23 = vadd.f32 %v8001_v4, %v2529_v41  ;;  %v8140_v54 = vpop.f32.mrf.mxu1 }
 0x1aa   : > { %v6298_v30 = vpop.f32.mrf.mxu0  ;;  %v2745_v50 = vsel %vm8033_vm9, %v2737_v2, %v2744_v56  ;;  %v2890_v27 = vsel %vm8028_vm8, %v2746_v61, %v2889_v15 }
 0x1ab   : > { %v2963_v20 = vld [vmem:[#allocation2 + $0x38] sm:$0x1]  ;;  %v2530_v34 = vadd.f32 %v2496_v42, %v7980_v16  ;;  %2888 = vst [vmem:[#allocation2 + $0x40] sm:$0xf] %v2745_v50  ;;  %2891 = vst [vmem:[#allocation2 + $0x44] sm:$0x1] %v2890_v27  ;;  %v2753_v48 = vor.u32 %v2751_v45, %v2750_v57  ;;  %v6299_v11 = vadd.f32 %v6298_v30, %v6297_v6  ;;  %v2503_v17 = vpop.f32.mrf.mxu1 }
 0x1ac   : > { %v2964_v31 = vsel %vm8056_vm10, 0, %v2963_v20  ;;  %v2756_v37 = vshrl.u32 %v6038_v25, 16  ;;  %v6300_v63 = vpop.f32.mrf.mxu0  ;;  %v2576_v3 = vmax.f32 %v2556_v23, 0.0  ;;  %v2759_v35 = vshll.u32 %v6038_v25, 16  ;;  %v2896_v16 = vld [vmem:[#allocation2 + $0x50] sm:$0x1] }
 0x1ad   : > { %2965 = vst [vmem:[#allocation2 + $0x38] sm:$0x1] %v2964_v31  ;;  %v2557_v19 = vadd.f32 %v8001_v4, %v2530_v34  ;;  %v2893_v14 = vsel %vm8015_vm5, %v2753_v48, %v2892_v44  ;;  %v2935_v39 = vld [vmem:[#allocation2 + $0x3c] sm:$0x1]  ;;  %v2501_v9 = vadd.f32 %v6299_v11, %v2500_v22  ;;  %v2754_v40 = vrot.slane %v2750_v57, 4 }
 0x1ae   : > { %v2758_v53 = vrot.slane %v2756_v37, 7  ;;  %v6301_v1 = vpop.f32.mrf.mxu0  ;;  %2894 = vst [vmem:[#allocation2 + $0x48] sm:$0xf] %v2893_v14  ;;  %v6039_v10 = vpack.c.bf16 %v2576_v3, %v2576_v3  ;;  %v2936_v36 = vsel %vm8028_vm8, 0, %v2935_v39  ;;  %v2903_v45 = vld [vmem:[#allocation2 + $0x5c] sm:$0x1] }
 0x1af   : > { %v2577_v29 = vmax.f32 %v2557_v19, 0.0  ;;  %v6302_v26 = vadd.f32 %v6301_v1, %v6300_v63  ;;  %2937 = vst [vmem:[#allocation2 + $0x3c] sm:$0x1] %v2936_v36  ;;  %v2531_v62 = vadd.f32 %v2501_v9, %v7985_v12  ;;  %v2899_v12 = vld [vmem:[#allocation2 + $0x54] sm:$0xf] }
 0x1b0   : > { %v2761_v21 = vor.u32 %v2759_v35, %v2758_v53  ;;  %v2763_v55 = vrot.slane %v2758_v53, 4  ;;  %v6303_v49 = vpop.f32.mrf.mxu0  ;;  %v2765_v51 = vshrl.u32 %v6039_v10, 16  ;;  %v2768_v5 = vshll.u32 %v6039_v10, 16  ;;  %v2906_v10 = vld [vmem:[#allocation2 + $0x60] sm:$0xf] }
 0x1b1   : > { %v6040_v38 = vpack.c.bf16 %v2577_v29, %v2577_v29  ;;  %v2504_v24 = vadd.f32 %v6302_v26, %v2503_v17  ;;  %v2558_v15 = vadd.f32 %v8001_v4, %v2531_v62 }
 0x1b2   : > { %v2762_v18 = vsel %vm8033_vm9, %v2754_v40, %v2761_v21  ;;  %v2897_v47 = vsel %vm8028_vm8, %v2763_v55, %v2896_v16  ;;  %v6304_v8 = vpop.f32.mrf.mxu0  ;;  %v2966_v0 = vld [vmem:[#allocation2 + $0x44] sm:$0x1]  ;;  %v2767_v32 = vrot.slane %v2765_v51, 7  ;;  %v2910_v55 = vld [vmem:[#allocation2 + $0x68] sm:$0x1] }
 0x1b3   : > { %2895 = vst [vmem:[#allocation2 + $0x4c] sm:$0xf] %v2762_v18  ;;  %2898 = vst [vmem:[#allocation2 + $0x50] sm:$0x1] %v2897_v47  ;;  %v2773_v22 = vshrl.u32 %v6040_v38, 16  ;;  %v2967_v58 = vsel %vm8056_vm10, 0, %v2966_v0  ;;  %v2532_v60 = vadd.f32 %v2504_v24, %v7988_v28  ;;  %v6305_v41 = vadd.f32 %v6304_v8, %v6303_v49 }
 0x1b4   : > { %v6306_v6 = vpop.f32.mrf.mxu0  ;;  %2968 = vst [vmem:[#allocation2 + $0x44] sm:$0x1] %v2967_v58  ;;  %v2770_v2 = vor.u32 %v2768_v5, %v2767_v32  ;;  %v2776_v61 = vshll.u32 %v6040_v38, 16  ;;  %v2578_v42 = vmax.f32 %v2558_v15, 0.0  ;;  %v2771_v57 = vrot.slane %v2767_v32, 4 }
 0x1b5   : > { %v2775_v56 = vrot.slane %v2773_v22, 7  ;;  %v2938_v20 = vld [vmem:[#allocation2 + $0x48] sm:$0x1]  ;;  %v2559_v25 = vadd.f32 %v8001_v4, %v2532_v60  ;;  %v2509_v23 = vadd.f32 %v8121_v59, %v6305_v41  ;;  %v2913_v22 = vld [vmem:[#allocation2 + $0x6c] sm:$0xf] }
 0x1b6   : > { %v6307_v30 = vpop.f32.mrf.mxu0  ;;  %v2939_v31 = vsel %vm8028_vm8, 0, %v2938_v20  ;;  %v2900_v28 = vsel %vm8015_vm5, %v2770_v2, %v2899_v12  ;;  %v6041_v44 = vpack.c.bf16 %v2578_v42, %v2578_v42  ;;  %v2917_v2 = vld [vmem:[#allocation2 + $0x74] sm:$0x1] }
 0x1b7   : > { %v2778_v50 = vor.u32 %v2776_v61, %v2775_v56  ;;  %v2780_v27 = vrot.slane %v2775_v56, 4  ;;  %2940 = vst [vmem:[#allocation2 + $0x48] sm:$0x1] %v2939_v31  ;;  %2901 = vst [vmem:[#allocation2 + $0x54] sm:$0xf] %v2900_v28  ;;  %v2579_v34 = vmax.f32 %v2559_v25, 0.0  ;;  %v2533_v48 = vadd.f32 %v2509_v23, %v7991_v52 }
 0x1b8   : > { %v6308_v37 = vadd.f32 %v6307_v30, %v6306_v6  ;;  %v2782_v19 = vshrl.u32 %v6041_v44, 16  ;;  %v2785_v1 = vshll.u32 %v6041_v44, 16 }
 0x1b9   : > { %v2779_v63 = vsel %vm8033_vm9, %v2771_v57, %v2778_v50  ;;  %v2904_v59 = vsel %vm8028_vm8, %v2780_v27, %v2903_v45  ;;  %v6042_v11 = vpack.c.bf16 %v2579_v34, %v2579_v34  ;;  %v2560_v14 = vadd.f32 %v8001_v4, %v2533_v48 }
 0x1ba   : > { %v2969_v3 = vld [vmem:[#allocation2 + $0x50] sm:$0x1]  ;;  %2902 = vst [vmem:[#allocation2 + $0x58] sm:$0xf] %v2779_v63  ;;  %2905 = vst [vmem:[#allocation2 + $0x5c] sm:$0x1] %v2904_v59  ;;  %v2512_v35 = vadd.f32 %v8140_v54, %v6308_v37 }
 0x1bb   : > { %v2970_v53 = vsel %vm8056_vm10, 0, %v2969_v3  ;;  %v2784_v52 = vrot.slane %v2782_v19, 7  ;;  %v2790_v39 = vshrl.u32 %v6042_v11, 16  ;;  %v2580_v16 = vmax.f32 %v2560_v14, 0.0 }
 0x1bc   : > { %2971 = vst [vmem:[#allocation2 + $0x50] sm:$0x1] %v2970_v53  ;;  %v2534_v29 = vadd.f32 %v2512_v35, %v7996_v33  ;;  %v2793_v17 = vshll.u32 %v6042_v11, 16 }
 0x1bd   : > { %v2787_v9 = vor.u32 %v2785_v1, %v2784_v52  ;;  %v2792_v26 = vrot.slane %v2790_v39, 7  ;;  %v6043_v36 = vpack.c.bf16 %v2580_v16, %v2580_v16  ;;  %v2788_v21 = vrot.slane %v2784_v52, 4 }
 0x1be   : > { %v2941_v40 = vld [vmem:[#allocation2 + $0x54] sm:$0x1]  ;;  %v2561_v49 = vadd.f32 %v8001_v4, %v2534_v29 }
 0x1bf   : > { %v2942_v54 = vsel %vm8028_vm8, 0, %v2941_v40  ;;  %v2907_v51 = vsel %vm8015_vm5, %v2787_v9, %v2906_v10  ;;  %v2795_v38 = vor.u32 %v2793_v17, %v2792_v26  ;;  %v2797_v62 = vrot.slane %v2792_v26, 4 }
 0x1c0   : > { %2943 = vst [vmem:[#allocation2 + $0x54] sm:$0x1] %v2942_v54  ;;  %2908 = vst [vmem:[#allocation2 + $0x60] sm:$0xf] %v2907_v51  ;;  %v2799_v33 = vshrl.u32 %v6043_v36, 16  ;;  %v2581_v47 = vmax.f32 %v2561_v49, 0.0 }
 0x1c1   : > { %v2972_v18 = vld [vmem:[#allocation2 + $0x5c] sm:$0x1]  ;;  %v2796_v8 = vsel %vm8033_vm9, %v2788_v21, %v2795_v38  ;;  %v2911_v4 = vsel %vm8028_vm8, %v2797_v62, %v2910_v55  ;;  %v2802_v32 = vshll.u32 %v6043_v36, 16 }
 0x1c2   : > { %v2973_v24 = vsel %vm8056_vm10, 0, %v2972_v18  ;;  %2909 = vst [vmem:[#allocation2 + $0x64] sm:$0xf] %v2796_v8  ;;  %2912 = vst [vmem:[#allocation2 + $0x68] sm:$0x1] %v2911_v4  ;;  %v2801_v0 = vrot.slane %v2799_v33, 7  ;;  %v6044_v5 = vpack.c.bf16 %v2581_v47, %v2581_v47 }
 0x1c3   : > { %2974 = vst [vmem:[#allocation2 + $0x5c] sm:$0x1] %v2973_v24 }
 0x1c4   : > { %v2804_v15 = vor.u32 %v2802_v32, %v2801_v0  ;;  %v2807_v58 = vshrl.u32 %v6044_v5, 16  ;;  %v2810_v41 = vshll.u32 %v6044_v5, 16  ;;  %v2805_v61 = vrot.slane %v2801_v0, 4 }
 0x1c6   : > { %v2914_v12 = vsel %vm8015_vm5, %v2804_v15, %v2913_v22  ;;  %v2809_v60 = vrot.slane %v2807_v58, 7 }
 0x1c7   : > { %v2944_v6 = vld [vmem:[#allocation2 + $0x60] sm:$0x1]  ;;  %2915 = vst [vmem:[#allocation2 + $0x6c] sm:$0xf] %v2914_v12 }
 0x1c8   : > { %v2945_v56 = vsel %vm8028_vm8, 0, %v2944_v6  ;;  %v2812_v42 = vor.u32 %v2810_v41, %v2809_v60  ;;  %v2814_v20 = vrot.slane %v2809_v60, 4 }
 0x1c9   : > { %2946 = vst [vmem:[#allocation2 + $0x60] sm:$0x1] %v2945_v56  ;;  %v2975_v57 = vld [vmem:[#allocation2 + $0x68] sm:$0x1] }
 0x1ca   : > { %v2976_v45 = vsel %vm8056_vm10, 0, %v2975_v57  ;;  %v2813_v7 = vsel %vm8033_vm9, %v2805_v61, %v2812_v42  ;;  %v2918_v25 = vsel %vm8028_vm8, %v2814_v20, %v2917_v2 }
 0x1cb   : > { %2977 = vst [vmem:[#allocation2 + $0x68] sm:$0x1] %v2976_v45  ;;  %2916 = vst [vmem:[#allocation2 + $0x70] sm:$0xf] %v2813_v7 }
 0x1cc   : > { %2919 = vst [vmem:[#allocation2 + $0x74] sm:$0x1] %v2918_v25 }
 0x1ce   : > { %v2947_v23 = vld [vmem:[#allocation2 + $0x6c] sm:$0x1] }
 0x1cf   : > { %v2948_v30 = vsel %vm8028_vm8, 0, %v2947_v23 }
 0x1d0   : > { %2949 = vst [vmem:[#allocation2 + $0x6c] sm:$0x1] %v2948_v30 }
 0x1d1   : > { %2984 = sbr.rel (%p5756_p8) target bundleno = 473 (0x1d9), region = 44 }
 0x1d3   : > { %v2978_v31 = vld [vmem:[#allocation2 + $0x74] sm:$0x1] }
 0x1d4   : > { %v2979_v28 = vsel %vm8056_vm10, 0, %v2978_v31 }
 0x1d5   : > { %2980 = vst [vmem:[#allocation2 + $0x74] sm:$0x1] %v2979_v28 }
 0x1d6   : > { %v7161_v43 = vmov 0  }
 0x1d7   : > { %2985 = vst [vmem:[#allocation2] sm:$0xf] %v7161_v43  ;;  %2986 = vst [vmem:[#allocation2 + $0x4] sm:$0xf] %v7161_v43 }
 0x1d8   : > { %2987 = vst [vmem:[#allocation2 + $0x8] sm:$0x1] %v7161_v43 }
 0x1d9 PF: > { %p5757_p9 = scmp.ne.s32.totalorder %s7143_s18, 1 }
 0x1db   : > { %2991 = sbr.rel (%p5757_p9) target bundleno = 483 (0x1e3), region = 48 }
 0x1e0   : > { %v7162_v50 = vmov 0  }
 0x1e1   : > { %2993 = vst [vmem:[#allocation2 + $0x6c] sm:$0xf] %v7162_v50  ;;  %2994 = vst [vmem:[#allocation2 + $0x70] sm:$0xf] %v7162_v50 }
 0x1e2   : > { %2995 = vst [vmem:[#allocation2 + $0x74] sm:$0x1] %v7162_v50 }
 0x1e3 PF: > { %v6977_v13 = vld [vmem:[%s9076_s2 + $0x138] sm:$0xff]   ;;  %v6980_v44 = vld [vmem:[%s9076_s2 + $0x130] sm:$0xff]   ;;  %v6983_v37 = vld [vmem:[%s9076_s2 + $0x128] sm:$0xff]   ;;  %vm5013_vm11 = vsmask.f32 3328 }
 0x1e4   : > { %v6978_v46 = vld [vmem:[%s9076_s2 + $0xf8] sm:$0xff]   ;;  %6327 = vmatprep.subr.bf16.mxu1 %v6977_v13  ;;  %v6981_v34 = vld [vmem:[%s9076_s2 + $0xf0] sm:$0xff]   ;;  %v6984_v63 = vld [vmem:[%s9076_s2 + $0xe8] sm:$0xff]   ;;  %vm5014_vm12 = vsmask.f32 7440 }
 0x1e5   : > { %v6979_v27 = vld [vmem:[%s9076_s2 + $0x178] sm:$0xff]   ;;  %6328 = vmatpush3.bf16.msra.mxu1 %v6978_v46  ;;  %v6982_v48 = vld [vmem:[%s9076_s2 + $0x170] sm:$0xff]   ;;  %v6985_v59 = vld [vmem:[%s9076_s2 + $0x168] sm:$0xff]  }
 0x1e6   : > { %6675 = vmatprep.subr.bf16.mxu0 %v6979_v27  ;;  %6329 = vmatprep.subr.bf16.mxu1 %v6980_v44  ;;  %v6986_v3 = vld [vmem:[%s9076_s2 + $0x120] sm:$0xff]   ;;  %v6989_v14 = vld [vmem:[%s9076_s2 + $0x118] sm:$0xff]   ;;  %v6992_v52 = vld [vmem:[%s9076_s2 + $0x110] sm:$0xff]  }
 0x1e7   : > { %6676 = vmatpush3.bf16.msra.mxu0 %v6979_v27  ;;  %v6987_v19 = vld [vmem:[%s9076_s2 + $0xe0] sm:$0xff]   ;;  %v6991_v53 = vld [vmem:[%s9076_s2 + $0x158] sm:$0xff]   ;;  %v6994_v1 = vld [vmem:[%s9076_s2 + $0x150] sm:$0xff]  }
 0x1e8   : > { %6677 = vmatprep.subr.bf16.mxu0 %v6982_v48  ;;  %v6988_v11 = vld [vmem:[%s9076_s2 + $0x160] sm:$0xff]   ;;  %v6990_v35 = vld [vmem:[%s9076_s2 + $0xd8] sm:$0xff]   ;;  %v6993_v39 = vld [vmem:[%s9076_s2 + $0xd0] sm:$0xff]  }
 0x1e9   : > { %6330 = vmatpush3.bf16.msra.mxu1 %v6981_v34  ;;  %v6995_v16 = vld [vmem:[%s9076_s2 + $0x108] sm:$0xff]   ;;  %v6998_v9 = vld [vmem:[%s9076_s2 + $0x100] sm:$0xff]   ;;  %v3310_v17 = vld [vmem:[#allocation2 + $0x10] sm:$0xf] }
 0x1ea   : > { %6331 = vmatprep.subr.bf16.mxu1 %v6983_v37  ;;  %v6996_v10 = vld [vmem:[%s9076_s2 + $0xc8] sm:$0xff]   ;;  %v7000_v36 = vld [vmem:[%s9076_s2 + $0x140] sm:$0xff]   ;;  %v7002_v21 = vld [vmem:[#allocation2 + $0x14] ss:$0 sps:$4 sm:$0x11]  }
 0x1eb   : > { %6678 = vmatpush3.bf16.msra.mxu0 %v6982_v48  ;;  %v6997_v29 = vld [vmem:[%s9076_s2 + $0x148] sm:$0xff]   ;;  %v6999_v49 = vld [vmem:[%s9076_s2 + $0xc0] sm:$0xff]   ;;  %v3421_v38 = vshll.u32 %v7002_v21, 16  ;;  %v7003_v18 = vld [vmem:[%s9076_s2 + $0x78] sm:$0xff]   ;;  %v3542_v33 = vrot.slane %v7002_v21, 1 }
 0x1ec   : > { %6679 = vmatprep.subr.bf16.mxu0 %v6985_v59  ;;  %v3309_v26 = vld [vmem:[#allocation2 + $0xc] sm:$0xf]  ;;  %v3311_v47 = vld [vmem:[#allocation2 + $0x18] sm:$0xf]  ;;  %v3312_v24 = vld [vmem:[#allocation2 + $0x1c] sm:$0xf] }
 0x1ed   : > { %6332 = vmatpush3.bf16.msra.mxu1 %v6984_v63  ;;  %v5782_v40 = vcombine.low %v3309_v26, %v3310_v17  ;;  %v3333_v55 = vld [vmem:[#allocation2 + $0xc] sm:$0xe]  ;;  %v3423_v4 = vrot.slane %v3421_v38, 1  ;;  %v8274_v32 = vcombine.low %v3311_v47, %v3312_v24  ;;  %v3334_v5 = vld [vmem:[#allocation2 + $0x18] sm:$0xe]  ;;  %v7009_v20 = vld [vmem:[%s9076_s2 + $0x70] sm:$0xff]  }
 0x1ee   : > { %6333 = vmatprep.subr.bf16.mxu1 %v6986_v3  ;;  %v5798_v62 = vcombine.low %v3333_v55, %v3310_v17  ;;  %v7007_v22 = vld [vmem:[#allocation2 + $0x20] ss:$0 sps:$4 sm:$0x11]   ;;  %v7005_v12 = vld [vmem:[%s9076_s2 + $0x38] sm:$0xff]   ;;  %v5799_v60 = vcombine.low %v3334_v5, %v3312_v24  ;;  %v3313_v57 = vld [vmem:[#allocation2 + $0x24] sm:$0xf] }
 0x1ef   : > { %6680 = vmatpush3.bf16.msra.mxu0 %v6985_v59  ;;  %v3414_v54 = vshrl.u32 %v5782_v40, 16  ;;  %v3416_v51 = vshll.u32 %v5782_v40, 16  ;;  %v3545_v41 = vrot.slane %v7007_v22, 1  ;;  %v3426_v6 = vshrl.u32 %v8274_v32, 16  ;;  %v7010_v25 = vld [vmem:[%s9076_s2 + $0x30] sm:$0xff]   ;;  %v7013_v43 = vld [vmem:[%s9076_s2 + $0x68] sm:$0xff]   ;;  %vm8779_vm13 = vmor %vm5013_vm11, %vm5014_vm12 }
 0x1f0   : > { %6681 = vmatprep.subr.bf16.mxu0 %v6988_v11  ;;  %v3541_v0 = vrot.slane %v5798_v62, 1  ;;  %v3428_v2 = vshll.u32 %v8274_v32, 16  ;;  %v3433_v56 = vshll.u32 %v7007_v22, 16  ;;  %v3544_v42 = vrot.slane %v5799_v60, 1  ;;  %v3314_v23 = vld [vmem:[#allocation2 + $0x28] sm:$0xf] }
 0x1f1   : > { %6334 = vmatpush3.bf16.msra.mxu1 %v6987_v19  ;;  %v3418_v8 = vrot.slane %v3416_v51, 1  ;;  %v8290_v31 = vcombine.low %v3313_v57, %v3314_v23  ;;  %v7012_v28 = vld [vmem:[#allocation2 + $0x2c] ss:$0 sps:$4 sm:$0x11]   ;;  %v7021_v50 = vld [vmem:[%s9076_s2 + $0xb8] sm:$0xff]   ;;  %v7022_v37 = vld [vmem:[%s9076_s2 + $0xb0] sm:$0xff]  }
 0x1f2   : > { %6335 = vmatprep.subr.bf16.mxu1 %v6989_v14  ;;  %v3543_v58 = vsel %vm556_vm0, %v3541_v0, %v3542_v33  ;;  %v3430_v45 = vrot.slane %v3428_v2, 1  ;;  %v3435_v7 = vrot.slane %v3433_v56, 1  ;;  %v3546_v30 = vsel %vm556_vm0, %v3544_v42, %v3545_v41  ;;  %v3335_v46 = vld [vmem:[#allocation2 + $0x24] sm:$0xe]  ;;  %v3315_v3 = vld [vmem:[#allocation2 + $0x30] sm:$0xf] }
 0x1f3   : > { %6682 = vmatpush3.bf16.msra.mxu0 %v6988_v11  ;;  %v3419_v15 = vor.u32 %v3418_v8, %v3414_v54  ;;  %6691 = vmatprep.mubr.bf16.mxu0 %v3543_v58  ;;  %v3438_v27 = vshrl.u32 %v8290_v31, 16  ;;  %v3440_v44 = vshll.u32 %v8290_v31, 16  ;;  %v3445_v34 = vshll.u32 %v7012_v28, 16  ;;  %v3316_v19 = vld [vmem:[#allocation2 + $0x34] sm:$0xf]  ;;  %v7019_v26 = vld [vmem:[%s9076_s2 + $0x60] sm:$0xff]  }
 0x1f4   : > { %6683 = vmatprep.subr.bf16.mxu0 %v6991_v53  ;;  %v3431_v13 = vor.u32 %v3430_v45, %v3426_v6  ;;  %v5800_v48 = vcombine.low %v3335_v46, %v3314_v23  ;;  %v3548_v59 = vrot.slane %v7012_v28, 1  ;;  %v7020_v55 = vld [vmem:[%s9076_s2 + $0x20] sm:$0xff]   ;;  %v7025_v51 = vld [vmem:[%s9076_s2 + $0x58] sm:$0xff]   ;;  %v7033_v58 = vld [vmem:[%s9076_s2 + $0x50] sm:$0xff]  }
 0x1f5   : > { %6336 = vmatpush3.bf16.msra.mxu1 %v6990_v35  ;;  %v3424_v61 = vsel %vm395_vm1, %v3419_v15, %v3423_v4  ;;  %v3442_v11 = vrot.slane %v3440_v44, 1  ;;  %v3447_v14 = vrot.slane %v3445_v34, 1  ;;  %v7015_v35 = vld [vmem:[%s9076_s2 + $0x28] sm:$0xff]   ;;  %v7032_v38 = vld [vmem:[%s9076_s2 + $0xa0] sm:$0xff]   ;;  %v3317_v47 = vld [vmem:[#allocation2 + $0x3c] sm:$0xf] }
 0x1f6   : > { %6337 = vmatprep.subr.bf16.mxu1 %v6992_v52  ;;  %3798 = vmatprep.mubr.bf16.mxu1 %v3424_v61  ;;  %v3436_v63 = vsel %vm395_vm1, %v3431_v13, %v3435_v7  ;;  %v8307_v52 = vcombine.low %v3315_v3, %v3316_v19  ;;  %v3318_v24 = vld [vmem:[#allocation2 + $0x40] sm:$0xf]  ;;  %v7024_v0 = vld [vmem:[#allocation2 + $0x44] ss:$0 sps:$4 sm:$0x11]   ;;  %v7034_v42 = vld [vmem:[%s9076_s2 + $0x10] sm:$0xff]  }
 0x1f7   : > { %6684 = vmatpush3.bf16.msra.mxu0 %v6991_v53  ;;  %v3547_v53 = vrot.slane %v5800_v48, 1  ;;  %v8330_v4 = vcombine.low %v3317_v47, %v3318_v24  ;;  %v3337_v5 = vld [vmem:[#allocation2 + $0x3c] sm:$0xe]  ;;  %v3469_v15 = vshll.u32 %v7024_v0, 16  ;;  %v3554_v2 = vrot.slane %v7024_v0, 1  ;;  %v7040_v7 = vld [vmem:[%s9076_s2 + $0x48] sm:$0xff]  }
 0x1f8   : > { %6685 = vmatprep.subr.bf16.mxu0 %v6994_v1  ;;  %v5802_v6 = vcombine.low %v3337_v5, %v3318_v24  ;;  %v3319_v61 = vld [vmem:[#allocation2 + $0x48] sm:$0xf]  ;;  %v3320_v45 = vld [vmem:[#allocation2 + $0x4c] sm:$0xf] }
 0x1f9   : > { %6338 = vmatpush3.bf16.msra.mxu1 %v6993_v39  ;;  %v7017_v39 = vld [vmem:[#allocation2 + $0x38] ss:$0 sps:$4 sm:$0x11]   ;;  %v3464_v22 = vshll.u32 %v8330_v4, 16  ;;  %v3462_v41 = vshrl.u32 %v8330_v4, 16  ;;  %v7045_v34 = vld [vmem:[%s9076_s2 + $0x88] sm:$0xff]  }
 0x1fa   : > { %6339 = vmatprep.subr.bf16.mxu1 %v6995_v16  ;;  %v7028_v16 = vld [vmem:[%s9076_s2 + $0xa8] sm:$0xff]   ;;  %v3551_v17 = vrot.slane %v7017_v39, 1  ;;  %v3457_v21 = vshll.u32 %v7017_v39, 16  ;;  %v3553_v57 = vrot.slane %v5802_v6, 1  ;;  %v3339_v39 = vld [vmem:[#allocation2 + $0x54] sm:$0xe] }
 0x1fb   : > { %6686 = vmatpush3.bf16.msra.mxu0 %v6994_v1  ;;  %v3336_v1 = vld [vmem:[#allocation2 + $0x30] sm:$0xe]  ;;  %v3466_v56 = vrot.slane %v3464_v22, 1  ;;  %v3338_v23 = vld [vmem:[#allocation2 + $0x48] sm:$0xe] }
 0x1fc   : > { %6687 = vmatprep.subr.bf16.mxu0 %v6997_v29  ;;  %v7030_v28 = vld [vmem:[#allocation2 + $0x50] ss:$0 sps:$4 sm:$0x11]   ;;  %v5803_v13 = vcombine.low %v3338_v23, %v3320_v45  ;;  %v7049_v6 = vld [vmem:[#allocation2 + $0x8] ss:$0 sps:$4 sm:$0x11]  }
 0x1fd   : > { %6340 = vmatpush3.bf16.msra.mxu1 %v6996_v10  ;;  %v3443_v10 = vor.u32 %v3442_v11, %v3438_v27  ;;  %v7044_v27 = vld [vmem:[%s9076_s2 + $0x8] sm:$0xff]   ;;  %v3321_v11 = vld [vmem:[#allocation2 + $0x54] sm:$0xf] }
 0x1fe   : > { %6341 = vmatprep.subr.bf16.mxu1 %v6998_v9  ;;  %v5801_v9 = vcombine.low %v3336_v1, %v3316_v19  ;;  %v3556_v44 = vrot.slane %v5803_v13, 1  ;;  %v7047_v19 = vld [vmem:[%s9076_s2 + $0x40] sm:$0xff]   ;;  %v7038_v1 = vld [vmem:[#allocation2 + $0x5c] ss:$0 sps:$4 sm:$0x11]  }
 0x1ff   : > { %6688 = vmatpush3.bf16.msra.mxu0 %v6997_v29  ;;  %v3549_v29 = vsel %vm556_vm0, %v3547_v53, %v3548_v59  ;;  %v7046_v53 = vld [vmem:[%s9076_s2 + $0x80] sm:$0xff]  }
 0x200   : > { %6689 = vmatprep.subr.bf16.mxu0 %v7000_v36  ;;  %v3550_v54 = vrot.slane %v5801_v9, 1 }
 0x201   : > { %6342 = vmatpush3.bf16.msra.mxu1 %v6999_v49  ;;  %v3448_v49 = vsel %vm395_vm1, %v3443_v10, %v3447_v14  ;;  %v3322_v14 = vld [vmem:[#allocation2 + $0x58] sm:$0xf] }
 0x202   : > { %6407 = vmatprep.subr.bf16.mxu1 %v7003_v18  ;;  %v3459_v18 = vrot.slane %v3457_v21, 1  ;;  %v3552_v33 = vsel %vm556_vm0, %v3550_v54, %v3551_v17  ;;  %v5804_v10 = vcombine.low %v3339_v39, %v3322_v14  ;;  %v3023_v39 = vld [vmem:[#allocation2 + $0x24] sm:$0xe] }
 0x203   : > { %6690 = vmatpush3.bf16.msra.mxu0 %v7000_v36  ;;  %v3450_v36 = vshrl.u32 %v8307_v52, 16 }
 0x204   : > { %3799 = vmatmul.mubr.bf16.vlgmr.msra.gmra.mxu1 %v5782_v40  ;;  %6707 = vmatprep.subr.bf16.mxu0 %v7021_v50  ;;  %v3452_v40 = vshll.u32 %v8307_v52, 16  ;;  %v3559_v21 = vrot.slane %v5804_v10, 1 }
 0x205   : > { %6408 = vmatpush3.bf16.msra.mxu1 %v7005_v12  ;;  %3806 = vmatprep.mubr.bf16.mxu1 %v3436_v63  ;;  %v7035_v12 = vld [vmem:[%s9076_s2 + $0x98] sm:$0xff]  }
 0x206   : > { %6692 = vmatmul.mubr.bf16.vlgmr.msra.gmra.mxu0 %v3546_v30  ;;  %6409 = vmatprep.subr.bf16.mxu1 %v7009_v20  ;;  %v3454_v62 = vrot.slane %v3452_v40, 1  ;;  %v7036_v20 = vld [vmem:[%s9076_s2 + $0x90] sm:$0xff]   ;;  %v8354_v30 = vcombine.low %v3319_v61, %v3320_v45  ;;  %v3324_v40 = vld [vmem:[#allocation2 + $0x64] sm:$0xf] }
 0x207   : > { %6708 = vmatpush3.bf16.msra.mxu0 %v7021_v50  ;;  %6695 = vmatprep.mubr.bf16.mxu0 %v3549_v29  ;;  %v3555_v50 = vsel %vm556_vm0, %v3553_v57, %v3554_v2  ;;  %v3323_v29 = vld [vmem:[#allocation2 + $0x60] sm:$0xf]  ;;  %v8395_v2 = vld [vmem:[%s9076_s2 + $0x238] sm:$0xff]   ;;  %v8398_v45 = vld [vmem:[#allocation2 + $0x14] ss:$0 sps:$4 sm:$0x11]  }
 0x208   : > { %6709 = vmatprep.subr.bf16.mxu0 %v7022_v37  ;;  %v3455_v8 = vor.u32 %v3454_v62, %v3450_v36  ;;  %v3476_v46 = vshll.u32 %v8354_v30, 16  ;;  %v3474_v48 = vshrl.u32 %v8354_v30, 16  ;;  %v3560_v36 = vrot.slane %v7038_v1, 1 }
 0x209   : > { %6410 = vmatpush3.bf16.msra.mxu1 %v7010_v25  ;;  %v3471_v25 = vrot.slane %v3469_v15, 1  ;;  %v3232_v13 = vrot.slane %v8398_v45, 1 }
 0x20a   : > { %6411 = vmatprep.subr.bf16.mxu1 %v7013_v43  ;;  %v3460_v60 = vsel %vm395_vm1, %v3455_v8, %v3459_v18  ;;  %v3467_v43 = vor.u32 %v3466_v56, %v3462_v41  ;;  %v3478_v3 = vrot.slane %v3476_v46, 1  ;;  %v7054_v18 = vld [vmem:[%s9076_s2 + $0x1f8] sm:$0xff]   ;;  %v3020_v41 = vld [vmem:[#allocation2] sm:$0xe]  ;;  %v2999_v56 = vld [vmem:[#allocation2 + $0x10] sm:$0xf] }
 0x20b   : > { %6710 = vmatpush3.bf16.msra.mxu0 %v7022_v37  ;;  %v3481_v37 = vshll.u32 %v7030_v28, 16 }
 0x20c   : > { %3807 = vmatmul.mubr.bf16.gmra.mxu1 %v8274_v32  ;;  %6711 = vmatprep.subr.bf16.mxu0 %v7028_v16  ;;  %v7027_v32 = vld [vmem:[%s9076_s2 + $0x18] sm:$0xff]   ;;  %v3472_v63 = vsel %vm395_vm1, %v3467_v43, %v3471_v25  ;;  %v3479_v9 = vor.u32 %v3478_v3, %v3474_v48 }
 0x20d   : > { %3814 = vmatprep.mubr.bf16.mxu1 %v3448_v49  ;;  %6412 = vmatpush3.bf16.msra.mxu1 %v7015_v35  ;;  %v8374_v35 = vcombine.low %v3321_v11, %v3322_v14  ;;  %v7055_v25 = vld [vmem:[%s9076_s2 + $0x1b8] sm:$0xff]   ;;  %v8420_v11 = vld [vmem:[#allocation2 + $0x28] sm:$0xf] }
 0x20e   : > { %6413 = vmatprep.subr.bf16.mxu1 %v7019_v26  ;;  %6696 = vmatmul.mubr.bf16.gmra.mxu0 %v3552_v33  ;;  %v3483_v26 = vrot.slane %v3481_v37, 1  ;;  %v3561_v33 = vsel %vm556_vm0, %v3559_v21, %v3560_v36  ;;  %v7065_v14 = vld [vmem:[%s9076_s2 + $0x1e8] sm:$0xff]  }
 0x20f   : > { %6712 = vmatpush3.bf16.msra.mxu0 %v7028_v16  ;;  %6699 = vmatprep.mubr.bf16.mxu0 %v3555_v50  ;;  %v7051_v16 = vld [vmem:[%s9076_s2] sm:$0xff]   ;;  %v3488_v17 = vshll.u32 %v8374_v35, 16  ;;  %v3486_v49 = vshrl.u32 %v8374_v35, 16  ;;  %v2998_v21 = vld [vmem:[#allocation2 + $0xc] sm:$0xf] }
 0x210   : > { %6713 = vmatprep.subr.bf16.mxu0 %v7032_v38  ;;  %v3484_v47 = vsel %vm395_vm1, %v3479_v9, %v3483_v26  ;;  %v5777_v9 = vcombine.low %v3023_v39, %v8420_v11  ;;  %v7084_v39 = vld [vmem:[%s9076_s2 + $0x228] sm:$0xff]  }
 0x211   : > { %6414 = vmatpush3.bf16.msra.mxu1 %v7020_v55  ;;  %v3340_v55 = vld [vmem:[#allocation2 + $0x60] sm:$0xe]  ;;  %v3490_v54 = vrot.slane %v3488_v17, 1 }
 0x212   : > { %6415 = vmatprep.subr.bf16.mxu1 %v7025_v51  ;;  %v8381_v51 = vcombine.low %v3323_v29, %v3324_v40  ;;  %v5805_v62 = vcombine.low %v3340_v55, %v3324_v40  ;;  %v8427_v29 = vld [vmem:[#allocation2 + $0x2c] ss:$0 sps:$4 sm:$0x11]   ;;  %v3237_v17 = vrot.slane %v5777_v9, 1 }
 0x213   : > { %6714 = vmatpush3.bf16.msra.mxu0 %v7032_v38  ;;  %v7042_v38 = vld [vmem:[#allocation2 + $0x68] ss:$0 sps:$4 sm:$0x11]   ;;  %v3238_v36 = vrot.slane %v8427_v29, 1 }
 0x214   : > { %3815 = vmatmul.mubr.bf16.gmra.mxu1 %v8290_v31  ;;  %6715 = vmatprep.subr.bf16.mxu0 %v7035_v12  ;;  %v3557_v31 = vrot.slane %v7030_v28, 1  ;;  %v3562_v24 = vrot.slane %v5805_v62, 1  ;;  %v3563_v8 = vrot.slane %v7042_v38, 1  ;;  %v3500_v22 = vshll.u32 %v8381_v51, 16  ;;  %v7066_v40 = vld [vmem:[%s9076_s2 + $0x1a8] sm:$0xff]  }
 0x215   : > { %3822 = vmatprep.mubr.bf16.mxu1 %v3460_v60  ;;  %6416 = vmatpush3.bf16.msra.mxu1 %v7027_v32  ;;  %v3498_v32 = vshrl.u32 %v8381_v51, 16  ;;  %v3505_v15 = vshll.u32 %v7042_v38, 16  ;;  %v3491_v60 = vor.u32 %v3490_v54, %v3486_v49  ;;  %v3000_v54 = vld [vmem:[#allocation2 + $0x18] sm:$0xf]  ;;  %v8440_v38 = vcombine.low %v2998_v21, %v2999_v56  ;;  %v8442_v62 = vld [vmem:[#allocation2 + $0x34] sm:$0xf] }
 0x216   : > { %6417 = vmatprep.subr.bf16.mxu1 %v7033_v58  ;;  %v3558_v59 = vsel %vm556_vm0, %v3556_v44, %v3557_v31  ;;  %v3564_v5 = vsel %vm556_vm0, %v3562_v24, %v3563_v8  ;;  %v2996_v58 = vld [vmem:[#allocation2] sm:$0xf]  ;;  %v3502_v61 = vrot.slane %v3500_v22, 1  ;;  %v7056_v31 = vld [vmem:[%s9076_s2 + $0x1f0] sm:$0xff]   ;;  %v3001_v44 = vld [vmem:[#allocation2 + $0x1c] sm:$0xf] }
 0x217   : > { %6716 = vmatpush3.bf16.msra.mxu0 %v7035_v12  ;;  %v2997_v12 = vld [vmem:[#allocation2 + $0x4] sm:$0xf]  ;;  %v3507_v48 = vrot.slane %v3505_v15, 1  ;;  %v8448_v24 = vld [vmem:[#allocation2 + $0x38] ss:$0 sps:$4 sm:$0x11]  }
 0x218   : > { %6717 = vmatprep.subr.bf16.mxu0 %v7036_v20  ;;  %6700 = vmatmul.mubr.bf16.gmra.mxu0 %v3558_v59  ;;  %v8404_v28 = vcombine.low %v2996_v58, %v2997_v12  ;;  %v8418_v59 = vld [vmem:[#allocation2 + $0x20] ss:$0 sps:$4 sm:$0x11]  }
 0x219   : > { %6418 = vmatpush3.bf16.msra.mxu1 %v7034_v42  ;;  %6703 = vmatprep.mubr.bf16.mxu0 %v3561_v33  ;;  %v3229_v42 = vrot.slane %v7049_v6, 1  ;;  %v7068_v33 = vld [vmem:[%s9076_s2 + $0x1a0] sm:$0xff]  }
 0x21a   : > { %6419 = vmatprep.subr.bf16.mxu1 %v7040_v7  ;;  %v3103_v37 = vshll.u32 %v8404_v28, 16 }
 0x21b   : > { %6718 = vmatpush3.bf16.msra.mxu0 %v7036_v20  ;;  %v3021_v20 = vld [vmem:[#allocation2 + $0xc] sm:$0xe] }
 0x21c   : > { %3823 = vmatmul.mubr.bf16.gmra.mxu1 %v8307_v52  ;;  %6719 = vmatprep.subr.bf16.mxu0 %v7045_v34  ;;  %v3493_v52 = vshll.u32 %v7038_v1, 16  ;;  %v5775_v7 = vcombine.low %v3021_v20, %v2999_v56  ;;  %v3235_v1 = vrot.slane %v8418_v59, 1  ;;  %v3105_v10 = vrot.slane %v3103_v37, 1  ;;  %v7078_v56 = vld [vmem:[%s9076_s2 + $0x198] sm:$0xff]  }
 0x21d   : > { %3830 = vmatprep.mubr.bf16.mxu1 %v3472_v63  ;;  %6420 = vmatpush3.bf16.msra.mxu1 %v7044_v27  ;;  %v7057_v27 = vld [vmem:[%s9076_s2 + $0x1b0] sm:$0xff]   ;;  %v3022_v63 = vld [vmem:[#allocation2 + $0x18] sm:$0xe] }
 0x21e   : > { %6421 = vmatprep.subr.bf16.mxu1 %v7047_v19  ;;  %v3495_v0 = vrot.slane %v3493_v52, 1  ;;  %v3231_v50 = vrot.slane %v5775_v7, 1  ;;  %v5776_v3 = vcombine.low %v3022_v63, %v3001_v44  ;;  %v3108_v19 = vshll.u32 %v7049_v6, 16  ;;  %v7067_v52 = vld [vmem:[%s9076_s2 + $0x1e0] sm:$0xff]   ;;  %v3025_v6 = vld [vmem:[#allocation2 + $0x3c] sm:$0xe] }
 0x21f   : > { %6720 = vmatpush3.bf16.msra.mxu0 %v7045_v34  ;;  %v3503_v34 = vor.u32 %v3502_v61, %v3498_v32  ;;  %v3120_v32 = vshll.u32 %v8398_v45, 16  ;;  %v8487_v37 = vld [vmem:[#allocation2 + $0x50] ss:$0 sps:$4 sm:$0x11]  }
 0x220   : > { %6721 = vmatprep.subr.bf16.mxu0 %v7046_v53  ;;  %6704 = vmatmul.mubr.bf16.gmra.mxu0 %v3564_v5  ;;  %v3496_v23 = vsel %vm395_vm1, %v3491_v60, %v3495_v0  ;;  %v3233_v46 = vsel %vm556_vm0, %v3231_v50, %v3232_v13  ;;  %v3110_v49 = vrot.slane %v3108_v19, 1  ;;  %v3113_v0 = vshrl.u32 %v8440_v38, 16  ;;  %v8453_v5 = vld [vmem:[#allocation2 + $0x40] sm:$0xf]  ;;  %v7077_v60 = vld [vmem:[%s9076_s2 + $0x1d8] sm:$0xff]   ;;  %v7073_v50 = vld [vmem:[%s9076_s2 + $0x230] sm:$0xff]  }
 0x221   : > { %6422 = vmatpush3.bf16.msra.mxu1 %v7051_v16  ;;  %v3508_v16 = vsel %vm395_vm1, %v3503_v34, %v3507_v48  ;;  %v3122_v7 = vrot.slane %v3120_v32, 1  ;;  %v3026_v34 = vld [vmem:[#allocation2 + $0x48] sm:$0xe]  ;;  %v3006_v32 = vld [vmem:[#allocation2 + $0x3c] sm:$0xf] }
 0x222   : > { %6739 = vmatprep.subr.bf16.mxu1 %v8395_v2 }
 0x223   : > { %6722 = vmatpush3.bf16.msra.mxu0 %v7046_v53  ;;  %v3234_v53 = vrot.slane %v5776_v3, 1  ;;  %v8493_v3 = vld [vmem:[#allocation2 + $0x58] sm:$0xf] }
 0x224   : > { %3831 = vmatmul.mubr.bf16.gmra.mxu1 %v8330_v4  ;;  %6487 = vmatprep.subr.bf16.mxu0 %v7054_v18  ;;  %v5774_v4 = vcombine.low %v3020_v41, %v2997_v12  ;;  %v3024_v18 = vld [vmem:[#allocation2 + $0x30] sm:$0xe]  ;;  %v3241_v12 = vrot.slane %v8448_v24, 1  ;;  %v8460_v41 = vcombine.low %v3000_v54, %v3001_v44  ;;  %v3144_v54 = vshll.u32 %v8427_v29, 16 }
 0x225   : > { %3838 = vmatprep.mubr.bf16.mxu1 %v3484_v47  ;;  %v3236_v26 = vsel %vm556_vm0, %v3234_v53, %v3235_v1  ;;  %v3115_v47 = vshll.u32 %v8440_v38, 16  ;;  %v5778_v8 = vcombine.low %v3024_v18, %v8442_v62  ;;  %v3247_v1 = vrot.slane %v8487_v37, 1  ;;  %v8525_v18 = vld [vmem:[#allocation2 + $0x1c] sm:$0xf] }
 0x226   : > { %v3228_v57 = vrot.slane %v5774_v4, 1  ;;  %v8462_v4 = vld [vmem:[#allocation2 + $0x44] ss:$0 sps:$4 sm:$0x11]  }
 0x227   : > { %v3117_v15 = vrot.slane %v3115_v47, 1  ;;  %v3240_v58 = vrot.slane %v5778_v8, 1  ;;  %v3244_v20 = vrot.slane %v8462_v4, 1 }
 0x228   : > { %v3230_v43 = vsel %vm556_vm0, %v3228_v57, %v3229_v42  ;;  %v5779_v42 = vcombine.low %v3025_v6, %v8453_v5  ;;  %v7079_v57 = vld [vmem:[%s9076_s2 + $0x1d0] sm:$0xff]  }
 0x229   : > { %6723 = vmatprep.mubr.bf16.mxu0 %v3230_v43  ;;  %v3242_v61 = vsel %vm556_vm0, %v3240_v58, %v3241_v12  ;;  %v3118_v45 = vor.u32 %v3117_v15, %v3113_v0  ;;  %v3132_v43 = vshll.u32 %v8418_v59, 16  ;;  %v8532_v0 = vld [vmem:[#allocation2 + $0x20] ss:$0 sps:$4 sm:$0x11]   ;;  %v4301_v58 = vld [vmem:[#allocation2 + $0x24] sm:$0xf] }
 0x22a   : > { %6724 = vmatmul.mubr.bf16.vlgmr.msra.gmra.mxu0 %v3233_v46  ;;  %v8483_v46 = vld [vmem:[#allocation2 + $0x4c] sm:$0xf]  ;;  %v4411_v15 = vshll.u32 %v8532_v0, 16 }
 0x22b   : > { %6488 = vmatpush3.bf16.msra.mxu0 %v7055_v25  ;;  %6727 = vmatprep.mubr.bf16.mxu0 %v3236_v26  ;;  %v3243_v25 = vrot.slane %v5779_v42, 1  ;;  %v3123_v48 = vsel %vm395_vm1, %v3118_v45, %v3122_v7  ;;  %v5780_v63 = vcombine.low %v3026_v34, %v8483_v46  ;;  %v3134_v59 = vrot.slane %v3132_v43, 1  ;;  %v4303_v43 = vld [vmem:[#allocation2 + $0x30] sm:$0xf] }
 0x22c   : > { %3839 = vmatmul.mubr.bf16.gmra.mxu1 %v8354_v30  ;;  %v3101_v30 = vshrl.u32 %v8404_v28, 16  ;;  %6489 = vmatprep.subr.bf16.mxu0 %v7056_v31  ;;  %v7080_v31 = vld [vmem:[%s9076_s2 + $0x190] sm:$0xff]   ;;  %v4413_v42 = vrot.slane %v4411_v15, 1  ;;  %v3156_v45 = vshll.u32 %v8448_v24, 16 }
 0x22d   : > { %3846 = vmatprep.mubr.bf16.mxu1 %v3496_v23  ;;  %v3002_v23 = vld [vmem:[#allocation2 + $0x24] sm:$0xf]  ;;  %v3245_v13 = vsel %vm556_vm0, %v3243_v25, %v3244_v20  ;;  %v3246_v53 = vrot.slane %v5780_v63, 1  ;;  %v8542_v20 = vld [vmem:[#allocation2 + $0x2c] ss:$0 sps:$4 sm:$0x11]  }
 0x22e   : > { %v3106_v55 = vor.u32 %v3105_v10, %v3101_v30  ;;  %v7088_v30 = vld [vmem:[%s9076_s2 + $0x1c8] sm:$0xff]   ;;  %v8497_v19 = vcombine.low %v3002_v23, %v8420_v11  ;;  %v8504_v10 = vld [vmem:[#allocation2 + $0x5c] ss:$0 sps:$4 sm:$0x11]   ;;  %v7100_v24 = vld [vmem:[%s9076_s2 + $0x210] sm:$0xff]  }
 0x22f   : > { %6490 = vmatpush3.bf16.msra.mxu0 %v7057_v27  ;;  %v3125_v27 = vshrl.u32 %v8460_v41, 16  ;;  %v7089_v11 = vld [vmem:[%s9076_s2 + $0x188] sm:$0xff]   ;;  %v3248_v26 = vsel %vm556_vm0, %v3246_v53, %v3247_v1 }
 0x230   : > { %6491 = vmatprep.subr.bf16.mxu0 %v7065_v14  ;;  %v3111_v22 = vsel %vm395_vm1, %v3106_v55, %v3110_v49  ;;  %v3004_v14 = vld [vmem:[#allocation2 + $0x30] sm:$0xf]  ;;  %v3139_v21 = vshll.u32 %v8497_v19, 16 }
 0x231   : > { %v8521_v55 = vcombine.low %v3004_v14, %v8442_v62  ;;  %v3158_v14 = vrot.slane %v3156_v45, 1 }
 0x232   : > { %v3141_v8 = vrot.slane %v3139_v21, 1 }
 0x233   : > { %6492 = vmatpush3.bf16.msra.mxu0 %v7066_v40  ;;  %v7091_v40 = vld [vmem:[%s9076_s2 + $0x180] sm:$0xff]   ;;  %v3151_v6 = vshll.u32 %v8521_v55, 16 }
 0x234   : > { %3847 = vmatmul.mubr.bf16.gmra.mxu1 %v8374_v35  ;;  %v3239_v35 = vsel %vm556_vm0, %v3237_v17, %v3238_v36  ;;  %6493 = vmatprep.subr.bf16.mxu0 %v7067_v52  ;;  %v3250_v36 = vrot.slane %v8504_v10, 1  ;;  %v3137_v52 = vshrl.u32 %v8497_v19, 16 }
 0x235   : > { %3854 = vmatprep.mubr.bf16.mxu1 %v3508_v16  ;;  %6728 = vmatmul.mubr.bf16.gmra.mxu0 %v3239_v35  ;;  %v3027_v16 = vld [vmem:[#allocation2 + $0x54] sm:$0xe]  ;;  %v4299_v35 = vld [vmem:[#allocation2 + $0x18] sm:$0xf] }
 0x236   : > { %6731 = vmatprep.mubr.bf16.mxu0 %v3242_v61  ;;  %v5902_v62 = vcombine.low %v4299_v35, %v8525_v18  ;;  %v3142_v12 = vor.u32 %v3141_v8, %v3137_v52  ;;  %v8581_v52 = vld [vmem:[#allocation2 + $0x44] ss:$0 sps:$4 sm:$0x11]  }
 0x237   : > { %6494 = vmatpush3.bf16.msra.mxu0 %v7068_v33  ;;  %v7094_v33 = vld [vmem:[%s9076_s2 + $0x220] sm:$0xff]   ;;  %v4447_v15 = vshll.u32 %v8581_v52, 16 }
 0x238   : > { %6495 = vmatprep.subr.bf16.mxu0 %v7077_v60  ;;  %v4404_v29 = vshrl.u32 %v5902_v62, 16  ;;  %v3146_v60 = vrot.slane %v3144_v54, 1 }
 0x239   : > { %v4449_v45 = vrot.slane %v4447_v15, 1 }
 0x23b   : > { %6496 = vmatpush3.bf16.msra.mxu0 %v7078_v56  ;;  %v8537_v56 = vld [vmem:[#allocation2 + $0x28] sm:$0xf] }
 0x23c   : > { %3855 = vmatmul.mubr.bf16.gmra.mxu1 %v8381_v51  ;;  %v3127_v51 = vshll.u32 %v8460_v41, 16  ;;  %6497 = vmatprep.subr.bf16.mxu0 %v7079_v57  ;;  %v7097_v57 = vld [vmem:[%s9076_s2 + $0x218] sm:$0xff]  }
 0x23d   : > { %4136 = vmatprep.mubr.bf16.mxu1 %v3111_v22  ;;  %6732 = vmatmul.mubr.bf16.gmra.mxu0 %v3245_v13  ;;  %v4406_v22 = vshll.u32 %v5902_v62, 16  ;;  %v3147_v13 = vsel %vm395_vm1, %v3142_v12, %v3146_v60  ;;  %v7106_v12 = vld [vmem:[%s9076_s2 + $0x200] sm:$0xff]   ;;  %v3010_v60 = vld [vmem:[#allocation2 + $0x54] sm:$0xf] }
 0x23e   : > { %v3129_v44 = vrot.slane %v3127_v51, 1  ;;  %6735 = vmatprep.mubr.bf16.mxu0 %v3248_v26  ;;  %v4423_v51 = vshll.u32 %v8542_v20, 16  ;;  %v8572_v26 = vld [vmem:[#allocation2 + $0x40] sm:$0xf] }
 0x23f   : > { %6498 = vmatpush3.bf16.msra.mxu0 %v7080_v31  ;;  %v4408_v61 = vrot.slane %v4406_v22, 1  ;;  %v3149_v31 = vshrl.u32 %v8521_v55, 16 }
 0x240   : > { %v3130_v9 = vor.u32 %v3129_v44, %v3125_v27  ;;  %6499 = vmatprep.subr.bf16.mxu0 %v7088_v30  ;;  %v3153_v27 = vrot.slane %v3151_v6, 1  ;;  %v8556_v44 = vld [vmem:[#allocation2 + $0x34] sm:$0xf]  ;;  %v4425_v63 = vrot.slane %v4423_v51, 1  ;;  %v3008_v30 = vld [vmem:[#allocation2 + $0x48] sm:$0xf] }
 0x241   : > { %v4409_v7 = vor.u32 %v4408_v61, %v4404_v29  ;;  %v8584_v21 = vcombine.low %v3008_v30, %v8483_v46  ;;  %v8591_v29 = vld [vmem:[#allocation2 + $0x4c] sm:$0xf] }
 0x242   : > { %v3135_v47 = vsel %vm395_vm1, %v3130_v9, %v3134_v59  ;;  %v8565_v59 = vld [vmem:[#allocation2 + $0x38] ss:$0 sps:$4 sm:$0x11]   ;;  %v4305_v9 = vld [vmem:[#allocation2 + $0x3c] sm:$0xf] }
 0x243   : > { %6500 = vmatpush3.bf16.msra.mxu0 %v7089_v11  ;;  %v4414_v34 = vsel %vm395_vm1, %v4409_v7, %v4413_v42  ;;  %v4435_v11 = vshll.u32 %v8565_v59, 16  ;;  %v3175_v61 = vshll.u32 %v8584_v21, 16  ;;  %v8604_v42 = vld [vmem:[#allocation2 + $0x50] ss:$0 sps:$4 sm:$0x11]  }
 0x244   : > { %4137 = vmatmul.mubr.bf16.vlgmr.msra.gmra.mxu1 %v8404_v28  ;;  %v5781_v28 = vcombine.low %v3027_v16, %v8493_v3  ;;  %v3154_v16 = vor.u32 %v3153_v27, %v3149_v31 }
 0x245   : > { %6740 = vmatpush3.bf16.msra.mxu1 %v8395_v2  ;;  %4144 = vmatprep.mubr.bf16.mxu1 %v3123_v48  ;;  %v7090_v2 = vld [vmem:[%s9076_s2 + $0x1c0] sm:$0xff]  }
 0x246   : > { %6741 = vmatprep.subr.bf16.mxu1 %v7073_v50  ;;  %v3249_v17 = vrot.slane %v5781_v28, 1  ;;  %6501 = vmatprep.subr.bf16.mxu0 %v7090_v2  ;;  %v7103_v2 = vld [vmem:[%s9076_s2 + $0x208] sm:$0xff]  }
 0x247   : > { %6502 = vmatpush3.bf16.msra.mxu0 %v7091_v40  ;;  %v4437_v40 = vrot.slane %v4435_v11, 1 }
 0x248   : > { %v3251_v49 = vsel %vm556_vm0, %v3249_v17, %v3250_v36  ;;  %v8576_v36 = vcombine.low %v4305_v9, %v8572_v26 }
 0x249   : > { %6742 = vmatpush3.bf16.msra.mxu1 %v7073_v50  ;;  %6736 = vmatmul.mubr.bf16.gmra.mxu0 %v3251_v49  ;;  %v8552_v50 = vcombine.low %v3006_v32, %v8453_v5  ;;  %v8563_v5 = vcombine.low %v4303_v43, %v8556_v44  ;;  %v3177_v43 = vrot.slane %v3175_v61, 1  ;;  %v4324_v61 = vld [vmem:[#allocation2 + $0x24] sm:$0xe] }
 0x24a   : > { %6743 = vmatprep.subr.bf16.mxu1 %v7084_v39  ;;  %4788 = vmatprep.mubr.bf16.mxu0 %v4414_v34  ;;  %v4442_v35 = vshll.u32 %v8576_v36, 16  ;;  %v4440_v32 = vshrl.u32 %v8576_v36, 16  ;;  %v4459_v34 = vshll.u32 %v8604_v42, 16 }
 0x24b   : > { %v4428_v1 = vshrl.u32 %v8563_v5, 16  ;;  %v3163_v28 = vshll.u32 %v8552_v50, 16  ;;  %v3161_v49 = vshrl.u32 %v8552_v50, 16 }
 0x24c   : > { %4145 = vmatmul.mubr.bf16.gmra.mxu1 %v8440_v38  ;;  %v8540_v38 = vcombine.low %v4301_v58, %v8537_v56  ;;  %v4444_v46 = vrot.slane %v4442_v35, 1  ;;  %v4323_v35 = vld [vmem:[#allocation2 + $0x18] sm:$0xe] }
 0x24d   : > { %4152 = vmatprep.mubr.bf16.mxu1 %v3135_v47  ;;  %6744 = vmatpush3.bf16.msra.mxu1 %v7084_v39  ;;  %v4430_v39 = vshll.u32 %v8563_v5, 16  ;;  %v3159_v47 = vsel %vm395_vm1, %v3154_v16, %v3158_v14  ;;  %v3165_v8 = vrot.slane %v3163_v28, 1  ;;  %v4461_v14 = vrot.slane %v4459_v34, 1  ;;  %v8624_v16 = vld [vmem:[#allocation2 + $0x64] sm:$0xf] }
 0x24e   : > { %6745 = vmatprep.subr.bf16.mxu1 %v7094_v33  ;;  %v4416_v25 = vshrl.u32 %v8540_v38, 16  ;;  %v4418_v23 = vshll.u32 %v8540_v38, 16  ;;  %v4538_v34 = vrot.slane %v8565_v59, 1  ;;  %v4541_v59 = vrot.slane %v8581_v52, 1 }
 0x250   : > { %v4420_v48 = vrot.slane %v4418_v23, 1  ;;  %v8607_v23 = vld [vmem:[#allocation2 + $0x58] sm:$0xf] }
 0x251   : > { %6746 = vmatpush3.bf16.msra.mxu1 %v7094_v33  ;;  %4789 = vmatmul.mubr.bf16.vlgmr.msra.gmra.mxu0 %v5902_v62  ;;  %v4307_v33 = vld [vmem:[#allocation2 + $0x48] sm:$0xf]  ;;  %v3168_v62 = vshll.u32 %v8462_v4, 16  ;;  %v3166_v4 = vor.u32 %v3165_v8, %v3161_v49 }
 0x252   : > { %6747 = vmatprep.subr.bf16.mxu1 %v7097_v57  ;;  %v4421_v53 = vor.u32 %v4420_v48, %v4416_v25  ;;  %v8596_v58 = vcombine.low %v4307_v33, %v8591_v29  ;;  %v4309_v25 = vld [vmem:[#allocation2 + $0x54] sm:$0xf] }
 0x253   : > { %v3170_v6 = vrot.slane %v3168_v62, 1  ;;  %v5907_v48 = vcombine.low %v4309_v25, %v8607_v23  ;;  %v4313_v62 = vld [vmem:[#allocation2 + $0x6c] sm:$0xf] }
 0x254   : > { %4153 = vmatmul.mubr.bf16.gmra.mxu1 %v8460_v41  ;;  %v4426_v17 = vsel %vm395_vm1, %v4421_v53, %v4425_v63  ;;  %v4432_v41 = vrot.slane %v4430_v39, 1  ;;  %v4454_v7 = vshll.u32 %v8596_v58, 16  ;;  %v4452_v31 = vshrl.u32 %v8596_v58, 16  ;;  %v8622_v53 = vld [vmem:[#allocation2 + $0x5c] ss:$0 sps:$4 sm:$0x11]  }
 0x255   : > { %4160 = vmatprep.mubr.bf16.mxu1 %v3147_v13  ;;  %6748 = vmatpush3.bf16.msra.mxu1 %v7097_v57  ;;  %v4445_v57 = vor.u32 %v4444_v46, %v4440_v32  ;;  %v3171_v51 = vsel %vm395_vm1, %v3166_v4, %v3170_v6  ;;  %v3180_v13 = vshll.u32 %v8487_v37, 16  ;;  %v4311_v39 = vld [vmem:[#allocation2 + $0x60] sm:$0xf]  ;;  %v4464_v9 = vshrl.u32 %v5907_v48, 16  ;;  %v8636_v32 = vld [vmem:[#allocation2 + $0x70] sm:$0xf] }
 0x256   : > { %6749 = vmatprep.subr.bf16.mxu1 %v7100_v24  ;;  %4796 = vmatprep.mubr.bf16.mxu0 %v4426_v17  ;;  %v4433_v54 = vor.u32 %v4432_v41, %v4428_v1  ;;  %v4466_v1 = vshll.u32 %v5907_v48, 16  ;;  %v5918_v46 = vcombine.low %v4323_v35, %v8525_v18  ;;  %v4532_v6 = vrot.slane %v8532_v0, 1 }
 0x257   : > { %v4450_v27 = vsel %vm395_vm1, %v4445_v57, %v4449_v45  ;;  %v3182_v63 = vrot.slane %v3180_v13, 1  ;;  %v4325_v57 = vld [vmem:[#allocation2 + $0x30] sm:$0xe]  ;;  %v4547_v52 = vrot.slane %v8622_v53, 1 }
 0x258   : > { %v4438_v22 = vsel %vm395_vm1, %v4433_v54, %v4437_v40  ;;  %v4468_v41 = vrot.slane %v4466_v1, 1  ;;  %v5908_v40 = vcombine.low %v4311_v39, %v8624_v16  ;;  %v4531_v4 = vrot.slane %v5918_v46, 1 }
 0x259   : > { %6750 = vmatpush3.bf16.msra.mxu1 %v7100_v24  ;;  %4797 = vmatmul.mubr.bf16.gmra.mxu0 %v8540_v38  ;;  %v3173_v38 = vshrl.u32 %v8584_v21, 16  ;;  %v4456_v24 = vrot.slane %v4454_v7, 1  ;;  %v7117_v7 = vld [vmem:[#allocation2 + $0x74] ss:$0 sps:$4 sm:$0x11]   ;;  %v4544_v39 = vrot.slane %v8604_v42, 1 }
 0x25a   : > { %6751 = vmatprep.subr.bf16.mxu1 %v7103_v2  ;;  %4804 = vmatprep.mubr.bf16.mxu0 %v4438_v22  ;;  %v4469_v33 = vor.u32 %v4468_v41, %v4464_v9  ;;  %v4478_v8 = vshll.u32 %v5908_v40, 16  ;;  %v4330_v42 = vld [vmem:[#allocation2 + $0x6c] sm:$0xe] }
 0x25b   : > { %v4457_v30 = vor.u32 %v4456_v24, %v4452_v31  ;;  %v4495_v31 = vshll.u32 %v7117_v7, 16 }
 0x25c   : > { %4161 = vmatmul.mubr.bf16.gmra.mxu1 %v8497_v19  ;;  %v8610_v19 = vcombine.low %v3010_v60, %v8493_v3  ;;  %v3178_v3 = vor.u32 %v3177_v43, %v3173_v38  ;;  %v4480_v15 = vrot.slane %v4478_v8, 1  ;;  %v5909_v60 = vcombine.low %v4313_v62, %v8636_v32 }
 0x25d   : > { %4168 = vmatprep.mubr.bf16.mxu1 %v3159_v47  ;;  %6752 = vmatpush3.bf16.msra.mxu1 %v7103_v2  ;;  %v4462_v17 = vsel %vm395_vm1, %v4457_v30, %v4461_v14  ;;  %v4471_v2 = vshll.u32 %v8622_v53, 16  ;;  %v4533_v38 = vsel %vm556_vm0, %v4531_v4, %v4532_v6  ;;  %v5920_v43 = vcombine.low %v4325_v57, %v8556_v44  ;;  %v4327_v44 = vld [vmem:[#allocation2 + $0x48] sm:$0xe] }
 0x25e   : > { %6753 = vmatprep.subr.bf16.mxu1 %v7106_v12  ;;  %v3187_v37 = vshll.u32 %v8610_v19, 16  ;;  %v3185_v28 = vshrl.u32 %v8610_v19, 16  ;;  %v4490_v25 = vshll.u32 %v5909_v60, 16 }
 0x25f   : > { %v4473_v47 = vrot.slane %v4471_v2, 1  ;;  %v4537_v24 = vrot.slane %v5920_v43, 1 }
 0x260   : > { %v3189_v11 = vrot.slane %v3187_v37, 1  ;;  %v4492_v13 = vrot.slane %v4490_v25, 1 }
 0x261   : > { %6754 = vmatpush3.bf16.msra.mxu1 %v7106_v12  ;;  %4805 = vmatmul.mubr.bf16.gmra.mxu0 %v8563_v5  ;;  %v3192_v5 = vshll.u32 %v8504_v10, 16  ;;  %v8634_v10 = vld [vmem:[#allocation2 + $0x68] ss:$0 sps:$4 sm:$0x11]   ;;  %v4539_v14 = vsel %vm556_vm0, %v4537_v24, %v4538_v34 }
 0x262   : > { %4812 = vmatprep.mubr.bf16.mxu0 %v4450_v27  ;;  %v3190_v49 = vor.u32 %v3189_v11, %v3185_v28  ;;  %v4483_v12 = vshll.u32 %v8634_v10, 16  ;;  %v4535_v27 = vrot.slane %v8542_v20, 1  ;;  %v4328_v28 = vld [vmem:[#allocation2 + $0x54] sm:$0xe]  ;;  %v4550_v41 = vrot.slane %v8634_v10, 1 }
 0x263   : > { %v3194_v54 = vrot.slane %v3192_v5, 1  ;;  %v5923_v11 = vcombine.low %v4328_v28, %v8607_v23 }
 0x264   : > { %4169 = vmatmul.mubr.bf16.gmra.mxu1 %v8521_v55  ;;  %v3183_v55 = vsel %vm395_vm1, %v3178_v3, %v3182_v63  ;;  %v4485_v45 = vrot.slane %v4483_v12, 1  ;;  %v4326_v3 = vld [vmem:[#allocation2 + $0x3c] sm:$0xe]  ;;  %v4497_v63 = vrot.slane %v4495_v31, 1 }
 0x265   : > { %4176 = vmatprep.mubr.bf16.mxu1 %v3171_v51  ;;  %v3195_v22 = vsel %vm395_vm1, %v3190_v49, %v3194_v54  ;;  %v5919_v51 = vcombine.low %v4324_v61, %v8537_v56  ;;  %v5921_v30 = vcombine.low %v4326_v3, %v8572_v26  ;;  %v4546_v9 = vrot.slane %v5923_v11, 1 }
 0x267   : > { %v4534_v0 = vrot.slane %v5919_v51, 1  ;;  %v4540_v20 = vrot.slane %v5921_v30, 1  ;;  %v4548_v2 = vsel %vm556_vm0, %v4546_v9, %v4547_v52 }
 0x269   : > { %4813 = vmatmul.mubr.bf16.gmra.mxu0 %v8576_v36  ;;  %v4474_v36 = vsel %vm395_vm1, %v4469_v33, %v4473_v47  ;;  %v4536_v37 = vsel %vm556_vm0, %v4534_v0, %v4535_v27  ;;  %v4542_v26 = vsel %vm556_vm0, %v4540_v20, %v4541_v59 }
 0x26a   : > { %4820 = vmatprep.mubr.bf16.mxu0 %v4462_v17 }
 0x26c   : > { %4177 = vmatmul.mubr.bf16.gmra.mxu1 %v8552_v50  ;;  %v4476_v50 = vshrl.u32 %v5908_v40, 16 }
 0x26d   : > { %4184 = vmatprep.mubr.bf16.mxu1 %v3183_v55  ;;  %v4329_v55 = vld [vmem:[#allocation2 + $0x60] sm:$0xe] }
 0x26e   : > { %v4481_v18 = vor.u32 %v4480_v15, %v4476_v50  ;;  %v5924_v5 = vcombine.low %v4329_v55, %v8624_v16  ;;  %v4553_v16 = vrot.slane %v7117_v7, 1 }
 0x270   : > { %v4549_v17 = vrot.slane %v5924_v5, 1 }
 0x271   : > { %4821 = vmatmul.mubr.bf16.gmra.mxu0 %v8596_v58  ;;  %v4488_v58 = vshrl.u32 %v5909_v60, 16 }
 0x272   : > { %4828 = vmatprep.mubr.bf16.mxu0 %v4474_v36  ;;  %v4551_v23 = vsel %vm556_vm0, %v4549_v17, %v4550_v41 }
 0x273   : > { %v4493_v56 = vor.u32 %v4492_v13, %v4488_v58 }
 0x274   : > { %4185 = vmatmul.mubr.bf16.gmra.mxu1 %v8584_v21  ;;  %v4486_v21 = vsel %vm395_vm1, %v4481_v18, %v4485_v45 }
 0x275   : > { %4192 = vmatprep.mubr.bf16.mxu1 %v3195_v22 }
 0x279   : > { %4829 = vmatmul.mubr.bf16.gmra.mxu0 %v5907_v48  ;;  %v4498_v48 = vsel %vm395_vm1, %v4493_v56, %v4497_v63 }
 0x27a   : > { %4836 = vmatprep.mubr.bf16.mxu0 %v4486_v21 }
 0x27c   : > { %4193 = vmatmul.mubr.bf16.gmra.mxu1 %v8610_v19  ;;  %v5922_v19 = vcombine.low %v4327_v44, %v8591_v29 }
 0x27d   : > { %6755 = vmatprep.mubr.bf16.mxu1 %v4533_v38 }
 0x27e   : > { %v4543_v1 = vrot.slane %v5922_v19, 1 }
 0x280   : > { %v4545_v29 = vsel %vm556_vm0, %v4543_v1, %v4544_v39 }
 0x281   : > { %4837 = vmatmul.mubr.bf16.gmra.mxu0 %v5908_v40  ;;  %v5925_v40 = vcombine.low %v4330_v42, %v8636_v32 }
 0x282   : > { %4844 = vmatprep.mubr.bf16.mxu0 %v4498_v48 }
 0x283   : > { %v4552_v49 = vrot.slane %v5925_v40, 1 }
 0x284   : > { %6756 = vmatmul.mubr.bf16.vlgmr.msra.gmra.mxu1 %v4536_v37 }
 0x285   : > { %6759 = vmatprep.mubr.bf16.mxu1 %v4539_v14  ;;  %v4554_v54 = vsel %vm556_vm0, %v4552_v49, %v4553_v16 }
 0x289   : > { %4845 = vmatmul.mubr.bf16.gmra.mxu0 %v5909_v60 }
 0x28c   : > { %6760 = vmatmul.mubr.bf16.gmra.mxu1 %v4542_v26 }
 0x28d   : > { %6763 = vmatprep.mubr.bf16.mxu1 %v4545_v29 }
 0x294   : > { %6764 = vmatmul.mubr.bf16.gmra.mxu1 %v4548_v2 }
 0x295   : > { %6767 = vmatprep.mubr.bf16.mxu1 %v4551_v23 }
 0x29c   : > { %6768 = vmatmul.mubr.bf16.gmra.mxu1 %v4554_v54 }
 0x2c4   : > { %v6343_v35 = vpop.f32.mrf.mxu1 }
 0x2c6   : > { %v6693_v33 = vpop.f32.mrf.mxu0  ;;  %v6344_v53 = vpop.f32.mrf.mxu1 }
 0x2c7   : > { %v6345_v47 = vadd.f32 %v6344_v53, %v6343_v35 }
 0x2c8   : > { %v3897_v8 = vpop.f32.mrf.mxu0  ;;  %v6346_v10 = vpop.f32.mrf.mxu1 }
 0x2c9   : > { %v8670_v62 = vadd.f32 %v6345_v47, %v3897_v8 }
 0x2ca   : > { %v6694_v22 = vpop.f32.mrf.mxu0  ;;  %v6347_v46 = vpop.f32.mrf.mxu1 }
 0x2cb   : > { %v6348_v32 = vadd.f32 %v6347_v46, %v6346_v10 }
 0x2cc   : > { %v3900_v50 = vpop.f32.mrf.mxu0  ;;  %v6349_v36 = vpop.f32.mrf.mxu1 }
 0x2cd   : > { %v8672_v15 = vadd.f32 %v6348_v32, %v3900_v50 }
 0x2ce   : > { %v6350_v12 = vpop.f32.mrf.mxu1  ;;  %v6697_v4 = vpop.f32.mrf.mxu0 }
 0x2cf   : > { %v6351_v60 = vadd.f32 %v6350_v12, %v6349_v36 }
 0x2d0   : > { %v6352_v6 = vpop.f32.mrf.mxu1  ;;  %v3913_v57 = vpop.f32.mrf.mxu0 }
 0x2d1   : > { %v8674_v61 = vadd.f32 %v6693_v33, %v6351_v60 }
 0x2d2   : > { %v6353_v18 = vpop.f32.mrf.mxu1  ;;  %v6698_v38 = vpop.f32.mrf.mxu0 }
 0x2d3   : > { %v6354_v45 = vadd.f32 %v6353_v18, %v6352_v6 }
 0x2d4   : > { %v6355_v7 = vpop.f32.mrf.mxu1  ;;  %v3916_v13 = vpop.f32.mrf.mxu0 }
 0x2d5   : > { %v8676_v25 = vadd.f32 %v6694_v22, %v6354_v45 }
 0x2d6   : > { %v6356_v51 = vpop.f32.mrf.mxu1 }
 0x2d7   : > { %v6357_v43 = vadd.f32 %v6356_v51, %v6355_v7 }
 0x2d8   : > { %v6358_v21 = vpop.f32.mrf.mxu1  ;;  %v6701_v27 = vpop.f32.mrf.mxu0 }
 0x2d9   : > { %v8678_v58 = vadd.f32 %v6357_v43, %v3913_v57 }
 0x2da   : > { %v6359_v31 = vpop.f32.mrf.mxu1  ;;  %v3929_v3 = vpop.f32.mrf.mxu0 }
 0x2db   : > { %v6360_v0 = vadd.f32 %v6359_v31, %v6358_v21 }
 0x2dc   : > { %v6361_v24 = vpop.f32.mrf.mxu1  ;;  %v6702_v44 = vpop.f32.mrf.mxu0 }
 0x2dd   : > { %v8680_v34 = vadd.f32 %v6360_v0, %v3916_v13 }
 0x2de   : > { %v6362_v56 = vpop.f32.mrf.mxu1  ;;  %v3932_v48 = vpop.f32.mrf.mxu0 }
 0x2df   : > { %v6363_v63 = vadd.f32 %v6362_v56, %v6361_v24 }
 0x2e0   : > { %v6364_v37 = vpop.f32.mrf.mxu1  ;;  %v6705_v1 = vpop.f32.mrf.mxu0 }
 0x2e1   : > { %v8682_v30 = vadd.f32 %v6697_v4, %v6363_v63 }
 0x2e2   : > { %v6365_v14 = vpop.f32.mrf.mxu1  ;;  %v3945_v55 = vpop.f32.mrf.mxu0 }
 0x2e3   : > { %v6366_v19 = vadd.f32 %v6365_v14, %v6364_v37 }
 0x2e4   : > { %v6367_v20 = vpop.f32.mrf.mxu1  ;;  %v6706_v29 = vpop.f32.mrf.mxu0 }
 0x2e5   : > { %v8684_v59 = vadd.f32 %v6698_v38, %v6366_v19 }
 0x2e6   : > { %v6368_v39 = vpop.f32.mrf.mxu1  ;;  %v3948_v52 = vpop.f32.mrf.mxu0 }
 0x2e7   : > { %v6369_v28 = vadd.f32 %v6368_v39, %v6367_v20 }
 0x2e8   : > { %v6370_v26 = vpop.f32.mrf.mxu1 }
 0x2e9   : > { %v8686_v11 = vadd.f32 %v6369_v28, %v3929_v3 }
 0x2ea   : > { %v6371_v5 = vpop.f32.mrf.mxu1  ;;  %v6725_v2 = vpop.f32.mrf.mxu0 }
 0x2eb   : > { %v6372_v9 = vadd.f32 %v6371_v5, %v6370_v26 }
 0x2ec   : > { %v6373_v17 = vpop.f32.mrf.mxu1  ;;  %v4235_v49 = vpop.f32.mrf.mxu0 }
 0x2ed   : > { %v8688_v41 = vadd.f32 %v6372_v9, %v3932_v48 }
 0x2ee   : > { %v6374_v42 = vpop.f32.mrf.mxu1  ;;  %v6726_v35 = vpop.f32.mrf.mxu0 }
 0x2ef   : > { %v6375_v40 = vadd.f32 %v6374_v42, %v6373_v17 }
 0x2f0   : > { %v6376_v23 = vpop.f32.mrf.mxu1  ;;  %v4238_v47 = vpop.f32.mrf.mxu0 }
 0x2f1   : > { %v8690_v16 = vadd.f32 %v6701_v27, %v6375_v40 }
 0x2f2   : > { %v6377_v54 = vpop.f32.mrf.mxu1 }
 0x2f3   : > { %v6378_v33 = vadd.f32 %v6377_v54, %v6376_v23 }
 0x2f4   : > { %v6379_v53 = vpop.f32.mrf.mxu1 }
 0x2f5   : > { %v8692_v8 = vadd.f32 %v6702_v44, %v6378_v33  ;;  %v8694_v46 = vpop.f32.mrf.mxu0 }
 0x2f6   : > { %v6380_v10 = vpop.f32.mrf.mxu1 }
 0x2f7   : > { %v6381_v22 = vadd.f32 %v6380_v10, %v6379_v53  ;;  %v4251_v36 = vpop.f32.mrf.mxu0 }
 0x2f8   : > { %v6382_v32 = vpop.f32.mrf.mxu1 }
 0x2f9   : > { %v8696_v50 = vadd.f32 %v6381_v22, %v3945_v55  ;;  %v8698_v4 = vpop.f32.mrf.mxu0 }
 0x2fa   : > { %v6383_v12 = vpop.f32.mrf.mxu1 }
 0x2fb   : > { %v6384_v60 = vadd.f32 %v6383_v12, %v6382_v32  ;;  %v8702_v18 = vpop.f32.mrf.mxu0 }
 0x2fc   : > { %v6385_v6 = vpop.f32.mrf.mxu1 }
 0x2fd   : > { %v8700_v57 = vadd.f32 %v6384_v60, %v3948_v52  ;;  %v8706_v43 = vpop.f32.mrf.mxu0 }
 0x2fe   : > { %v6386_v45 = vpop.f32.mrf.mxu1 }
 0x2ff   : > { %v6387_v7 = vadd.f32 %v6386_v45, %v6385_v6  ;;  %v8708_v31 = vpop.f32.mrf.mxu0  ;;  %v6003_v45 = vld [vmem:[%s7303_s26 + $0x28] sm:$0xf] }
 0x300   : > { %v6388_v38 = vpop.f32.mrf.mxu1 }
 0x301   : > { %v8704_v51 = vadd.f32 %v6705_v1, %v6387_v7  ;;  %v8712_v24 = vpop.f32.mrf.mxu0 }
 0x302   : > { %v6389_v21 = vpop.f32.mrf.mxu1 }
 0x303   : > { %v6390_v13 = vadd.f32 %v6389_v21, %v6388_v38  ;;  %v8714_v63 = vpop.f32.mrf.mxu0 }
 0x304   : > { %v6423_v0 = vpop.f32.mrf.mxu1 }
 0x305   : > { %v8710_v27 = vadd.f32 %v6706_v29, %v6390_v13 }
 0x306   : > { %v6424_v3 = vpop.f32.mrf.mxu1 }
 0x307   : > { %v6425_v56 = vadd.f32 %v6424_v3, %v6423_v0 }
 0x308   : > { %v6426_v44 = vpop.f32.mrf.mxu1 }
 0x309   : > { %v4139_v37 = vadd.f32 %v6425_v56, %v8670_v62  ;;  %v8717_v19 = vpop.f32.mrf.mxu0 }
 0x30a   : > { %v6427_v14 = vpop.f32.mrf.mxu1 }
 0x30b   : > { %v6428_v48 = vadd.f32 %v6427_v14, %v6426_v44  ;;  %v8719_v20 = vadd.f32 %v4235_v49, %v4139_v37  ;;  %v8721_v39 = vpop.f32.mrf.mxu0  ;;  %v5050_v44 = vshll.u32 %v6003_v45, 16  ;;  %v5054_v37 = vshrl.u32 %v6003_v45, 16 }
 0x30c   : > { %v6429_v1 = vpop.f32.mrf.mxu1 }
 0x30d   : > { %v4142_v28 = vadd.f32 %v6428_v48, %v8672_v15  ;;  %v8724_v26 = vpop.f32.mrf.mxu0 }
 0x30e   : > { %v6430_v55 = vpop.f32.mrf.mxu1 }
 0x30f   : > { %v6431_v29 = vadd.f32 %v6430_v55, %v6429_v1  ;;  %v8726_v5 = vadd.f32 %v4238_v47, %v4142_v28  ;;  %v8728_v62 = vpop.f32.mrf.mxu0 }
 0x310   : > { %v6432_v9 = vpop.f32.mrf.mxu1 }
 0x311   : > { %v4147_v52 = vadd.f32 %v6431_v29, %v8674_v61  ;;  %v8733_v15 = vpop.f32.mrf.mxu0  ;;  %v6002_v61 = vld [vmem:[%s7303_s26 + $0x24] sm:$0xf] }
 0x312   : > { %v6433_v17 = vpop.f32.mrf.mxu1  ;;  %v5041_v7 = vshrl.u32 %v6002_v61, 16 }
 0x313   : > { %v6434_v42 = vadd.f32 %v6433_v17, %v6432_v9  ;;  %v8731_v40 = vadd.f32 %v6725_v2, %v4147_v52  ;;  %v8736_v33 = vpop.f32.mrf.mxu0  ;;  %v5999_v2 = vld [vmem:[%s7303_s26 + $0x18] sm:$0xf] }
 0x314   : > { %v6435_v23 = vpop.f32.mrf.mxu1  ;;  %v5020_v0 = vshll.u32 %v5999_v2, 16  ;;  %v5043_v48 = vrot.slane %v5041_v7, 4 }
 0x315   : > { %v4150_v49 = vadd.f32 %v6434_v42, %v8676_v25  ;;  %v8740_v22 = vpop.f32.mrf.mxu0  ;;  %v5044_v25 = vshll.u32 %v6002_v61, 16 }
 0x316   : > { %v6436_v54 = vpop.f32.mrf.mxu1  ;;  %v5022_v9 = vrot.slane %v5020_v0, 5 }
 0x317   : > { %v6437_v53 = vadd.f32 %v6436_v54, %v6435_v23  ;;  %v8738_v47 = vadd.f32 %v6726_v35, %v4150_v49  ;;  %v8745_v60 = vpop.f32.mrf.mxu0  ;;  %v5017_v35 = vshrl.u32 %v5999_v2, 16  ;;  %v5046_v1 = vrot.slane %v5044_v25, 5 }
 0x318   : > { %v6438_v10 = vpop.f32.mrf.mxu1  ;;  %v5052_v23 = vrot.slane %v5050_v44, 5  ;;  %v5056_v49 = vrot.slane %v5054_v37, 4 }
 0x319   : > { %v4155_v32 = vadd.f32 %v6437_v53, %v8678_v58  ;;  %v8750_v13 = vpop.f32.mrf.mxu0  ;;  %v5019_v29 = vrot.slane %v5017_v35, 4  ;;  %v5047_v53 = vor.u32 %v5046_v1, %v5043_v48  ;;  %v6008_v35 = vld [vmem:[%s7303_s26 + $0x3c] sm:$0xf]  ;;  %v6001_v48 = vld [vmem:[%s7303_s26 + $0x20] sm:$0x1] }
 0x31a   : > { %v6439_v12 = vpop.f32.mrf.mxu1  ;;  %v5057_v25 = vor.u32 %v5056_v49, %v5052_v23  ;;  %v6005_v49 = vld [vmem:[%s7303_s26 + $0x30] sm:$0xf] }
 0x31b   : > { %v6440_v6 = vadd.f32 %v6439_v12, %v6438_v10  ;;  %v8748_v38 = vadd.f32 %v4251_v36, %v4155_v32  ;;  %v8753_v58 = vpop.f32.mrf.mxu0  ;;  %v6004_v10 = vld [vmem:[%s7303_s26 + $0x2c] sm:$0x1]  ;;  %v5023_v2 = vor.u32 %v5022_v9, %v5019_v29  ;;  %v5089_v29 = vshrl.u32 %v6008_v35, 16 }
 0x31c   : > { %v6441_v21 = vpop.f32.mrf.mxu1  ;;  %v5092_v9 = vshll.u32 %v6008_v35, 16  ;;  %v6006_v35 = vld [vmem:[%s7303_s26 + $0x34] sm:$0xf] }
 0x31d   : > { %9088 = vst [vmem:[#allocation3_spill] sm:$0xff] %v8748_v38  ;;  %v4158_v3 = vadd.f32 %v6440_v6, %v8680_v34  ;;  %v8758_v55 = vpop.f32.mrf.mxu0  ;;  %v6000_v34 = vld [vmem:[%s7303_s26 + $0x1c] sm:$0xf]  ;;  %v5024_v37 = vrot.slane %v5023_v2, 4 }
 0x31e   : > { %v6442_v56 = vpop.f32.mrf.mxu1  ;;  %v5026_v12 = vshll.u32 %v6000_v34, 16  ;;  %v5030_v6 = vshrl.u32 %v6000_v34, 16 }
 0x31f   : > { %v6443_v14 = vadd.f32 %v6442_v56, %v6441_v21  ;;  %v8756_v36 = vadd.f32 %v8702_v18, %v4158_v3  ;;  %v8762_v42 = vpop.f32.mrf.mxu0  ;;  %v5060_v21 = vshll.u32 %v6004_v10, 16  ;;  %v5036_v10 = vshll.u32 %v6001_v48, 16 }
 0x320   : > { %v6444_v28 = vpop.f32.mrf.mxu1  ;;  %v5032_v1 = vrot.slane %v5030_v6, 4  ;;  %v5068_v48 = vshll.u32 %v6005_v49, 16 }
 0x321   : > { %9089 = vst [vmem:[#allocation4_spill] sm:$0xff] %v8756_v36  ;;  %v4163_v52 = vadd.f32 %v6443_v14, %v8682_v30  ;;  %v8768_v32 = vpop.f32.mrf.mxu0  ;;  %v5028_v14 = vrot.slane %v5026_v12, 5 }
 0x322   : > { %v6445_v17 = vpop.f32.mrf.mxu1 }
 0x323   : > { %v6446_v54 = vadd.f32 %v6445_v17, %v6444_v28  ;;  %v8766_v18 = vadd.f32 %v8694_v46, %v4163_v52  ;;  %v8771_v7 = vpop.f32.mrf.mxu0  ;;  %v5048_v46 = vrot.slane %v5047_v53, 4  ;;  %v5062_v17 = vrot.slane %v5060_v21, 5 }
 0x324   : > { %v6447_v61 = vpop.f32.mrf.mxu1  ;;  %v5029_v12 = vsel %vm8779_vm13, %v5024_v37, %v5028_v14  ;;  %v5033_v6 = vor.u32 %v5032_v1, %v5028_v14  ;;  %v5094_v21 = vrot.slane %v5092_v9, 5  ;;  %v8808_v1 = vrot.slane %v5036_v10, 5 }
 0x325   : > { %9090 = vst [vmem:[#allocation5_spill] sm:$0xff] %v8766_v18  ;;  %v4166_v30 = vadd.f32 %v6446_v54, %v8684_v59  ;;  %v8777_v44 = vpop.f32.mrf.mxu0  ;;  %v5053_v53 = vsel %vm8779_vm13, %v5048_v46, %v5052_v23  ;;  %v8806_v14 = vunpack.c.l.bf16 %v5029_v12 }
 0x326   : > { %v6448_v45 = vpop.f32.mrf.mxu1  ;;  %9092 = vst [vmem:[#allocation7_spill] sm:$0xff] %v8777_v44 }
 0x327   : > { %v6449_v0 = vadd.f32 %v6448_v45, %v6447_v61  ;;  %v8775_v3 = vadd.f32 %v8698_v4, %v4166_v30  ;;  %v8785_v34 = vpop.f32.mrf.mxu0  ;;  %v5058_v4 = vrot.slane %v5057_v25, 4  ;;  %v6009_v30 = vld [vmem:[%s7303_s26 + $0x40] sm:$0xf]  ;;  %v5091_v25 = vrot.slane %v5089_v29, 4 }
 0x328   : > { %v6450_v56 = vpop.f32.mrf.mxu1  ;;  %9095 = vst [vmem:[#allocation8_spill] sm:$0xff] %v8785_v34 }
 0x329   : > { %9091 = vst [vmem:[#allocation6_spill] sm:$0xff] %v8775_v3  ;;  %v4171_v28 = vadd.f32 %v6449_v0, %v8686_v11  ;;  %v8793_v11 = vpop.f32.mrf.mxu0  ;;  %v5065_v0 = vshrl.u32 %v6005_v49, 16  ;;  %v5095_v10 = vor.u32 %v5094_v21, %v5091_v25  ;;  %v6012_v3 = vld [vmem:[%s7303_s26 + $0x4c] sm:$0xf] }
 0x32a   : > { %v6451_v52 = vpop.f32.mrf.mxu1 }
 0x32b   : > { %v6452_v54 = vadd.f32 %v6451_v52, %v6450_v56  ;;  %v8791_v61 = vadd.f32 %v8708_v31, %v4171_v28  ;;  %v8800_v46 = vpop.f32.mrf.mxu0  ;;  %v8802_v31 = vunpack.c.l.bf16 %v5053_v53  ;;  %v5063_v56 = vsel %vm8779_vm13, %v5058_v4, %v5062_v17  ;;  %v6015_v17 = vld [vmem:[%s7303_s26 + $0x58] sm:$0xf] }
 0x32c   : > { %v6453_v2 = vpop.f32.mrf.mxu1  ;;  %v8816_v52 = vrot.slane %v5033_v6, 4  ;;  %v5102_v53 = vshrl.u32 %v6009_v30, 16  ;;  %v5074_v4 = vshll.u32 %v6006_v35, 16  ;;  %v5067_v12 = vrot.slane %v5065_v0, 4 }
 0x32d   : > { %9096 = vst [vmem:[#allocation9_spill] sm:$0xff] %v8791_v61  ;;  %v4174_v45 = vadd.f32 %v6452_v54, %v8688_v41  ;;  %v6014_v41 = vld [vmem:[%s7303_s26 + $0x54] sm:$0xf]  ;;  %v8814_v9 = vpop.f32.mrf.mxu0  ;;  %v5098_v54 = vshll.u32 %v6009_v30, 16  ;;  %v5146_v18 = vshll.u32 %v6015_v17, 16 }
 0x32e   : > { %v6454_v23 = vpop.f32.mrf.mxu1  ;;  %9098 = vst [vmem:[#allocation11_spill] sm:$0xff] %v8814_v9  ;;  %v5137_v6 = vshrl.u32 %v6014_v41, 16  ;;  %v5140_v36 = vshll.u32 %v6014_v41, 16  ;;  %v8833_v0 = vrot.slane %v5074_v4, 5  ;;  %v6010_v41 = vld [vmem:[%s7303_s26 + $0x44] sm:$0x1] }
 0x32f   : > { %v6455_v37 = vadd.f32 %v6454_v23, %v6453_v2  ;;  %v8812_v28 = vadd.f32 %v8714_v63, %v4174_v45  ;;  %v8820_v2 = vunpack.c.l.bf16 %v5063_v56  ;;  %v6011_v23 = vld [vmem:[%s7303_s26 + $0x48] sm:$0xf]  ;;  %v8823_v63 = vpop.f32.mrf.mxu0  ;;  %v5070_v45 = vrot.slane %v5068_v48, 5 }
 0x330   : > { %v6456_v29 = vpop.f32.mrf.mxu1  ;;  %9100 = vst [vmem:[#allocation13_spill] sm:$0xff] %v8823_v63  ;;  %v8831_v21 = vrot.slane %v5098_v54, 5  ;;  %v5113_v48 = vshrl.u32 %v6011_v23, 16  ;;  %v5104_v34 = vrot.slane %v5102_v53, 4  ;;  %v5142_v54 = vrot.slane %v5140_v36, 5 }
 0x331   : > { %9097 = vst [vmem:[#allocation10_spill] sm:$0xff] %v8812_v28  ;;  %v4179_v49 = vadd.f32 %v6455_v37, %v8690_v16  ;;  %9099 = vst [vmem:[#allocation12_spill] sm:$0xff] %v8820_v2  ;;  %v5078_v28 = vshrl.u32 %v6006_v35, 16  ;;  %v5150_v16 = vshrl.u32 %v6015_v17, 16  ;;  %v8829_v25 = vpop.f32.mrf.mxu0  ;;  %v5116_v37 = vshll.u32 %v6011_v23, 16 }
 0x332   : > { %v6457_v61 = vpop.f32.mrf.mxu1  ;;  %9102 = vst [vmem:[#allocation15_spill] sm:$0xff] %v8829_v25  ;;  %v5071_v17 = vor.u32 %v5070_v45, %v5067_v12  ;;  %v5139_v25 = vrot.slane %v5137_v6, 4  ;;  %v8840_v4 = vrot.slane %v5146_v18, 5  ;;  %v5108_v63 = vshll.u32 %v6010_v41, 16  ;;  %v6016_v12 = vld [vmem:[%s7303_s26 + $0x5c] sm:$0x1] }
 0x333   : > { %v6458_v38 = vadd.f32 %v6457_v61, %v6456_v29  ;;  %v8827_v30 = vadd.f32 %v8706_v43, %v4179_v49  ;;  %v5122_v61 = vshll.u32 %v6012_v3, 16  ;;  %v5126_v29 = vshrl.u32 %v6012_v3, 16  ;;  %v8837_v49 = vpop.f32.mrf.mxu0 }
 0x334   : > { %v6459_v56 = vpop.f32.mrf.mxu1  ;;  %9103 = vst [vmem:[#allocation16_spill] sm:$0xff] %v8837_v49  ;;  %v5080_v44 = vrot.slane %v5078_v28, 4  ;;  %v5096_v3 = vrot.slane %v5095_v10, 4  ;;  %v5115_v49 = vrot.slane %v5113_v48, 4  ;;  %v5118_v9 = vrot.slane %v5116_v37, 5 }
 0x335   : > { %9101 = vst [vmem:[#allocation14_spill] sm:$0xff] %v8827_v30  ;;  %v4182_v35 = vadd.f32 %v6458_v38, %v8692_v8  ;;  %v6007_v30 = vld [vmem:[%s7303_s26 + $0x38] sm:$0x1]  ;;  %v5152_v8 = vrot.slane %v5150_v16, 4  ;;  %v8845_v53 = vpop.f32.mrf.mxu0  ;;  %v8849_v36 = vrot.slane %v5122_v61, 5  ;;  %v5128_v18 = vrot.slane %v5126_v29, 4 }
 0x336   : > { %v6460_v43 = vpop.f32.mrf.mxu1  ;;  %v5084_v45 = vshll.u32 %v6007_v30, 16  ;;  %v5105_v16 = vor.u32 %v5104_v34, %v8831_v21  ;;  %v6013_v10 = vld [vmem:[%s7303_s26 + $0x50] sm:$0x1]  ;;  %v5156_v41 = vshll.u32 %v6016_v12, 16  ;;  %v5039_v34 = vsel %vm8779_vm13, %v8816_v52, %v8808_v1 }
 0x337   : > { %v6461_v2 = vadd.f32 %v6460_v43, %v6459_v56  ;;  %v8843_v23 = vadd.f32 %v8712_v24, %v4182_v35  ;;  %v8851_v56 = vpop.f32.mrf.mxu0  ;;  %v5072_v24 = vrot.slane %v5071_v17, 4  ;;  %v5081_v35 = vor.u32 %v5080_v44, %v8833_v0 }
 0x338   : > { %v6462_v38 = vpop.f32.mrf.mxu1  ;;  %v5143_v43 = vor.u32 %v5142_v54, %v5139_v25  ;;  %v5153_v37 = vor.u32 %v5152_v8, %v8840_v4  ;;  %v5101_v44 = vsel %vm8779_vm13, %v5096_v3, %v8831_v21  ;;  %v5110_v25 = vrot.slane %v5108_v63, 5  ;;  %v6020_v8 = vld [vmem:[%s7303_s26 + $0x6c] sm:$0xf] }
 0x339   : > { %v4187_v28 = vadd.f32 %v6461_v2, %v8696_v50  ;;  %v8860_v30 = vpop.f32.mrf.mxu0  ;;  %v5119_v61 = vor.u32 %v5118_v9, %v5115_v49  ;;  %v5086_v17 = vrot.slane %v5084_v45, 5  ;;  %v5132_v54 = vshll.u32 %v6013_v10, 16 }
 0x33a   : > { %v6463_v6 = vpop.f32.mrf.mxu1  ;;  %v5077_v1 = vsel %vm8779_vm13, %v5072_v24, %v8833_v0  ;;  %v5106_v52 = vrot.slane %v5105_v16, 4  ;;  %v5144_v21 = vrot.slane %v5143_v43, 4  ;;  %v5154_v9 = vrot.slane %v5153_v37, 4  ;;  %v8888_v43 = vld [vmem:[%s7303_s26 + $0x70] sm:$0xf] }
 0x33b   : > { %v6464_v48 = vadd.f32 %v6463_v6, %v6462_v38  ;;  %v8858_v50 = vadd.f32 %v8721_v39, %v4187_v28  ;;  %v5129_v39 = vor.u32 %v5128_v18, %v8849_v36  ;;  %v8872_v12 = vpop.f32.mrf.mxu0  ;;  %v5082_v28 = vrot.slane %v5081_v35, 4 }
 0x33c   : > { %v6465_v2 = vpop.f32.mrf.mxu1  ;;  %v5158_v49 = vrot.slane %v5156_v41, 5  ;;  %v8882_v18 = vunpack.c.l.bf16 %v5039_v34  ;;  %v5120_v6 = vrot.slane %v5119_v61, 4  ;;  %v5185_v10 = vshrl.u32 %v6020_v8, 16 }
 0x33d   : > { %v4190_v29 = vadd.f32 %v6464_v48, %v8700_v57  ;;  %v8880_v45 = vpop.f32.mrf.mxu0  ;;  %v5188_v48 = vshll.u32 %v6020_v8, 16  ;;  %v8885_v24 = vunpack.c.l.bf16 %v5101_v44  ;;  %v5130_v16 = vrot.slane %v5129_v39, 4 }
 0x33e   : > { %v6466_v38 = vpop.f32.mrf.mxu1  ;;  %v5134_v35 = vrot.slane %v5132_v54, 5  ;;  %v5087_v34 = vsel %vm8779_vm13, %v5082_v28, %v5086_v17  ;;  %v6511_v44 = vadd.f32 %v8753_v58, %v8750_v13  ;;  %v5187_v17 = vrot.slane %v5185_v10, 4 }
 0x33f   : > { %v6467_v63 = vadd.f32 %v6466_v38, %v6465_v2  ;;  %v8878_v57 = vadd.f32 %v8728_v62, %v4190_v29  ;;  %v8890_v41 = vpop.f32.mrf.mxu0  ;;  %v8892_v62 = vunpack.c.l.bf16 %v5077_v1  ;;  %v5111_v2 = vsel %vm8779_vm13, %v5106_v52, %v5110_v25  ;;  %v8922_v52 = vld [vmem:[%s9078_s4] ss:$0 sm:$0xff] }
 0x340   : > { %v6468_v3 = vpop.f32.mrf.mxu1  ;;  %v5159_v29 = vsel %vm8779_vm13, %v5154_v9, %v5158_v49  ;;  %v5125_v25 = vsel %vm8779_vm13, %v5120_v6, %v8849_v36  ;;  %v5190_v38 = vrot.slane %v5188_v48, 5  ;;  %v6505_v13 = vadd.f32 %v8736_v33, %v8733_v15  ;;  %v6018_v6 = vld [vmem:[%s7303_s26 + $0x64] sm:$0xf] }
 0x341   : > { %v4195_v0 = vadd.f32 %v6467_v63, %v8704_v51  ;;  %v5149_v51 = vsel %vm8779_vm13, %v5144_v21, %v8840_v4  ;;  %v8908_v8 = vpop.f32.mrf.mxu0  ;;  %v5194_v4 = vshll.u32 %v8888_v43, 16  ;;  %v5135_v1 = vsel %vm8779_vm13, %v5130_v16, %v5134_v35 }
 0x342   : > { %v6469_v37 = vpop.f32.mrf.mxu1  ;;  %v8926_v21 = vunpack.c.l.bf16 %v5111_v2  ;;  %v8928_v63 = vunpack.c.l.bf16 %v5087_v34  ;;  %v8930_v9 = vunpack.c.l.bf16 %v5149_v51  ;;  %v8932_v15 = vunpack.c.l.bf16 %v5159_v29 }
 0x343   : > { %v6470_v61 = vadd.f32 %v6469_v37, %v6468_v3  ;;  %v8906_v39 = vadd.f32 %v8717_v19, %v4195_v0  ;;  %v8924_v28 = vpop.f32.mrf.mxu0  ;;  %v6017_v3 = vld [vmem:[%s7303_s26 + $0x60] sm:$0xf]  ;;  %v8942_v0 = vunpack.c.l.bf16 %v5125_v25  ;;  %v8944_v16 = vunpack.c.l.bf16 %v5135_v1  ;;  %v6022_v1 = vld [vmem:[%s7303_s26 + $0x74] sm:$0x1] }
 0x344   : > { %v6757_v54 = vpop.f32.mrf.mxu1  ;;  %v5191_v35 = vor.u32 %v5190_v38, %v5187_v17  ;;  %v8946_v37 = vrot.slane %v5194_v4, 5  ;;  %v6508_v2 = vadd.f32 %v8745_v60, %v8740_v22  ;;  %v5198_v51 = vshrl.u32 %v8888_v43, 16 }
 0x345   : > { %v4198_v58 = vadd.f32 %v6470_v61, %v8710_v27  ;;  %v4896_v19 = vadd.f32 %v6757_v54, %v6511_v44  ;;  %v6514_v27 = vadd.f32 %v8762_v42, %v8758_v55  ;;  %v8952_v34 = vpop.f32.mrf.mxu0  ;;  %v5161_v44 = vshrl.u32 %v6017_v3, 16 }
 0x346   : > { %v4887_v36 = vpop.f32.mrf.mxu1  ;;  %v5164_v61 = vshll.u32 %v6017_v3, 16  ;;  %v5170_v29 = vshll.u32 %v6018_v6, 16  ;;  %v6523_v17 = vadd.f32 %v8800_v46, %v8793_v11  ;;  %v8962_v43 = vrot.slane %v5191_v35, 4  ;;  %v9106_v3 = vld [vmem:[#allocation12_spill] sm:$0xff]  ;;  %v9107_v35 = vld [vmem:[#allocation7_spill] sm:$0xff] }
 0x347   : > { %v4952_v33 = vadd.f32 %v4896_v19, %v8731_v40  ;;  %v4888_v49 = vadd.f32 %v6505_v13, %v4887_v36  ;;  %v8940_v10 = vadd.f32 %v8724_v26, %v4198_v58  ;;  %v5174_v4 = vshrl.u32 %v6018_v6, 16  ;;  %v9104_v36 = vld [vmem:[#allocation11_spill] sm:$0xff] }
 0x348   : > { %v6758_v48 = vpop.f32.mrf.mxu1  ;;  %v5163_v46 = vrot.slane %v5161_v44, 4  ;;  %v9110_v44 = vld [vmem:[#allocation3_spill] sm:$0xff] }
 0x349   : > { %v4975_v55 = vadd.f32 %v8922_v52, %v4952_v33  ;;  %v4950_v40 = vadd.f32 %v4888_v49, %v8719_v20  ;;  %v4899_v42 = vadd.f32 %v6758_v48, %v6514_v27  ;;  %v6517_v20 = vadd.f32 %v8771_v7, %v8768_v32  ;;  %v9105_v32 = vld [vmem:[#allocation13_spill] sm:$0xff] }
 0x34a   : > { %v4890_v26 = vpop.f32.mrf.mxu1  ;;  %v6526_v7 = vadd.f32 %v9105_v32, %v9104_v36  ;;  %v5200_v33 = vrot.slane %v5198_v51, 4 }
 0x34b   : > { %v5242_v54 = vadd.f32 %v8802_v31, %v4975_v55  ;;  %v4973_v25 = vadd.f32 %v8922_v52, %v4950_v40  ;;  %v4953_v22 = vadd.f32 %v4899_v42, %v8738_v47  ;;  %v4891_v60 = vadd.f32 %v6508_v2, %v4890_v26  ;;  %v8967_v47 = vpop.f32.mrf.mxu0  ;;  %v9109_v55 = vld [vmem:[#allocation5_spill] sm:$0xff] }
 0x34c   : > { %v6761_v38 = vpop.f32.mrf.mxu1  ;;  %v5166_v26 = vrot.slane %v5164_v61, 5 }
 0x34d   : > { %v5258_v13 = vmax.f32 %v5242_v54, 0.0  ;;  %v5240_v58 = vadd.f32 %v8806_v14, %v4973_v25  ;;  %v4976_v31 = vadd.f32 %v8922_v52, %v4953_v22  ;;  %v4951_v19 = vadd.f32 %v4891_v60, %v8726_v5  ;;  %v9108_v5 = vld [vmem:[#allocation8_spill] sm:$0xff] }
 0x34e   : > { %v4912_v27 = vadd.f32 %v6761_v38, %v6523_v17  ;;  %v4903_v11 = vpop.f32.mrf.mxu1  ;;  %v6520_v2 = vadd.f32 %v9108_v5, %v9107_v35  ;;  %v5204_v54 = vshll.u32 %v6022_v1, 16  ;;  %v6545_v17 = vpop.f32.mrf.mxu0 }
 0x34f   : > { %5274 = vst [vmem:[%s7283_s7 + $0x10] sm:$0xff] %v5258_v13  ;;  %v5256_v49 = vmax.f32 %v5240_v58, 0.0  ;;  %v5243_v6 = vadd.f32 %v9106_v3, %v4976_v31  ;;  %v4974_v14 = vadd.f32 %v8922_v52, %v4951_v19  ;;  %v4904_v48 = vadd.f32 %v6517_v20, %v4903_v11  ;;  %v9112_v11 = vld [vmem:[#allocation4_spill] sm:$0xff] }
 0x350   : > { %v4956_v40 = vadd.f32 %v4912_v27, %v9109_v55  ;;  %v6762_v42 = vpop.f32.mrf.mxu1  ;;  %v6535_v20 = vadd.f32 %v8872_v12, %v8860_v30  ;;  %v8984_v58 = vrot.slane %v5170_v29, 5  ;;  %v8986_v31 = vrot.slane %v5174_v4, 4 }
 0x351   : > { %5272 = vst [vmem:[%s7283_s7] sm:$0xff] %v5256_v49  ;;  %v5259_v25 = vmax.f32 %v5243_v6, 0.0  ;;  %v5241_v51 = vadd.f32 %v8882_v18, %v4974_v14  ;;  %v4954_v22 = vadd.f32 %v4904_v48, %v9110_v44  ;;  %v4915_v60 = vadd.f32 %v6762_v42, %v6526_v7  ;;  %v9111_v18 = vld [vmem:[#allocation6_spill] sm:$0xff]  ;;  %v9113_v6 = vld [vmem:[#allocation15_spill] sm:$0xff]  ;;  %v9114_v14 = vld [vmem:[#allocation16_spill] sm:$0xff] }
 0x352   : > { %v4979_v38 = vadd.f32 %v8922_v52, %v4956_v40  ;;  %v4906_v13 = vpop.f32.mrf.mxu1  ;;  %v5197_v30 = vsel %vm8779_vm13, %v8962_v43, %v8946_v37  ;;  %v5167_v12 = vor.u32 %v5166_v26, %v5163_v46  ;;  %v5201_v29 = vor.u32 %v5200_v33, %v8946_v37  ;;  %v6019_v40 = vld [vmem:[%s7303_s26 + $0x68] sm:$0x1] }
 0x353   : > { %5275 = vst [vmem:[%s7283_s7 + $0x18] sm:$0xff] %v5259_v25  ;;  %v5257_v61 = vmax.f32 %v5241_v51, 0.0  ;;  %v4977_v19 = vadd.f32 %v8922_v52, %v4954_v22  ;;  %v4957_v1 = vadd.f32 %v4915_v60, %v9111_v18  ;;  %v4907_v36 = vadd.f32 %v6520_v2, %v4906_v13  ;;  %v9115_v2 = vld [vmem:[#allocation14_spill] sm:$0xff]  ;;  %v9116_v60 = vld [vmem:[#allocation9_spill] sm:$0xff] }
 0x354   : > { %v5246_v32 = vadd.f32 %v8885_v24, %v4979_v38  ;;  %v6765_v7 = vpop.f32.mrf.mxu1  ;;  %v6546_v24 = vpop.f32.mrf.mxu0  ;;  %v6529_v48 = vadd.f32 %v9114_v14, %v9113_v6  ;;  %v6538_v43 = vadd.f32 %v8890_v41, %v8880_v45  ;;  %v9005_v33 = vrot.slane %v5204_v54, 5 }
 0x355   : > { %5273 = vst [vmem:[%s7283_s7 + $0x8] sm:$0xff] %v5257_v61  ;;  %v5244_v4 = vadd.f32 %v8892_v62, %v4977_v19  ;;  %v4980_v27 = vadd.f32 %v8922_v52, %v4957_v1  ;;  %v4955_v49 = vadd.f32 %v4907_v36, %v9112_v11  ;;  %v4928_v3 = vadd.f32 %v6765_v7, %v6535_v20 }
 0x356   : > { %v5262_v46 = vmax.f32 %v5246_v32, 0.0  ;;  %v4919_v37 = vpop.f32.mrf.mxu1  ;;  %v6532_v42 = vadd.f32 %v8851_v56, %v8845_v53  ;;  %v6547_v25 = vadd.f32 %v6546_v24, %v6545_v17  ;;  %v5168_v41 = vrot.slane %v5167_v12, 4  ;;  %v6548_v22 = vpop.f32.mrf.mxu0 }
 0x357   : > { %v5260_v35 = vmax.f32 %v5244_v4, 0.0  ;;  %v5247_v62 = vadd.f32 %v8926_v21, %v4980_v27  ;;  %v4978_v5 = vadd.f32 %v8922_v52, %v4955_v49  ;;  %v4960_v55 = vadd.f32 %v4928_v3, %v9115_v2 }
 0x358   : > { %5278 = vst [vmem:[%s7283_s7 + $0x30] sm:$0xff] %v5262_v46  ;;  %v4920_v26 = vadd.f32 %v6529_v48, %v4919_v37  ;;  %v6766_v45 = vpop.f32.mrf.mxu1  ;;  %v5202_v13 = vrot.slane %v5201_v29, 4  ;;  %v5177_v53 = vor.u32 %v8986_v31, %v8984_v58  ;;  %v5180_v56 = vshll.u32 %v6019_v40, 16 }
 0x359   : > { %5276 = vst [vmem:[%s7283_s7 + $0x20] sm:$0xff] %v5260_v35  ;;  %v5263_v54 = vmax.f32 %v5247_v62, 0.0  ;;  %v5245_v51 = vadd.f32 %v8928_v63, %v4978_v5  ;;  %v4983_v21 = vadd.f32 %v8922_v52, %v4960_v55  ;;  %v4931_v44 = vadd.f32 %v6766_v45, %v6538_v43 }
 0x35a   : > { %v4958_v20 = vadd.f32 %v4920_v26, %v9116_v60  ;;  %v4922_v38 = vpop.f32.mrf.mxu1  ;;  %v6541_v18 = vadd.f32 %v8924_v28, %v8908_v8  ;;  %v5238_v32 = vunpack.c.l.bf16 %v5197_v30  ;;  %v5173_v31 = vsel %vm8779_vm13, %v5168_v41, %v8984_v58 }
 0x35b   : > { %5279 = vst [vmem:[%s7283_s7 + $0x38] sm:$0xff] %v5263_v54  ;;  %v5261_v17 = vmax.f32 %v5245_v51, 0.0  ;;  %v5250_v61 = vadd.f32 %v8930_v9, %v4983_v21  ;;  %v4961_v19 = vadd.f32 %v4931_v44, %v8843_v23  ;;  %v4923_v63 = vadd.f32 %v6532_v42, %v4922_v38  ;;  %v9117_v9 = vld [vmem:[#allocation10_spill] sm:$0xff]  ;;  %v6549_v23 = vpop.f32.mrf.mxu0 }
 0x35c   : > { %v4981_v1 = vadd.f32 %v8922_v52, %v4958_v20  ;;  %v6769_v36 = vpop.f32.mrf.mxu1  ;;  %v5207_v28 = vsel %vm8779_vm13, %v5202_v13, %v9005_v33  ;;  %v5178_v30 = vrot.slane %v5177_v53, 4  ;;  %v5182_v11 = vrot.slane %v5180_v56, 5 }
 0x35d   : > { %5277 = vst [vmem:[%s7283_s7 + $0x28] sm:$0xff] %v5261_v17  ;;  %v5266_v7 = vmax.f32 %v5250_v61, 0.0  ;;  %v4984_v12 = vadd.f32 %v8922_v52, %v4961_v19  ;;  %v4959_v29 = vadd.f32 %v4923_v63, %v9117_v9  ;;  %v4944_v4 = vadd.f32 %v6769_v36, %v6547_v25 }
 0x35e   : > { %v5248_v27 = vadd.f32 %v8942_v0, %v4981_v1  ;;  %v4935_v8 = vpop.f32.mrf.mxu1  ;;  %v6544_v0 = vadd.f32 %v8967_v47, %v8952_v34  ;;  %v6550_v14 = vadd.f32 %v6549_v23, %v6548_v22  ;;  %v5236_v48 = vunpack.c.l.bf16 %v5173_v31 }
 0x35f   : > { %5282 = vst [vmem:[%s7283_s7 + $0x50] sm:$0xff] %v5266_v7  ;;  %v5251_v58 = vadd.f32 %v8932_v15, %v4984_v12  ;;  %v4982_v49 = vadd.f32 %v8922_v52, %v4959_v29  ;;  %v4964_v3 = vadd.f32 %v4944_v4, %v8906_v39  ;;  %v4936_v24 = vadd.f32 %v6541_v18, %v4935_v8 }
 0x360   : > { %v5264_v6 = vmax.f32 %v5248_v27, 0.0  ;;  %v6770_v43 = vpop.f32.mrf.mxu1  ;;  %v5183_v62 = vsel %vm8779_vm13, %v5178_v30, %v5182_v11  ;;  %v5239_v55 = vunpack.c.l.bf16 %v5207_v28 }
 0x361   : > { %v5267_v46 = vmax.f32 %v5251_v58, 0.0  ;;  %v5249_v37 = vadd.f32 %v8944_v16, %v4982_v49  ;;  %v4987_v33 = vadd.f32 %v8922_v52, %v4964_v3  ;;  %v4962_v15 = vadd.f32 %v4936_v24, %v8858_v50 }
 0x362   : > { %5280 = vst [vmem:[%s7283_s7 + $0x40] sm:$0xff] %v5264_v6  ;;  %v4947_v35 = vadd.f32 %v6770_v43, %v6550_v14  ;;  %v4938_v39 = vpop.f32.mrf.mxu1  ;;  %v5237_v26 = vunpack.c.l.bf16 %v5183_v62 }
 0x363   : > { %5283 = vst [vmem:[%s7283_s7 + $0x58] sm:$0xff] %v5267_v46  ;;  %v5265_v34 = vmax.f32 %v5249_v37, 0.0  ;;  %v5254_v47 = vadd.f32 %v5238_v32, %v4987_v33  ;;  %v4985_v5 = vadd.f32 %v8922_v52, %v4962_v15  ;;  %v4939_v2 = vadd.f32 %v6544_v0, %v4938_v39 }
 0x364   : > { %v4965_v16 = vadd.f32 %v4947_v35, %v8940_v10 }
 0x365   : > { %5281 = vst [vmem:[%s7283_s7 + $0x48] sm:$0xff] %v5265_v34  ;;  %v5270_v50 = vmax.f32 %v5254_v47, 0.0  ;;  %v5252_v40 = vadd.f32 %v5236_v48, %v4985_v5  ;;  %v4963_v42 = vadd.f32 %v4939_v2, %v8878_v57 }
 0x366   : > { %v4988_v59 = vadd.f32 %v8922_v52, %v4965_v16 }
 0x367   : > { %5286 = vst [vmem:[%s7283_s7 + $0x70] sm:$0xff] %v5270_v50  ;;  %v5268_v25 = vmax.f32 %v5252_v40, 0.0  ;;  %v4986_v45 = vadd.f32 %v8922_v52, %v4963_v42 }
 0x368   : > { %v5255_v41 = vadd.f32 %v5239_v55, %v4988_v59 }
 0x369   : > { %5284 = vst [vmem:[%s7283_s7 + $0x60] sm:$0xff] %v5268_v25  ;;  %v5253_v54 = vadd.f32 %v5237_v26, %v4986_v45 }
 0x36a   : > { %v5271_v51 = vmax.f32 %v5255_v41, 0.0 }
 0x36b   : > { %v5269_v10 = vmax.f32 %v5253_v54, 0.0 }
 0x36c   : > { %5287 = vst [vmem:[%s7283_s7 + $0x78] sm:$0xff] %v5271_v51 }
 0x36d   : > { %5285 = vst [vmem:[%s7283_s7 + $0x68] sm:$0xff] %v5269_v10 }
 0x36e PF: > { %s15_s22 = sadd.s32 1, %s7159_s22   ;;  %s9118_s18 = smov %s7151_s20 }
 0x36f   : > { %p12_p10 = scmp.ge.s32.totalorder %s15_s22, 6   ;;  %s9119_s19 = smov %s7155_s21 }
 0x370   : > { %s9120_s20 = smov %s9123_s23  ;;  %s9121_s21 = smov %s9127_s24 }
 0x371   :  { %14 = sbr.rel (!%p12_p10) target bundleno = 3 (0x3), region = 87 }

</bundles_post_ra>
